<compile_context>
chip_gen: v7x
topology: tpu7x:2x2x1
jax: 0.10.0
libtpu: 0.0.40
codegen_flags: <defaults>
</compile_context>

<pallas_src>
import jax
import jax.numpy as jnp
import numpy as np
from jax.experimental import pallas as pl
from jax.experimental.pallas import tpu as pltpu

_EPS = 1e-5   # BatchNorm2d eps (eval mode, running stats)


def _pair(v):
    return (v, v) if isinstance(v, int) else tuple(v)


# --------------------------------------------------------------- weight prep --

def _band_weights(p, W, *, kw, pw, dw):
    """Fold BN scale into the conv weight and expand the width taps into block-banded
    matrices so a KhxKw conv becomes `kh` plain 2-D matmuls in the (H, W*C) layout.

    Returns:
      wstack: (kh, W*cin, W*cout) float32 band matrices (one per kernel row).
      bias  : (1,  W*cout)        float32 folded BN bias tiled per pixel column.
    """
    w = p["w"]                                       # HWIO (kh, kw, cin, cout)
    kh, kw_, cin, cout = w.shape
    assert kw_ == kw
    s = p["gamma"] * jax.lax.rsqrt(p["var"] + _EPS)
    bias = p["beta"] - p["mean"] * s
    wf = w * s                                       # BN scale folded into weights

    # sel[kj, src, dst] = 1 iff src == dst + kj*dw - pw (zero outside => width padding)
    sel = np.zeros((kw, W, W), np.float32)
    for kj in range(kw):
        for dst in range(W):
            src = dst + kj * dw - pw
            if 0 <= src < W:
                sel[kj, src, dst] = 1.0
    wstack = jnp.einsum("ksj,hkcd->hscjd", jnp.asarray(sel), wf)
    wstack = wstack.reshape(kh, W * cin, W * cout)
    bias_row = jnp.tile(bias, W).reshape(1, W * cout)
    return wstack, bias_row


# -------------------------------------------------------------------- kernel --

def _make_rfb_kernel(cfgs, identity, scale, H, ph_pad):
    """cfgs: per-branch-conv static tuples (kh, dh, ph, relu, W*cin)."""
    n_conv = len(cfgs)

    def kernel(*refs):
        x_ref = refs[0]
        conv_refs = refs[1:1 + 2 * n_conv]
        idx = 1 + 2 * n_conv
        wl1_ref, wl2_ref, bl_ref = refs[idx:idx + 3]
        idx += 3
        if identity:
            wsc_ref = bsc_ref = None
        else:
            wsc_ref, bsc_ref = refs[idx:idx + 2]
            idx += 2
        out_ref = refs[idx]
        pad_ref = refs[idx + 1]                       # VMEM halo scratch

        # Zero the halo scratch once per image; top/bottom bands are never rewritten.
        pad_ref[...] = jnp.zeros_like(pad_ref)

        x2d = x_ref[...]                              # (H, W*Cin) f32

        def mm(a, w):                                 # bf16 MXU inputs, f32 accumulate
            return jnp.dot(a.astype(jnp.bfloat16), w,
                           preferred_element_type=jnp.float32)

        def conv(val, li):
            kh, dh, ph, relu, wc = cfgs[li]
            w_ref = conv_refs[2 * li]
            b_ref = conv_refs[2 * li + 1]
            if kh == 1:                               # width taps/pad are in the band matrix
                acc = mm(val, w_ref[0])
            else:                                     # shifted-row loads through halo scratch
                pad_ref[ph_pad:ph_pad + H, :wc] = val
                acc = None
                for ki in range(kh):
                    r0 = ph_pad + ki * dh - ph
                    part = mm(pad_ref[r0:r0 + H, :wc], w_ref[ki])
                    acc = part if acc is None else acc + part
            acc = acc + b_ref[...]                    # folded BN bias
            return jnp.maximum(acc, 0.0) if relu else acc

        t = x2d
        for li in range(4):                           # branch1
            t = conv(t, li)
        x1 = t
        t = x2d
        for li in range(4, 8):                        # branch2
            t = conv(t, li)
        x2 = t

        # ConvLinear over torch.cat([x1, x2], dim=channel), folded into two half matmuls.
        lin = mm(x1, wl1_ref[...]) + mm(x2, wl2_ref[...]) + bl_ref[...]
        short = x2d if identity else mm(x2d, wsc_ref[...]) + bsc_ref[...]
        out_ref[...] = jnp.maximum(lin * scale + short, 0.0)

    return kernel


# ------------------------------------------------------------------- wrapper --

# (param key, kernel_size, padding, dilation, relu) of the two branch stacks, mirroring
# BasicRFB_lite.  The last conv of each branch is `BasicSepConv`, which in the reference
# code is a plain Conv2d (its `groups` argument is never forwarded), so it is treated as
# a full convolution here as well.
_BRANCH_CONVS = [
    ("b1_0", (1, 1), (0, 0), (1, 1), True),
    ("b1_1", (1, 3), (0, 1), (1, 1), True),
    ("b1_2", (3, 1), (1, 0), (1, 1), True),
    ("b1_3", (3, 3), (3, 3), (3, 3), False),
    ("b2_0", (1, 1), (0, 0), (1, 1), True),
    ("b2_1", (3, 3), (1, 1), (1, 1), True),
    ("b2_2", (3, 3), (1, 1), (1, 1), True),
    ("b2_3", (3, 3), (5, 5), (5, 5), False),
]


def rfb_lite_forward(x_nchw, params, *, stride=1, scale=0.1):
    """Fused Pallas forward of BasicRFB_lite (eval-mode BN).  NCHW in / NCHW out."""
    if stride != 1:
        # TODO(synk): strided branch convs / shortcut not implemented in the fused kernel.
        raise NotImplementedError("fused RFB-lite kernel supports stride=1 only")

    N, cin, H, W = x_nchw.shape
    identity = "shortcut" not in params
    x2d = jnp.transpose(x_nchw, (0, 2, 3, 1)).reshape(N, H, W * cin)

    inputs = [x2d]
    in_specs = [pl.BlockSpec((None, H, W * cin), lambda n: (n, 0, 0))]

    def add_operand(arr):
        inputs.append(arr)
        if arr.ndim == 3:
            in_specs.append(pl.BlockSpec(arr.shape, lambda n: (0, 0, 0)))
        else:
            in_specs.append(pl.BlockSpec(arr.shape, lambda n: (0, 0)))

    cfgs = []
    for name, ks, pad, dil, relu in _BRANCH_CONVS:
        p = params[name]
        kh, kw = ks
        ph, pw = pad
        dh, dw = dil
        wstack, bias = _band_weights(p, W, kw=kw, pw=pw, dw=dw)
        add_operand(wstack.astype(jnp.bfloat16))
        add_operand(bias)
        cfgs.append((kh, dh, ph, relu, W * p["w"].shape[2]))

    # ConvLinear: split its 1x1 weight into the two branch halves (folds torch.cat).
    plin = params["convlinear"]
    cb = params["b1_3"]["w"].shape[3]                 # channels produced by each branch
    wl1, bias_lin = _band_weights(dict(plin, w=plin["w"][:, :, :cb, :]), W, kw=1, pw=0, dw=1)
    wl2, _ = _band_weights(dict(plin, w=plin["w"][:, :, cb:, :]), W, kw=1, pw=0, dw=1)
    add_operand(wl1[0].astype(jnp.bfloat16))
    add_operand(wl2[0].astype(jnp.bfloat16))
    add_operand(bias_lin)
    cout = plin["w"].shape[3]

    if not identity:
        wsc, bias_sc = _band_weights(params["shortcut"], W, kw=1, pw=0, dw=1)
        add_operand(wsc[0].astype(jnp.bfloat16))
        add_operand(bias_sc)

    max_ph = max([c[2] for c in cfgs if c[0] > 1] + [0])
    ph_pad = -(-max_ph // 8) * 8                      # sublane-aligned halo for clean stores
    pad_w = max([c[4] for c in cfgs if c[0] > 1] + [8])

    kernel = _make_rfb_kernel(cfgs, identity, float(scale), H, ph_pad)

    out2d = pl.pallas_call(
        kernel,
        out_shape=jax.ShapeDtypeStruct((N, H, W * cout), jnp.float32),
        grid=(N,),
        in_specs=in_specs,
        out_specs=pl.BlockSpec((None, H, W * cout), lambda n: (n, 0, 0)),
        scratch_shapes=[pltpu.VMEM((H + 2 * ph_pad, pad_w), jnp.float32)],
        compiler_params=pltpu.CompilerParams(dimension_semantics=("parallel",)),
    )(*inputs)

    return jnp.transpose(out2d.reshape(N, H, W, cout), (0, 3, 1, 2))


# ---------------------------------------------------------------- parameters --

def make_conv_params(key, kh, kw, cin, cout):
    k1, k2, k3, k4, k5 = jax.random.split(key, 5)
    return dict(
        w=0.1 * jax.random.normal(k1, (kh, kw, cin, cout), jnp.float32),   # HWIO
        gamma=1.0 + 0.1 * jax.random.normal(k2, (cout,), jnp.float32),
        beta=0.05 * jax.random.normal(k3, (cout,), jnp.float32),
        mean=0.05 * jax.random.normal(k4, (cout,), jnp.float32),
        var=jax.random.uniform(k5, (cout,), jnp.float32, 0.5, 1.5),
    )


def init_rfb_lite_params(key, in_planes, out_planes):
    assert in_planes % 16 == 0, "in_planes must be divisible by 16 (module concat constraint)"
    inter = in_planes // 8
    cb = inter // 2 * 3
    keys = iter(jax.random.split(key, 10))
    p = {
        "b1_0": make_conv_params(next(keys), 1, 1, in_planes, inter),
        "b1_1": make_conv_params(next(keys), 1, 3, inter, cb),
        "b1_2": make_conv_params(next(keys), 3, 1, cb, cb),
        "b1_3": make_conv_params(next(keys), 3, 3, cb, cb),
        "b2_0": make_conv_params(next(keys), 1, 1, in_planes, inter),
        "b2_1": make_conv_params(next(keys), 3, 3, inter, cb),
        "b2_2": make_conv_params(next(keys), 3, 3, cb, cb),
        "b2_3": make_conv_params(next(keys), 3, 3, cb, cb),
        "convlinear": make_conv_params(next(keys), 1, 1, 3 * inter, out_planes),
    }
    if in_planes != out_planes:
        p["shortcut"] = make_conv_params(next(keys), 1, 1, in_planes, out_planes)
    return p


# ------------------------------------------------------ pure-JAX reference ----

def _ref_conv(x, p, *, ks, stride=1, padding=0, dilation=1, relu=True):
    kh, kw = _pair(ks)
    sh, sw = _pair(stride)
    ph, pw = _pair(padding)
    dh, dw = _pair(dilation)
    y = jax.lax.conv_general_dilated(
        x, p["w"], window_strides=(sh, sw), padding=[(ph, ph), (pw, pw)],
        rhs_dilation=(dh, dw), dimension_numbers=("NHWC", "HWIO", "NHWC"))
    s = p["gamma"] / jnp.sqrt(p["var"] + _EPS)
    y = y * s + (p["beta"] - p["mean"] * s)
    return jnp.maximum(y, 0.0) if relu else y


def rfb_lite_forward_ref(x_nchw, params, *, stride=1, scale=0.1):
    x = jnp.transpose(x_nchw, (0, 2, 3, 1))
    x1 = _ref_conv(x, params["b1_0"], ks=1)
    x1 = _ref_conv(x1, params["b1_1"], ks=(1, 3), padding=(0, 1))
    x1 = _ref_conv(x1, params["b1_2"], ks=(3, 1), stride=stride, padding=(1, 0))
    x1 = _ref_conv(x1, params["b1_3"], ks=3, padding=3, dilation=3, relu=False)
    x2 = _ref_conv(x, params["b2_0"], ks=1)
    x2 = _ref_conv(x2, params["b2_1"], ks=3, padding=1)
    x2 = _ref_conv(x2, params["b2_2"], ks=3, stride=stride, padding=1)
    x2 = _ref_conv(x2, params["b2_3"], ks=3, padding=5, dilation=5, relu=False)
    out = jnp.concatenate([x1, x2], axis=-1)
    out = _ref_conv(out, params["convlinear"], ks=1, relu=False)
    short = x if "shortcut" not in params else _ref_conv(
        x, params["shortcut"], ks=1, stride=stride, relu=False)
    out = jnp.maximum(out * scale + short, 0.0)
    return jnp.transpose(out, (0, 3, 1, 2))


# ------------------------------------------------------------------- main ----

if __name__ == "__main__":
    key = jax.random.PRNGKey(0)
    kx, kp_a, kp_b = jax.random.split(key, 3)

    N, H, W = 2, 16, 16
    # (in_planes, out_planes): first exercises the shortcut conv, second the identity path.
    for (cin, cout), kp in (((32, 64), kp_a), ((32, 32), kp_b)):
        x = jax.random.normal(kx, (N, cin, H, W), jnp.float32)   # PyTorch NCHW layout
        params = init_rfb_lite_params(kp, cin, cout)

        out = rfb_lite_forward(x, params, stride=1, scale=0.1)
        jax.block_until_ready(out)
        ref = rfb_lite_forward_ref(x, params, stride=1, scale=0.1)

        assert out.shape == (N, cout, H, W), out.shape
        err = float(np.max(np.abs(np.asarray(out) - np.asarray(ref))))
        assert np.allclose(np.asarray(out), np.asarray(ref), rtol=2e-2, atol=2e-2), err

    print("KERNEL_OK")
</pallas_src>

<mosaic_0001>
module attributes {stable_mosaic.version = 11 : i64} {
  func.func @kernel(%arg0: i32, %arg1: memref<1x16x512xf32, #tpu.memory_space<vmem>>, %arg2: memref<1x512x64xbf16, #tpu.memory_space<vmem>>, %arg3: memref<1x64xf32, #tpu.memory_space<vmem>>, %arg4: memref<1x64x96xbf16, #tpu.memory_space<vmem>>, %arg5: memref<1x96xf32, #tpu.memory_space<vmem>>, %arg6: memref<3x96x96xbf16, #tpu.memory_space<vmem>>, %arg7: memref<1x96xf32, #tpu.memory_space<vmem>>, %arg8: memref<3x96x96xbf16, #tpu.memory_space<vmem>>, %arg9: memref<1x96xf32, #tpu.memory_space<vmem>>, %arg10: memref<1x512x64xbf16, #tpu.memory_space<vmem>>, %arg11: memref<1x64xf32, #tpu.memory_space<vmem>>, %arg12: memref<3x64x96xbf16, #tpu.memory_space<vmem>>, %arg13: memref<1x96xf32, #tpu.memory_space<vmem>>, %arg14: memref<3x96x96xbf16, #tpu.memory_space<vmem>>, %arg15: memref<1x96xf32, #tpu.memory_space<vmem>>, %arg16: memref<3x96x96xbf16, #tpu.memory_space<vmem>>, %arg17: memref<1x96xf32, #tpu.memory_space<vmem>>, %arg18: memref<96x1024xbf16, #tpu.memory_space<vmem>>, %arg19: memref<96x1024xbf16, #tpu.memory_space<vmem>>, %arg20: memref<1x1024xf32, #tpu.memory_space<vmem>>, %arg21: memref<512x1024xbf16, #tpu.memory_space<vmem>>, %arg22: memref<1x1024xf32, #tpu.memory_space<vmem>>, %arg23: memref<1x16x1024xf32, #tpu.memory_space<vmem>>, %arg24: memref<32x96xf32, #tpu.memory_space<vmem>>) attributes {dimension_semantics = [#tpu.dimension_semantics<parallel>], iteration_bounds = array<i64: 2>, scalar_prefetch = 0 : i64, scratch_operands = 1 : i64, tpu.core_type = #tpu.core_type<tc>, window_params = [{transform_indices = @transform_0, window_bounds = array<i64: 1, 16, 512>}, {pipeline_mode = #tpu.pipeline_mode<synchronous>, transform_indices = @transform_1, window_bounds = array<i64: 1, 512, 64>}, {pipeline_mode = #tpu.pipeline_mode<synchronous>, transform_indices = @transform_2, window_bounds = array<i64: 1, 64>}, {pipeline_mode = #tpu.pipeline_mode<synchronous>, transform_indices = @transform_3, window_bounds = array<i64: 1, 64, 96>}, {pipeline_mode = #tpu.pipeline_mode<synchronous>, transform_indices = @transform_4, window_bounds = array<i64: 1, 96>}, {pipeline_mode = #tpu.pipeline_mode<synchronous>, transform_indices = @transform_5, window_bounds = array<i64: 3, 96, 96>}, {pipeline_mode = #tpu.pipeline_mode<synchronous>, transform_indices = @transform_6, window_bounds = array<i64: 1, 96>}, {pipeline_mode = #tpu.pipeline_mode<synchronous>, transform_indices = @transform_7, window_bounds = array<i64: 3, 96, 96>}, {pipeline_mode = #tpu.pipeline_mode<synchronous>, transform_indices = @transform_8, window_bounds = array<i64: 1, 96>}, {pipeline_mode = #tpu.pipeline_mode<synchronous>, transform_indices = @transform_9, window_bounds = array<i64: 1, 512, 64>}, {pipeline_mode = #tpu.pipeline_mode<synchronous>, transform_indices = @transform_10, window_bounds = array<i64: 1, 64>}, {pipeline_mode = #tpu.pipeline_mode<synchronous>, transform_indices = @transform_11, window_bounds = array<i64: 3, 64, 96>}, {pipeline_mode = #tpu.pipeline_mode<synchronous>, transform_indices = @transform_12, window_bounds = array<i64: 1, 96>}, {pipeline_mode = #tpu.pipeline_mode<synchronous>, transform_indices = @transform_13, window_bounds = array<i64: 3, 96, 96>}, {pipeline_mode = #tpu.pipeline_mode<synchronous>, transform_indices = @transform_14, window_bounds = array<i64: 1, 96>}, {pipeline_mode = #tpu.pipeline_mode<synchronous>, transform_indices = @transform_15, window_bounds = array<i64: 3, 96, 96>}, {pipeline_mode = #tpu.pipeline_mode<synchronous>, transform_indices = @transform_16, window_bounds = array<i64: 1, 96>}, {pipeline_mode = #tpu.pipeline_mode<synchronous>, transform_indices = @transform_17, window_bounds = array<i64: 96, 1024>}, {pipeline_mode = #tpu.pipeline_mode<synchronous>, transform_indices = @transform_18, window_bounds = array<i64: 96, 1024>}, {pipeline_mode = #tpu.pipeline_mode<synchronous>, transform_indices = @transform_19, window_bounds = array<i64: 1, 1024>}, {pipeline_mode = #tpu.pipeline_mode<synchronous>, transform_indices = @transform_20, window_bounds = array<i64: 512, 1024>}, {pipeline_mode = #tpu.pipeline_mode<synchronous>, transform_indices = @transform_21, window_bounds = array<i64: 1, 1024>}, {transform_indices = @transform_22, window_bounds = array<i64: 1, 16, 1024>}]} {
    %cst = arith.constant 0.000000e+00 : f32
    %0 = vector.broadcast %cst : f32 to vector<32x96xf32>
    %c0 = arith.constant 0 : index
    %c0_0 = arith.constant 0 : index
    %1 = vector.load %arg24[%c0, %c0_0] : memref<32x96xf32, #tpu.memory_space<vmem>>, vector<32x96xf32>
    tpu.vector_store %arg24[%c0, %c0_0], %0 {strides = array<i32>} : memref<32x96xf32, #tpu.memory_space<vmem>>, vector<32x96xf32>,
    %c0_1 = arith.constant 0 : index
    %c0_2 = arith.constant 0 : index
    %c0_3 = arith.constant 0 : index
    %2 = vector.load %arg1[%c0_1, %c0_2, %c0_3] : memref<1x16x512xf32, #tpu.memory_space<vmem>>, vector<1x16x512xf32>
    %3 = vector.shape_cast %2 : vector<1x16x512xf32> to vector<16x512xf32>
    %c0_4 = arith.constant 0 : index
    %c0_5 = arith.constant 0 : index
    %c0_6 = arith.constant 0 : index
    %4 = vector.load %arg2[%c0_4, %c0_5, %c0_6] : memref<1x512x64xbf16, #tpu.memory_space<vmem>>, vector<1x512x64xbf16>
    %5 = vector.shape_cast %4 : vector<1x512x64xbf16> to vector<512x64xbf16>
    %6 = arith.truncf %3 : vector<16x512xf32> to vector<16x512xbf16>
    %cst_7 = arith.constant dense<0.000000e+00> : vector<16x64xf32>
    %7 = tpu.matmul %6, %5, %cst_7 {dimension_numbers = #tpu.dot_dimension_numbers<[1], [0], [0], [1], [0, 0, 1, 1], [], []>} : vector<16x512xbf16>, vector<512x64xbf16>, vector<16x64xf32> -> vector<16x64xf32>
    %c0_8 = arith.constant 0 : index
    %c0_9 = arith.constant 0 : index
    %8 = vector.load %arg3[%c0_8, %c0_9] : memref<1x64xf32, #tpu.memory_space<vmem>>, vector<1x64xf32>
    %9 = vector.broadcast %8 : vector<1x64xf32> to vector<16x64xf32>
    %10 = arith.addf %7, %9 : vector<16x64xf32>
    %cst_10 = arith.constant 0.000000e+00 : f32
    %11 = vector.broadcast %cst_10 : f32 to vector<16x64xf32>
    %12 = arith.maximumf %10, %11 : vector<16x64xf32>
    %c0_11 = arith.constant 0 : index
    %c0_12 = arith.constant 0 : index
    %c0_13 = arith.constant 0 : index
    %13 = vector.load %arg4[%c0_11, %c0_12, %c0_13] : memref<1x64x96xbf16, #tpu.memory_space<vmem>>, vector<1x64x96xbf16>
    %14 = vector.shape_cast %13 : vector<1x64x96xbf16> to vector<64x96xbf16>
    %15 = arith.truncf %12 : vector<16x64xf32> to vector<16x64xbf16>
    %cst_14 = arith.constant dense<0.000000e+00> : vector<16x96xf32>
    %16 = tpu.matmul %15, %14, %cst_14 {dimension_numbers = #tpu.dot_dimension_numbers<[1], [0], [0], [1], [0, 0, 1, 1], [], []>} : vector<16x64xbf16>, vector<64x96xbf16>, vector<16x96xf32> -> vector<16x96xf32>
    %c0_15 = arith.constant 0 : index
    %c0_16 = arith.constant 0 : index
    %17 = vector.load %arg5[%c0_15, %c0_16] : memref<1x96xf32, #tpu.memory_space<vmem>>, vector<1x96xf32>
    %18 = vector.broadcast %17 : vector<1x96xf32> to vector<16x96xf32>
    %19 = arith.addf %16, %18 : vector<16x96xf32>
    %cst_17 = arith.constant 0.000000e+00 : f32
    %20 = vector.broadcast %cst_17 : f32 to vector<16x96xf32>
    %21 = arith.maximumf %19, %20 : vector<16x96xf32>
    %c8 = arith.constant 8 : index
    %c0_18 = arith.constant 0 : index
    %22 = vector.load %arg24[%c8, %c0_18] : memref<32x96xf32, #tpu.memory_space<vmem>>, vector<16x96xf32>
    tpu.vector_store %arg24[%c8, %c0_18], %21 {strides = array<i32>} : memref<32x96xf32, #tpu.memory_space<vmem>>, vector<16x96xf32>,
    %c7 = arith.constant 7 : index
    %c0_19 = arith.constant 0 : index
    %23 = vector.load %arg24[%c7, %c0_19] : memref<32x96xf32, #tpu.memory_space<vmem>>, vector<16x96xf32>
    %c0_20 = arith.constant 0 : index
    %c0_21 = arith.constant 0 : index
    %c0_22 = arith.constant 0 : index
    %24 = vector.load %arg6[%c0_20, %c0_21, %c0_22] : memref<3x96x96xbf16, #tpu.memory_space<vmem>>, vector<1x96x96xbf16>
    %25 = vector.shape_cast %24 : vector<1x96x96xbf16> to vector<96x96xbf16>
    %26 = arith.truncf %23 : vector<16x96xf32> to vector<16x96xbf16>
    %cst_23 = arith.constant dense<0.000000e+00> : vector<16x96xf32>
    %27 = tpu.matmul %26, %25, %cst_23 {dimension_numbers = #tpu.dot_dimension_numbers<[1], [0], [0], [1], [0, 0, 1, 1], [], []>} : vector<16x96xbf16>, vector<96x96xbf16>, vector<16x96xf32> -> vector<16x96xf32>
    %c8_24 = arith.constant 8 : index
    %c0_25 = arith.constant 0 : index
    %28 = vector.load %arg24[%c8_24, %c0_25] : memref<32x96xf32, #tpu.memory_space<vmem>>, vector<16x96xf32>
    %c1 = arith.constant 1 : index
    %c0_26 = arith.constant 0 : index
    %c0_27 = arith.constant 0 : index
    %29 = vector.load %arg6[%c1, %c0_26, %c0_27] : memref<3x96x96xbf16, #tpu.memory_space<vmem>>, vector<1x96x96xbf16>
    %30 = vector.shape_cast %29 : vector<1x96x96xbf16> to vector<96x96xbf16>
    %31 = arith.truncf %28 : vector<16x96xf32> to vector<16x96xbf16>
    %cst_28 = arith.constant dense<0.000000e+00> : vector<16x96xf32>
    %32 = tpu.matmul %31, %30, %cst_28 {dimension_numbers = #tpu.dot_dimension_numbers<[1], [0], [0], [1], [0, 0, 1, 1], [], []>} : vector<16x96xbf16>, vector<96x96xbf16>, vector<16x96xf32> -> vector<16x96xf32>
    %33 = arith.addf %27, %32 : vector<16x96xf32>
    %c9 = arith.constant 9 : index
    %c0_29 = arith.constant 0 : index
    %34 = vector.load %arg24[%c9, %c0_29] : memref<32x96xf32, #tpu.memory_space<vmem>>, vector<16x96xf32>
    %c2 = arith.constant 2 : index
    %c0_30 = arith.constant 0 : index
    %c0_31 = arith.constant 0 : index
    %35 = vector.load %arg6[%c2, %c0_30, %c0_31] : memref<3x96x96xbf16, #tpu.memory_space<vmem>>, vector<1x96x96xbf16>
    %36 = vector.shape_cast %35 : vector<1x96x96xbf16> to vector<96x96xbf16>
    %37 = arith.truncf %34 : vector<16x96xf32> to vector<16x96xbf16>
    %cst_32 = arith.constant dense<0.000000e+00> : vector<16x96xf32>
    %38 = tpu.matmul %37, %36, %cst_32 {dimension_numbers = #tpu.dot_dimension_numbers<[1], [0], [0], [1], [0, 0, 1, 1], [], []>} : vector<16x96xbf16>, vector<96x96xbf16>, vector<16x96xf32> -> vector<16x96xf32>
    %39 = arith.addf %33, %38 : vector<16x96xf32>
    %c0_33 = arith.constant 0 : index
    %c0_34 = arith.constant 0 : index
    %40 = vector.load %arg7[%c0_33, %c0_34] : memref<1x96xf32, #tpu.memory_space<vmem>>, vector<1x96xf32>
    %41 = vector.broadcast %40 : vector<1x96xf32> to vector<16x96xf32>
    %42 = arith.addf %39, %41 : vector<16x96xf32>
    %cst_35 = arith.constant 0.000000e+00 : f32
    %43 = vector.broadcast %cst_35 : f32 to vector<16x96xf32>
    %44 = arith.maximumf %42, %43 : vector<16x96xf32>
    %c8_36 = arith.constant 8 : index
    %c0_37 = arith.constant 0 : index
    %45 = vector.load %arg24[%c8_36, %c0_37] : memref<32x96xf32, #tpu.memory_space<vmem>>, vector<16x96xf32>
    tpu.vector_store %arg24[%c8_36, %c0_37], %44 {strides = array<i32>} : memref<32x96xf32, #tpu.memory_space<vmem>>, vector<16x96xf32>,
    %c5 = arith.constant 5 : index
    %c0_38 = arith.constant 0 : index
    %46 = vector.load %arg24[%c5, %c0_38] : memref<32x96xf32, #tpu.memory_space<vmem>>, vector<16x96xf32>
    %c0_39 = arith.constant 0 : index
    %c0_40 = arith.constant 0 : index
    %c0_41 = arith.constant 0 : index
    %47 = vector.load %arg8[%c0_39, %c0_40, %c0_41] : memref<3x96x96xbf16, #tpu.memory_space<vmem>>, vector<1x96x96xbf16>
    %48 = vector.shape_cast %47 : vector<1x96x96xbf16> to vector<96x96xbf16>
    %49 = arith.truncf %46 : vector<16x96xf32> to vector<16x96xbf16>
    %cst_42 = arith.constant dense<0.000000e+00> : vector<16x96xf32>
    %50 = tpu.matmul %49, %48, %cst_42 {dimension_numbers = #tpu.dot_dimension_numbers<[1], [0], [0], [1], [0, 0, 1, 1], [], []>} : vector<16x96xbf16>, vector<96x96xbf16>, vector<16x96xf32> -> vector<16x96xf32>
    %c8_43 = arith.constant 8 : index
    %c0_44 = arith.constant 0 : index
    %51 = vector.load %arg24[%c8_43, %c0_44] : memref<32x96xf32, #tpu.memory_space<vmem>>, vector<16x96xf32>
    %c1_45 = arith.constant 1 : index
    %c0_46 = arith.constant 0 : index
    %c0_47 = arith.constant 0 : index
    %52 = vector.load %arg8[%c1_45, %c0_46, %c0_47] : memref<3x96x96xbf16, #tpu.memory_space<vmem>>, vector<1x96x96xbf16>
    %53 = vector.shape_cast %52 : vector<1x96x96xbf16> to vector<96x96xbf16>
    %54 = arith.truncf %51 : vector<16x96xf32> to vector<16x96xbf16>
    %cst_48 = arith.constant dense<0.000000e+00> : vector<16x96xf32>
    %55 = tpu.matmul %54, %53, %cst_48 {dimension_numbers = #tpu.dot_dimension_numbers<[1], [0], [0], [1], [0, 0, 1, 1], [], []>} : vector<16x96xbf16>, vector<96x96xbf16>, vector<16x96xf32> -> vector<16x96xf32>
    %56 = arith.addf %50, %55 : vector<16x96xf32>
    %c11 = arith.constant 11 : index
    %c0_49 = arith.constant 0 : index
    %57 = vector.load %arg24[%c11, %c0_49] : memref<32x96xf32, #tpu.memory_space<vmem>>, vector<16x96xf32>
    %c2_50 = arith.constant 2 : index
    %c0_51 = arith.constant 0 : index
    %c0_52 = arith.constant 0 : index
    %58 = vector.load %arg8[%c2_50, %c0_51, %c0_52] : memref<3x96x96xbf16, #tpu.memory_space<vmem>>, vector<1x96x96xbf16>
    %59 = vector.shape_cast %58 : vector<1x96x96xbf16> to vector<96x96xbf16>
    %60 = arith.truncf %57 : vector<16x96xf32> to vector<16x96xbf16>
    %cst_53 = arith.constant dense<0.000000e+00> : vector<16x96xf32>
    %61 = tpu.matmul %60, %59, %cst_53 {dimension_numbers = #tpu.dot_dimension_numbers<[1], [0], [0], [1], [0, 0, 1, 1], [], []>} : vector<16x96xbf16>, vector<96x96xbf16>, vector<16x96xf32> -> vector<16x96xf32>
    %62 = arith.addf %56, %61 : vector<16x96xf32>
    %c0_54 = arith.constant 0 : index
    %c0_55 = arith.constant 0 : index
    %63 = vector.load %arg9[%c0_54, %c0_55] : memref<1x96xf32, #tpu.memory_space<vmem>>, vector<1x96xf32>
    %64 = vector.broadcast %63 : vector<1x96xf32> to vector<16x96xf32>
    %65 = arith.addf %62, %64 : vector<16x96xf32>
    %c0_56 = arith.constant 0 : index
    %c0_57 = arith.constant 0 : index
    %c0_58 = arith.constant 0 : index
    %66 = vector.load %arg10[%c0_56, %c0_57, %c0_58] : memref<1x512x64xbf16, #tpu.memory_space<vmem>>, vector<1x512x64xbf16>
    %67 = vector.shape_cast %66 : vector<1x512x64xbf16> to vector<512x64xbf16>
    %68 = arith.truncf %3 : vector<16x512xf32> to vector<16x512xbf16>
    %cst_59 = arith.constant dense<0.000000e+00> : vector<16x64xf32>
    %69 = tpu.matmul %68, %67, %cst_59 {dimension_numbers = #tpu.dot_dimension_numbers<[1], [0], [0], [1], [0, 0, 1, 1], [], []>} : vector<16x512xbf16>, vector<512x64xbf16>, vector<16x64xf32> -> vector<16x64xf32>
    %c0_60 = arith.constant 0 : index
    %c0_61 = arith.constant 0 : index
    %70 = vector.load %arg11[%c0_60, %c0_61] : memref<1x64xf32, #tpu.memory_space<vmem>>, vector<1x64xf32>
    %71 = vector.broadcast %70 : vector<1x64xf32> to vector<16x64xf32>
    %72 = arith.addf %69, %71 : vector<16x64xf32>
    %cst_62 = arith.constant 0.000000e+00 : f32
    %73 = vector.broadcast %cst_62 : f32 to vector<16x64xf32>
    %74 = arith.maximumf %72, %73 : vector<16x64xf32>
    %c8_63 = arith.constant 8 : index
    %c0_64 = arith.constant 0 : index
    %75 = vector.load %arg24[%c8_63, %c0_64] : memref<32x96xf32, #tpu.memory_space<vmem>>, vector<16x64xf32>
    tpu.vector_store %arg24[%c8_63, %c0_64], %74 {strides = array<i32>} : memref<32x96xf32, #tpu.memory_space<vmem>>, vector<16x64xf32>,
    %c7_65 = arith.constant 7 : index
    %c0_66 = arith.constant 0 : index
    %76 = vector.load %arg24[%c7_65, %c0_66] : memref<32x96xf32, #tpu.memory_space<vmem>>, vector<16x64xf32>
    %c0_67 = arith.constant 0 : index
    %c0_68 = arith.constant 0 : index
    %c0_69 = arith.constant 0 : index
    %77 = vector.load %arg12[%c0_67, %c0_68, %c0_69] : memref<3x64x96xbf16, #tpu.memory_space<vmem>>, vector<1x64x96xbf16>
    %78 = vector.shape_cast %77 : vector<1x64x96xbf16> to vector<64x96xbf16>
    %79 = arith.truncf %76 : vector<16x64xf32> to vector<16x64xbf16>
    %cst_70 = arith.constant dense<0.000000e+00> : vector<16x96xf32>
    %80 = tpu.matmul %79, %78, %cst_70 {dimension_numbers = #tpu.dot_dimension_numbers<[1], [0], [0], [1], [0, 0, 1, 1], [], []>} : vector<16x64xbf16>, vector<64x96xbf16>, vector<16x96xf32> -> vector<16x96xf32>
    %c8_71 = arith.constant 8 : index
    %c0_72 = arith.constant 0 : index
    %81 = vector.load %arg24[%c8_71, %c0_72] : memref<32x96xf32, #tpu.memory_space<vmem>>, vector<16x64xf32>
    %c1_73 = arith.constant 1 : index
    %c0_74 = arith.constant 0 : index
    %c0_75 = arith.constant 0 : index
    %82 = vector.load %arg12[%c1_73, %c0_74, %c0_75] : memref<3x64x96xbf16, #tpu.memory_space<vmem>>, vector<1x64x96xbf16>
    %83 = vector.shape_cast %82 : vector<1x64x96xbf16> to vector<64x96xbf16>
    %84 = arith.truncf %81 : vector<16x64xf32> to vector<16x64xbf16>
    %cst_76 = arith.constant dense<0.000000e+00> : vector<16x96xf32>
    %85 = tpu.matmul %84, %83, %cst_76 {dimension_numbers = #tpu.dot_dimension_numbers<[1], [0], [0], [1], [0, 0, 1, 1], [], []>} : vector<16x64xbf16>, vector<64x96xbf16>, vector<16x96xf32> -> vector<16x96xf32>
    %86 = arith.addf %80, %85 : vector<16x96xf32>
    %c9_77 = arith.constant 9 : index
    %c0_78 = arith.constant 0 : index
    %87 = vector.load %arg24[%c9_77, %c0_78] : memref<32x96xf32, #tpu.memory_space<vmem>>, vector<16x64xf32>
    %c2_79 = arith.constant 2 : index
    %c0_80 = arith.constant 0 : index
    %c0_81 = arith.constant 0 : index
    %88 = vector.load %arg12[%c2_79, %c0_80, %c0_81] : memref<3x64x96xbf16, #tpu.memory_space<vmem>>, vector<1x64x96xbf16>
    %89 = vector.shape_cast %88 : vector<1x64x96xbf16> to vector<64x96xbf16>
    %90 = arith.truncf %87 : vector<16x64xf32> to vector<16x64xbf16>
    %cst_82 = arith.constant dense<0.000000e+00> : vector<16x96xf32>
    %91 = tpu.matmul %90, %89, %cst_82 {dimension_numbers = #tpu.dot_dimension_numbers<[1], [0], [0], [1], [0, 0, 1, 1], [], []>} : vector<16x64xbf16>, vector<64x96xbf16>, vector<16x96xf32> -> vector<16x96xf32>
    %92 = arith.addf %86, %91 : vector<16x96xf32>
    %c0_83 = arith.constant 0 : index
    %c0_84 = arith.constant 0 : index
    %93 = vector.load %arg13[%c0_83, %c0_84] : memref<1x96xf32, #tpu.memory_space<vmem>>, vector<1x96xf32>
    %94 = vector.broadcast %93 : vector<1x96xf32> to vector<16x96xf32>
    %95 = arith.addf %92, %94 : vector<16x96xf32>
    %cst_85 = arith.constant 0.000000e+00 : f32
    %96 = vector.broadcast %cst_85 : f32 to vector<16x96xf32>
    %97 = arith.maximumf %95, %96 : vector<16x96xf32>
    %c8_86 = arith.constant 8 : index
    %c0_87 = arith.constant 0 : index
    %98 = vector.load %arg24[%c8_86, %c0_87] : memref<32x96xf32, #tpu.memory_space<vmem>>, vector<16x96xf32>
    tpu.vector_store %arg24[%c8_86, %c0_87], %97 {strides = array<i32>} : memref<32x96xf32, #tpu.memory_space<vmem>>, vector<16x96xf32>,
    %c7_88 = arith.constant 7 : index
    %c0_89 = arith.constant 0 : index
    %99 = vector.load %arg24[%c7_88, %c0_89] : memref<32x96xf32, #tpu.memory_space<vmem>>, vector<16x96xf32>
    %c0_90 = arith.constant 0 : index
    %c0_91 = arith.constant 0 : index
    %c0_92 = arith.constant 0 : index
    %100 = vector.load %arg14[%c0_90, %c0_91, %c0_92] : memref<3x96x96xbf16, #tpu.memory_space<vmem>>, vector<1x96x96xbf16>
    %101 = vector.shape_cast %100 : vector<1x96x96xbf16> to vector<96x96xbf16>
    %102 = arith.truncf %99 : vector<16x96xf32> to vector<16x96xbf16>
    %cst_93 = arith.constant dense<0.000000e+00> : vector<16x96xf32>
    %103 = tpu.matmul %102, %101, %cst_93 {dimension_numbers = #tpu.dot_dimension_numbers<[1], [0], [0], [1], [0, 0, 1, 1], [], []>} : vector<16x96xbf16>, vector<96x96xbf16>, vector<16x96xf32> -> vector<16x96xf32>
    %c8_94 = arith.constant 8 : index
    %c0_95 = arith.constant 0 : index
    %104 = vector.load %arg24[%c8_94, %c0_95] : memref<32x96xf32, #tpu.memory_space<vmem>>, vector<16x96xf32>
    %c1_96 = arith.constant 1 : index
    %c0_97 = arith.constant 0 : index
    %c0_98 = arith.constant 0 : index
    %105 = vector.load %arg14[%c1_96, %c0_97, %c0_98] : memref<3x96x96xbf16, #tpu.memory_space<vmem>>, vector<1x96x96xbf16>
    %106 = vector.shape_cast %105 : vector<1x96x96xbf16> to vector<96x96xbf16>
    %107 = arith.truncf %104 : vector<16x96xf32> to vector<16x96xbf16>
    %cst_99 = arith.constant dense<0.000000e+00> : vector<16x96xf32>
    %108 = tpu.matmul %107, %106, %cst_99 {dimension_numbers = #tpu.dot_dimension_numbers<[1], [0], [0], [1], [0, 0, 1, 1], [], []>} : vector<16x96xbf16>, vector<96x96xbf16>, vector<16x96xf32> -> vector<16x96xf32>
    %109 = arith.addf %103, %108 : vector<16x96xf32>
    %c9_100 = arith.constant 9 : index
    %c0_101 = arith.constant 0 : index
    %110 = vector.load %arg24[%c9_100, %c0_101] : memref<32x96xf32, #tpu.memory_space<vmem>>, vector<16x96xf32>
    %c2_102 = arith.constant 2 : index
    %c0_103 = arith.constant 0 : index
    %c0_104 = arith.constant 0 : index
    %111 = vector.load %arg14[%c2_102, %c0_103, %c0_104] : memref<3x96x96xbf16, #tpu.memory_space<vmem>>, vector<1x96x96xbf16>
    %112 = vector.shape_cast %111 : vector<1x96x96xbf16> to vector<96x96xbf16>
    %113 = arith.truncf %110 : vector<16x96xf32> to vector<16x96xbf16>
    %cst_105 = arith.constant dense<0.000000e+00> : vector<16x96xf32>
    %114 = tpu.matmul %113, %112, %cst_105 {dimension_numbers = #tpu.dot_dimension_numbers<[1], [0], [0], [1], [0, 0, 1, 1], [], []>} : vector<16x96xbf16>, vector<96x96xbf16>, vector<16x96xf32> -> vector<16x96xf32>
    %115 = arith.addf %109, %114 : vector<16x96xf32>
    %c0_106 = arith.constant 0 : index
    %c0_107 = arith.constant 0 : index
    %116 = vector.load %arg15[%c0_106, %c0_107] : memref<1x96xf32, #tpu.memory_space<vmem>>, vector<1x96xf32>
    %117 = vector.broadcast %116 : vector<1x96xf32> to vector<16x96xf32>
    %118 = arith.addf %115, %117 : vector<16x96xf32>
    %cst_108 = arith.constant 0.000000e+00 : f32
    %119 = vector.broadcast %cst_108 : f32 to vector<16x96xf32>
    %120 = arith.maximumf %118, %119 : vector<16x96xf32>
    %c8_109 = arith.constant 8 : index
    %c0_110 = arith.constant 0 : index
    %121 = vector.load %arg24[%c8_109, %c0_110] : memref<32x96xf32, #tpu.memory_space<vmem>>, vector<16x96xf32>
    tpu.vector_store %arg24[%c8_109, %c0_110], %120 {strides = array<i32>} : memref<32x96xf32, #tpu.memory_space<vmem>>, vector<16x96xf32>,
    %c3 = arith.constant 3 : index
    %c0_111 = arith.constant 0 : index
    %122 = vector.load %arg24[%c3, %c0_111] : memref<32x96xf32, #tpu.memory_space<vmem>>, vector<16x96xf32>
    %c0_112 = arith.constant 0 : index
    %c0_113 = arith.constant 0 : index
    %c0_114 = arith.constant 0 : index
    %123 = vector.load %arg16[%c0_112, %c0_113, %c0_114] : memref<3x96x96xbf16, #tpu.memory_space<vmem>>, vector<1x96x96xbf16>
    %124 = vector.shape_cast %123 : vector<1x96x96xbf16> to vector<96x96xbf16>
    %125 = arith.truncf %122 : vector<16x96xf32> to vector<16x96xbf16>
    %cst_115 = arith.constant dense<0.000000e+00> : vector<16x96xf32>
    %126 = tpu.matmul %125, %124, %cst_115 {dimension_numbers = #tpu.dot_dimension_numbers<[1], [0], [0], [1], [0, 0, 1, 1], [], []>} : vector<16x96xbf16>, vector<96x96xbf16>, vector<16x96xf32> -> vector<16x96xf32>
    %c8_116 = arith.constant 8 : index
    %c0_117 = arith.constant 0 : index
    %127 = vector.load %arg24[%c8_116, %c0_117] : memref<32x96xf32, #tpu.memory_space<vmem>>, vector<16x96xf32>
    %c1_118 = arith.constant 1 : index
    %c0_119 = arith.constant 0 : index
    %c0_120 = arith.constant 0 : index
    %128 = vector.load %arg16[%c1_118, %c0_119, %c0_120] : memref<3x96x96xbf16, #tpu.memory_space<vmem>>, vector<1x96x96xbf16>
    %129 = vector.shape_cast %128 : vector<1x96x96xbf16> to vector<96x96xbf16>
    %130 = arith.truncf %127 : vector<16x96xf32> to vector<16x96xbf16>
    %cst_121 = arith.constant dense<0.000000e+00> : vector<16x96xf32>
    %131 = tpu.matmul %130, %129, %cst_121 {dimension_numbers = #tpu.dot_dimension_numbers<[1], [0], [0], [1], [0, 0, 1, 1], [], []>} : vector<16x96xbf16>, vector<96x96xbf16>, vector<16x96xf32> -> vector<16x96xf32>
    %132 = arith.addf %126, %131 : vector<16x96xf32>
    %c13 = arith.constant 13 : index
    %c0_122 = arith.constant 0 : index
    %133 = vector.load %arg24[%c13, %c0_122] : memref<32x96xf32, #tpu.memory_space<vmem>>, vector<16x96xf32>
    %c2_123 = arith.constant 2 : index
    %c0_124 = arith.constant 0 : index
    %c0_125 = arith.constant 0 : index
    %134 = vector.load %arg16[%c2_123, %c0_124, %c0_125] : memref<3x96x96xbf16, #tpu.memory_space<vmem>>, vector<1x96x96xbf16>
    %135 = vector.shape_cast %134 : vector<1x96x96xbf16> to vector<96x96xbf16>
    %136 = arith.truncf %133 : vector<16x96xf32> to vector<16x96xbf16>
    %cst_126 = arith.constant dense<0.000000e+00> : vector<16x96xf32>
    %137 = tpu.matmul %136, %135, %cst_126 {dimension_numbers = #tpu.dot_dimension_numbers<[1], [0], [0], [1], [0, 0, 1, 1], [], []>} : vector<16x96xbf16>, vector<96x96xbf16>, vector<16x96xf32> -> vector<16x96xf32>
    %138 = arith.addf %132, %137 : vector<16x96xf32>
    %c0_127 = arith.constant 0 : index
    %c0_128 = arith.constant 0 : index
    %139 = vector.load %arg17[%c0_127, %c0_128] : memref<1x96xf32, #tpu.memory_space<vmem>>, vector<1x96xf32>
    %140 = vector.broadcast %139 : vector<1x96xf32> to vector<16x96xf32>
    %141 = arith.addf %138, %140 : vector<16x96xf32>
    %c0_129 = arith.constant 0 : index
    %c0_130 = arith.constant 0 : index
    %142 = vector.load %arg18[%c0_129, %c0_130] : memref<96x1024xbf16, #tpu.memory_space<vmem>>, vector<96x1024xbf16>
    %143 = arith.truncf %65 : vector<16x96xf32> to vector<16x96xbf16>
    %cst_131 = arith.constant dense<0.000000e+00> : vector<16x1024xf32>
    %144 = tpu.matmul %143, %142, %cst_131 {dimension_numbers = #tpu.dot_dimension_numbers<[1], [0], [0], [1], [0, 0, 1, 1], [], []>} : vector<16x96xbf16>, vector<96x1024xbf16>, vector<16x1024xf32> -> vector<16x1024xf32>
    %c0_132 = arith.constant 0 : index
    %c0_133 = arith.constant 0 : index
    %145 = vector.load %arg19[%c0_132, %c0_133] : memref<96x1024xbf16, #tpu.memory_space<vmem>>, vector<96x1024xbf16>
    %146 = arith.truncf %141 : vector<16x96xf32> to vector<16x96xbf16>
    %cst_134 = arith.constant dense<0.000000e+00> : vector<16x1024xf32>
    %147 = tpu.matmul %146, %145, %cst_134 {dimension_numbers = #tpu.dot_dimension_numbers<[1], [0], [0], [1], [0, 0, 1, 1], [], []>} : vector<16x96xbf16>, vector<96x1024xbf16>, vector<16x1024xf32> -> vector<16x1024xf32>
    %148 = arith.addf %144, %147 : vector<16x1024xf32>
    %c0_135 = arith.constant 0 : index
    %c0_136 = arith.constant 0 : index
    %149 = vector.load %arg20[%c0_135, %c0_136] : memref<1x1024xf32, #tpu.memory_space<vmem>>, vector<1x1024xf32>
    %150 = vector.broadcast %149 : vector<1x1024xf32> to vector<16x1024xf32>
    %151 = arith.addf %148, %150 : vector<16x1024xf32>
    %c0_137 = arith.constant 0 : index
    %c0_138 = arith.constant 0 : index
    %152 = vector.load %arg21[%c0_137, %c0_138] : memref<512x1024xbf16, #tpu.memory_space<vmem>>, vector<512x1024xbf16>
    %153 = arith.truncf %3 : vector<16x512xf32> to vector<16x512xbf16>
    %cst_139 = arith.constant dense<0.000000e+00> : vector<16x1024xf32>
    %154 = tpu.matmul %153, %152, %cst_139 {dimension_numbers = #tpu.dot_dimension_numbers<[1], [0], [0], [1], [0, 0, 1, 1], [], []>} : vector<16x512xbf16>, vector<512x1024xbf16>, vector<16x1024xf32> -> vector<16x1024xf32>
    %c0_140 = arith.constant 0 : index
    %c0_141 = arith.constant 0 : index
    %155 = vector.load %arg22[%c0_140, %c0_141] : memref<1x1024xf32, #tpu.memory_space<vmem>>, vector<1x1024xf32>
    %156 = vector.broadcast %155 : vector<1x1024xf32> to vector<16x1024xf32>
    %157 = arith.addf %154, %156 : vector<16x1024xf32>
    %cst_142 = arith.constant 1.000000e-01 : f32
    %158 = vector.broadcast %cst_142 : f32 to vector<16x1024xf32>
    %159 = arith.mulf %151, %158 : vector<16x1024xf32>
    %160 = arith.addf %159, %157 : vector<16x1024xf32>
    %cst_143 = arith.constant 0.000000e+00 : f32
    %161 = vector.broadcast %cst_143 : f32 to vector<16x1024xf32>
    %162 = arith.maximumf %160, %161 : vector<16x1024xf32>
    %c0_144 = arith.constant 0 : index
    %c0_145 = arith.constant 0 : index
    %c0_146 = arith.constant 0 : index
    %163 = vector.load %arg23[%c0_144, %c0_145, %c0_146] : memref<1x16x1024xf32, #tpu.memory_space<vmem>>, vector<1x16x1024xf32>
    %164 = vector.shape_cast %163 : vector<1x16x1024xf32> to vector<16x1024xf32>
    %165 = vector.shape_cast %162 : vector<16x1024xf32> to vector<1x16x1024xf32>
    tpu.vector_store %arg23[%c0_144, %c0_145, %c0_146], %165 {strides = array<i32>} : memref<1x16x1024xf32, #tpu.memory_space<vmem>>, vector<1x16x1024xf32>,
    return
  }
  func.func @transform_0(%arg0: i32) -> (i32, i32, i32) {
    %c0_i32 = arith.constant 0 : i32
    %c0_i32_0 = arith.constant 0 : i32
    %c0_i32_1 = arith.constant 0 : i32
    return %arg0, %c0_i32, %c0_i32_0 : i32, i32, i32
  }
  func.func @transform_1(%arg0: i32) -> (i32, i32, i32) {
    %c0_i32 = arith.constant 0 : i32
    %c0_i32_0 = arith.constant 0 : i32
    %c0_i32_1 = arith.constant 0 : i32
    %c0_i32_2 = arith.constant 0 : i32
    return %c0_i32, %c0_i32_0, %c0_i32_1 : i32, i32, i32
  }
  func.func @transform_2(%arg0: i32) -> (i32, i32) {
    %c0_i32 = arith.constant 0 : i32
    %c0_i32_0 = arith.constant 0 : i32
    %c0_i32_1 = arith.constant 0 : i32
    return %c0_i32, %c0_i32_0 : i32, i32
  }
  func.func @transform_3(%arg0: i32) -> (i32, i32, i32) {
    %c0_i32 = arith.constant 0 : i32
    %c0_i32_0 = arith.constant 0 : i32
    %c0_i32_1 = arith.constant 0 : i32
    %c0_i32_2 = arith.constant 0 : i32
    return %c0_i32, %c0_i32_0, %c0_i32_1 : i32, i32, i32
  }
  func.func @transform_4(%arg0: i32) -> (i32, i32) {
    %c0_i32 = arith.constant 0 : i32
    %c0_i32_0 = arith.constant 0 : i32
    %c0_i32_1 = arith.constant 0 : i32
    return %c0_i32, %c0_i32_0 : i32, i32
  }
  func.func @transform_5(%arg0: i32) -> (i32, i32, i32) {
    %c0_i32 = arith.constant 0 : i32
    %c0_i32_0 = arith.constant 0 : i32
    %c0_i32_1 = arith.constant 0 : i32
    %c0_i32_2 = arith.constant 0 : i32
    return %c0_i32, %c0_i32_0, %c0_i32_1 : i32, i32, i32
  }
  func.func @transform_6(%arg0: i32) -> (i32, i32) {
    %c0_i32 = arith.constant 0 : i32
    %c0_i32_0 = arith.constant 0 : i32
    %c0_i32_1 = arith.constant 0 : i32
    return %c0_i32, %c0_i32_0 : i32, i32
  }
  func.func @transform_7(%arg0: i32) -> (i32, i32, i32) {
    %c0_i32 = arith.constant 0 : i32
    %c0_i32_0 = arith.constant 0 : i32
    %c0_i32_1 = arith.constant 0 : i32
    %c0_i32_2 = arith.constant 0 : i32
    return %c0_i32, %c0_i32_0, %c0_i32_1 : i32, i32, i32
  }
  func.func @transform_8(%arg0: i32) -> (i32, i32) {
    %c0_i32 = arith.constant 0 : i32
    %c0_i32_0 = arith.constant 0 : i32
    %c0_i32_1 = arith.constant 0 : i32
    return %c0_i32, %c0_i32_0 : i32, i32
  }
  func.func @transform_9(%arg0: i32) -> (i32, i32, i32) {
    %c0_i32 = arith.constant 0 : i32
    %c0_i32_0 = arith.constant 0 : i32
    %c0_i32_1 = arith.constant 0 : i32
    %c0_i32_2 = arith.constant 0 : i32
    return %c0_i32, %c0_i32_0, %c0_i32_1 : i32, i32, i32
  }
  func.func @transform_10(%arg0: i32) -> (i32, i32) {
    %c0_i32 = arith.constant 0 : i32
    %c0_i32_0 = arith.constant 0 : i32
    %c0_i32_1 = arith.constant 0 : i32
    return %c0_i32, %c0_i32_0 : i32, i32
  }
  func.func @transform_11(%arg0: i32) -> (i32, i32, i32) {
    %c0_i32 = arith.constant 0 : i32
    %c0_i32_0 = arith.constant 0 : i32
    %c0_i32_1 = arith.constant 0 : i32
    %c0_i32_2 = arith.constant 0 : i32
    return %c0_i32, %c0_i32_0, %c0_i32_1 : i32, i32, i32
  }
  func.func @transform_12(%arg0: i32) -> (i32, i32) {
    %c0_i32 = arith.constant 0 : i32
    %c0_i32_0 = arith.constant 0 : i32
    %c0_i32_1 = arith.constant 0 : i32
    return %c0_i32, %c0_i32_0 : i32, i32
  }
  func.func @transform_13(%arg0: i32) -> (i32, i32, i32) {
    %c0_i32 = arith.constant 0 : i32
    %c0_i32_0 = arith.constant 0 : i32
    %c0_i32_1 = arith.constant 0 : i32
    %c0_i32_2 = arith.constant 0 : i32
    return %c0_i32, %c0_i32_0, %c0_i32_1 : i32, i32, i32
  }
  func.func @transform_14(%arg0: i32) -> (i32, i32) {
    %c0_i32 = arith.constant 0 : i32
    %c0_i32_0 = arith.constant 0 : i32
    %c0_i32_1 = arith.constant 0 : i32
    return %c0_i32, %c0_i32_0 : i32, i32
  }
  func.func @transform_15(%arg0: i32) -> (i32, i32, i32) {
    %c0_i32 = arith.constant 0 : i32
    %c0_i32_0 = arith.constant 0 : i32
    %c0_i32_1 = arith.constant 0 : i32
    %c0_i32_2 = arith.constant 0 : i32
    return %c0_i32, %c0_i32_0, %c0_i32_1 : i32, i32, i32
  }
  func.func @transform_16(%arg0: i32) -> (i32, i32) {
    %c0_i32 = arith.constant 0 : i32
    %c0_i32_0 = arith.constant 0 : i32
    %c0_i32_1 = arith.constant 0 : i32
    return %c0_i32, %c0_i32_0 : i32, i32
  }
  func.func @transform_17(%arg0: i32) -> (i32, i32) {
    %c0_i32 = arith.constant 0 : i32
    %c0_i32_0 = arith.constant 0 : i32
    %c0_i32_1 = arith.constant 0 : i32
    return %c0_i32, %c0_i32_0 : i32, i32
  }
  func.func @transform_18(%arg0: i32) -> (i32, i32) {
    %c0_i32 = arith.constant 0 : i32
    %c0_i32_0 = arith.constant 0 : i32
    %c0_i32_1 = arith.constant 0 : i32
    return %c0_i32, %c0_i32_0 : i32, i32
  }
  func.func @transform_19(%arg0: i32) -> (i32, i32) {
    %c0_i32 = arith.constant 0 : i32
    %c0_i32_0 = arith.constant 0 : i32
    %c0_i32_1 = arith.constant 0 : i32
    return %c0_i32, %c0_i32_0 : i32, i32
  }
  func.func @transform_20(%arg0: i32) -> (i32, i32) {
    %c0_i32 = arith.constant 0 : i32
    %c0_i32_0 = arith.constant 0 : i32
    %c0_i32_1 = arith.constant 0 : i32
    return %c0_i32, %c0_i32_0 : i32, i32
  }
  func.func @transform_21(%arg0: i32) -> (i32, i32) {
    %c0_i32 = arith.constant 0 : i32
    %c0_i32_0 = arith.constant 0 : i32
    %c0_i32_1 = arith.constant 0 : i32
    return %c0_i32, %c0_i32_0 : i32, i32
  }
  func.func @transform_22(%arg0: i32) -> (i32, i32, i32) {
    %c0_i32 = arith.constant 0 : i32
    %c0_i32_0 = arith.constant 0 : i32
    %c0_i32_1 = arith.constant 0 : i32
    return %arg0, %c0_i32, %c0_i32_0 : i32, i32, i32
  }
}

</mosaic_0001>

<bundles_post_ra>
// kernel: tpu_custom_call.1
= control target key start
LH: loop header
LB: loop body
LE: loop exit
PB: predicated region body
PF: predicated region fallthrough
CT: control target
= control target key end

     0   :  { %s9263_s0 = inlined_call_operand.hbm [shape: f32[2,16,512], index: 0, kind: input, shape index: {}]   ;;  %s9264_s1 = inlined_call_operand.vmem [shape: bf16[1,512,64], index: 1, kind: input, shape index: {}]   ;;  %s9265_s2 = inlined_call_operand.hbm [shape: f32[1,64], index: 2, kind: input, shape index: {}]   ;;  %s9266_s3 = inlined_call_operand.hbm [shape: bf16[1,64,96], index: 3, kind: input, shape index: {}]   ;;  %s9267_s4 = inlined_call_operand.vmem [shape: f32[1,96], index: 4, kind: input, shape index: {}]   ;;  %s9268_s5 = inlined_call_operand.hbm [shape: bf16[3,96,96], index: 5, kind: input, shape index: {}]   ;;  %s9269_s6 = inlined_call_operand.vmem [shape: f32[1,96], index: 6, kind: input, shape index: {}]   ;;  %s9270_s7 = inlined_call_operand.hbm [shape: bf16[3,96,96], index: 7, kind: input, shape index: {}]   ;;  %s9271_s8 = inlined_call_operand.vmem [shape: f32[1,96], index: 8, kind: input, shape index: {}]   ;;  %s9272_s9 = inlined_call_operand.vmem [shape: bf16[1,512,64], index: 9, kind: input, shape index: {}]   ;;  %s9273_s10 = inlined_call_operand.vmem [shape: f32[1,64], index: 10, kind: input, shape index: {}]   ;;  %s9274_s11 = inlined_call_operand.hbm [shape: bf16[3,64,96], index: 11, kind: input, shape index: {}]   ;;  %s9275_s12 = inlined_call_operand.vmem [shape: f32[1,96], index: 12, kind: input, shape index: {}]   ;;  %s9276_s13 = inlined_call_operand.hbm [shape: bf16[3,96,96], index: 13, kind: input, shape index: {}]   ;;  %s9277_s14 = inlined_call_operand.vmem [shape: f32[1,96], index: 14, kind: input, shape index: {}]   ;;  %s9278_s15 = inlined_call_operand.hbm [shape: bf16[3,96,96], index: 15, kind: input, shape index: {}]   ;;  %s9279_s16 = inlined_call_operand.vmem [shape: f32[1,96], index: 16, kind: input, shape index: {}]   ;;  %s9280_s17 = inlined_call_operand.vmem [shape: bf16[96,1024], index: 17, kind: input, shape index: {}]   ;;  %s9281_s18 = inlined_call_operand.vmem [shape: bf16[96,1024], index: 18, kind: input, shape index: {}]   ;;  %s9282_s19 = inlined_call_operand.vmem [shape: f32[1,1024], index: 19, kind: input, shape index: {}]   ;;  %s9283_s20 = inlined_call_operand.hbm [shape: bf16[512,1024], index: 20, kind: input, shape index: {}]   ;;  %s9284_s21 = inlined_call_operand.vmem [shape: f32[1,1024], index: 21, kind: input, shape index: {}]   ;;  %s9285_s22 = inlined_call_operand.hbm [shape: f32[2,16,1024], index: 22, kind: output, shape index: {}]  }
   0x1   :  { %9305 = sst [smem:[#allocation25_spill]] %s9263_s0 }
   0x2   :  { %9306 = sst [smem:[#allocation26_spill]] %s9264_s1 }
   0x3   :  { %9307 = sst [smem:[#allocation27_spill]] %s9265_s2 }
   0x4   :  { %9308 = sst [smem:[#allocation28_spill]] %s9266_s3 }
   0x5   :  { %9309 = sst [smem:[#allocation29_spill]] %s9267_s4 }
   0x6   :  { %9310 = sst [smem:[#allocation30_spill]] %s9268_s5 }
   0x7   :  { %9311 = sst [smem:[#allocation31_spill]] %s9269_s6 }
   0x8   :  { %9312 = sst [smem:[#allocation32_spill]] %s9274_s11 }
   0x9   :  { %9313 = sst [smem:[#allocation33_spill]] %s9275_s12 }
   0xa   :  { %9314 = sst [smem:[#allocation34_spill]] %s9277_s14 }
   0xb   :  { %9315 = sst [smem:[#allocation35_spill]] %s9279_s16 }
   0xc   :  { %9316 = sst [smem:[#allocation36_spill]] %s9280_s17 }
   0xd   :  { %9317 = sst [smem:[#allocation37_spill]] %s9281_s18 }
   0xe   :  { %9318 = sst [smem:[#allocation38_spill]] %s9282_s19 }
   0xf   :  { %9319 = sst [smem:[#allocation39_spill]] %s9284_s21 }
  0x10   :  { %9320 = sst [smem:[#allocation40_spill]] %s9285_s22 }
  0x11   :  { %27 = vsyncpa [#allocation4], 0 }
  0x12   :  { %29 = vsyncpa [#allocation4 + $0x1], 0 }
  0x13   :  { %30 = vsyncpa [#allocation7], 0 }
  0x14   :  { %31 = vsyncpa [#allocation10], 0 }
  0x15   :  { %32 = vsyncpa [#allocation13], 0 }
  0x16   :  { %33 = vsyncpa [#allocation16], 0 }
  0x17   :  { %34 = vsyncpa [#allocation5], 0 }
  0x18   :  { %36 = vsyncpa [#allocation5 + $0x1], 0  ;;  %s8017_s3 = smov 0   ;;  %s8019_s28 = smov 0  }
  0x19   :  { %s8021_s29 = smov 0   ;;  %s8023_s30 = smov 0  }
  0x1a LB: > { %s7883_s4 = smov [#allocation6]   ;;  %s8038_s23 = sadd.s32 4294967295, %s7881_s30   ;;  %s7881_s30 = sphi %s8023_s30, %s9364_s30   ;;  %s7877_s29 = sphi %s8021_s29, %s9363_s29   ;;  %s7873_s28 = sphi %s8019_s28, %s9362_s28   ;;  %s7869_s3 = sphi %s8017_s3, %s9361_s3  }
  0x1b   : > { %s556_s0 = sshll.u32 %s7883_s4, 4  ;;  %p6209_p0 = scmp.ge.s32.totalorder %s7881_s30, 1  ;;  %s8043_s0 = int_to_ptr.vmem [resolvable:$true] %s556_s0 }
  0x1c   : > { %p9297_p1 = scmp.eq.s32.totalorder %s8038_s23, 0  ;;  %p540_p2 = scmp.lt.s32.totalorder %s7881_s30, 3 }
  0x1d   : > { %s7884_s5 = smov [#allocation9]   ;;  %s7885_s25 = smov [#allocation12]  }
  0x1e   : > { %p8045_p3 = pnand %p6209_p0, %p540_p2  ;;  %s582_s24 = sshll.u32 %s7884_s5, 4  ;;  %s8058_s24 = int_to_ptr.vmem [resolvable:$true] %s582_s24 }
  0x1f   : > { %s620_s26 = sshll.u32 %s7885_s25, 4  ;;  %s9323_s4 = sld [smem:[#allocation27_spill]]  ;;  %s8060_s26 = int_to_ptr.vmem [resolvable:$true] %s620_s26 }
  0x20   : > { %s9321_s1 = scalar_select %p8045_p3, 1, 0 }
  0x21   : > { %p7292_p5 = pneg %p8045_p3 }
  0x23   : > { %p8054_p6 = pnand %p7292_p5, %p9297_p1 }
  0x25   : > { %s7545_s22 = scalar_lea.hbm %s9323_s4, 16  ;;  %p8070_p8 = pneg %p8054_p6 }
  0x26   : > { %p7546_p7 = scmp.ne.s32.totalorder %s9323_s4, %s7545_s22  ;;  %p7552_p11 = scmp.lt.u32.totalorder %s7545_s22, %s9323_s4 }
  0x28   : > { %p7548_p9 = pnand %p8070_p8, %p7546_p7 }
  0x2a   : > { %p7549_p10 = pneg %p7548_p9 }
  0x2c   : > { %p7554_p12 = pnand %p7552_p11, %p7549_p10 }
  0x2e   : > { %7557 = shalt.err (!%p7554_p12)
}
  0x2f   : > { %s7558_s19 = scalar_lea.vmem %s8043_s0, 16  ;;  %s7565_s21 = scalar_lea.vmem %s8043_s0, 32 }
  0x30   : > { %p7559_p13 = scmp.ne.s32.totalorder %s8043_s0, %s7558_s19  ;;  %p7566_p5 = scmp.lt.s32.totalorder %s8043_s0, %s8043_s0 }
  0x31   : > { %p7567_p7 = scmp.lt.s32.totalorder %s7565_s21, %s7558_s19 }
  0x32   : > { %p7561_p0 = pnand %p7559_p13, %p8070_p8 }
  0x33   : > { %p7568_p9 = por %p7567_p7, %p7566_p5 }
  0x34   : > { %p7562_p2 = pneg %p7561_p0 }
  0x36   : > { %p7569_p4 = pnand %p7568_p9, %p7562_p2 }
  0x38   : > { %7572 = shalt.err (!%p7569_p4)
}
  0x39   : > { %7295 = dma.hbm_to_vmem [thread:$0]  (!%p8054_p6), %s9323_s4, 16, %s8043_s0, [#allocation7]  }
  0x3a   : > { %s9325_s25 = sld [smem:[#allocation30_spill]] }
  0x40   : > { %s7573_s16 = scalar_lea.hbm %s9325_s25, 2304 }
  0x41   : > { %p7574_p10 = scmp.ne.s32.totalorder %s9325_s25, %s7573_s16  ;;  %p7580_p4 = scmp.lt.u32.totalorder %s7573_s16, %s9325_s25 }
  0x43   : > { %p7576_p11 = pnand %p7574_p10, %p8070_p8 }
  0x45   : > { %p7577_p12 = pneg %p7576_p11 }
  0x47   : > { %p7582_p13 = pnand %p7580_p4, %p7577_p12 }
  0x49   : > { %7585 = shalt.err (!%p7582_p13)
}
  0x4a   : > { %s7586_s0 = scalar_lea.vmem %s8058_s24, 2304  ;;  %p7594_p7 = scmp.lt.s32.totalorder %s8058_s24, %s8058_s24 }
  0x4b   : > { %p7587_p0 = scmp.ne.s32.totalorder %s8058_s24, %s7586_s0  ;;  %p7595_p9 = scmp.lt.s32.totalorder %s7586_s0, %s7586_s0 }
  0x4d   : > { %p7589_p2 = pnand %p7587_p0, %p8070_p8  ;;  %p7596_p10 = por %p7595_p9, %p7594_p7 }
  0x4f   : > { %p7590_p5 = pneg %p7589_p2 }
  0x51   : > { %p7597_p11 = pnand %p7596_p10, %p7590_p5 }
  0x53   : > { %7600 = shalt.err (!%p7597_p11)
}
  0x54   : > { %s7886_s14 = smov 64   ;;  %s7887_s16 = smov 4  }
  0x55   : > { %7301 = dma.hbm_to_vmem [thread:$0]  (!%p8054_p6), %s9325_s25, 2304, %s8058_s24, [#allocation10], %s7886_s14, %s7886_s14, %s7887_s16  }
  0x56   : > { %s9326_s11 = sld [smem:[#allocation32_spill]] }
  0x5c   : > { %s7601_s27 = scalar_lea.hbm %s9326_s11, 1536 }
  0x5d   : > { %p7602_p12 = scmp.ne.s32.totalorder %s9326_s11, %s7601_s27  ;;  %p7608_p0 = scmp.lt.u32.totalorder %s7601_s27, %s9326_s11 }
  0x5f   : > { %p7604_p4 = pnand %p7602_p12, %p8070_p8 }
  0x61   : > { %p7605_p13 = pneg %p7604_p4 }
  0x63   : > { %p7610_p2 = pnand %p7608_p0, %p7605_p13 }
  0x65   : > { %7613 = shalt.err (!%p7610_p2)
}
  0x66   : > { %s7614_s24 = scalar_lea.vmem %s8060_s26, 1536  ;;  %p7622_p10 = scmp.lt.s32.totalorder %s8060_s26, %s8060_s26 }
  0x67   : > { %p7615_p5 = scmp.ne.s32.totalorder %s8060_s26, %s7614_s24  ;;  %p7623_p11 = scmp.lt.s32.totalorder %s7614_s24, %s7614_s24 }
  0x69   : > { %p7617_p7 = pnand %p7615_p5, %p8070_p8  ;;  %p7624_p12 = por %p7623_p11, %p7622_p10 }
  0x6b   : > { %p7618_p9 = pneg %p7617_p7 }
  0x6d   : > { %p7625_p4 = pnand %p7624_p12, %p7618_p9 }
  0x6f   : > { %7628 = shalt.err (!%p7625_p4)
}
  0x70   : > { %7307 = dma.hbm_to_vmem [thread:$0]  (!%p8054_p6), %s9326_s11, 1536, %s8060_s26, [#allocation13], %s7886_s14, %s7886_s14, %s7887_s16  }
  0x71   : > { %s7888_s17 = smov [#allocation15]   ;;  %s7889_s2 = smov [#allocation8]  }
  0x72   : > { %s652_s22 = sshll.u32 %s7888_s17, 4  ;;  %s566_s27 = sshll.u32 %s7889_s2, 4  ;;  %s653_s22 = int_to_ptr.vmem [resolvable:$true] %s652_s22  ;;  %s567_s27 = int_to_ptr.vmem [resolvable:$true] %s566_s27 }
  0x73   : > { %s7629_s0 = scalar_lea.hbm %s9278_s15, 2304 }
  0x74   : > { %p7630_p13 = scmp.ne.s32.totalorder %s9278_s15, %s7629_s0  ;;  %p7636_p5 = scmp.lt.u32.totalorder %s7629_s0, %s9278_s15 }
  0x76   : > { %p7632_p0 = pnand %p7630_p13, %p8070_p8 }
  0x78   : > { %p7633_p2 = pneg %p7632_p0 }
  0x7a   : > { %p7638_p7 = pnand %p7636_p5, %p7633_p2 }
  0x7c   : > { %7641 = shalt.err (!%p7638_p7)
}
  0x7d   : > { %s7642_s26 = scalar_lea.vmem %s653_s22, 2304  ;;  %p7650_p12 = scmp.lt.s32.totalorder %s653_s22, %s653_s22 }
  0x7e   : > { %p7643_p9 = scmp.ne.s32.totalorder %s653_s22, %s7642_s26  ;;  %p7651_p4 = scmp.lt.s32.totalorder %s7642_s26, %s7642_s26 }
  0x80   : > { %p7645_p10 = pnand %p7643_p9, %p8070_p8  ;;  %p7652_p1 = por %p7651_p4, %p7650_p12 }
  0x82   : > { %p7646_p11 = pneg %p7645_p10 }
  0x84   : > { %p7653_p3 = pnand %p7652_p1, %p7646_p11 }
  0x86   : > { %7656 = shalt.err (!%p7653_p3)
}
  0x87   : > { %7313 = dma.hbm_to_vmem [thread:$0]  (!%p8054_p6), %s9278_s15, 2304, %s653_s22, [#allocation16], %s7886_s14, %s7886_s14, %s7887_s16  }
  0x88   : > { %s9327_s2 = sld [smem:[#allocation28_spill]] }
  0x8e   : > { %s7657_s19 = scalar_lea.hbm %s9327_s2, 512 }
  0x8f   : > { %p7658_p1 = scmp.ne.s32.totalorder %s9327_s2, %s7657_s19  ;;  %p7664_p0 = scmp.lt.u32.totalorder %s7657_s19, %s9327_s2 }
  0x91   : > { %p7660_p3 = pnand %p7658_p1, %p8070_p8 }
  0x93   : > { %p7661_p13 = pneg %p7660_p3 }
  0x95   : > { %p7666_p2 = pnand %p7664_p0, %p7661_p13 }
  0x97   : > { %7669 = shalt.err (!%p7666_p2)
}
  0x98   : > { %s7670_s26 = scalar_lea.vmem %s567_s27, 512  ;;  %p7678_p10 = scmp.lt.s32.totalorder %s567_s27, %s567_s27 }
  0x99   : > { %p7671_p5 = scmp.ne.s32.totalorder %s567_s27, %s7670_s26  ;;  %p7679_p11 = scmp.lt.s32.totalorder %s7670_s26, %s7670_s26 }
  0x9b   : > { %p7673_p7 = pnand %p7671_p5, %p8070_p8  ;;  %p7680_p12 = por %p7679_p11, %p7678_p10 }
  0x9d   : > { %p7674_p9 = pneg %p7673_p7 }
  0x9f   : > { %p7681_p4 = pnand %p7680_p12, %p7674_p9 }
  0xa1   : > { %7684 = shalt.err (!%p7681_p4)
}
  0xa2   : > { %7298 = dma.hbm_to_vmem [thread:$0]  (!%p8054_p6), %s9327_s2, 512, %s567_s27, [#allocation7], %s7886_s14, %s7886_s14, %s7887_s16  }
  0xa3   : > { %s7890_s25 = smov [#allocation11]   ;;  %s7891_s17 = smov [#allocation14]  }
  0xa4   : > { %s598_s18 = sshll.u32 %s7890_s25, 4  ;;  %s636_s19 = sshll.u32 %s7891_s17, 4  ;;  %s599_s18 = int_to_ptr.vmem [resolvable:$true] %s598_s18  ;;  %s637_s19 = int_to_ptr.vmem [resolvable:$true] %s636_s19 }
  0xa5   : > { %s7685_s24 = scalar_lea.hbm %s9270_s7, 2304 }
  0xa6   : > { %p7686_p1 = scmp.ne.s32.totalorder %s9270_s7, %s7685_s24  ;;  %p7692_p0 = scmp.lt.u32.totalorder %s7685_s24, %s9270_s7 }
  0xa8   : > { %p7688_p3 = pnand %p7686_p1, %p8070_p8 }
  0xaa   : > { %p7689_p13 = pneg %p7688_p3 }
  0xac   : > { %p7694_p2 = pnand %p7692_p0, %p7689_p13 }
  0xae   : > { %7697 = shalt.err (!%p7694_p2)
}
  0xaf   : > { %s7698_s27 = scalar_lea.vmem %s599_s18, 2304  ;;  %p7706_p10 = scmp.lt.s32.totalorder %s599_s18, %s599_s18 }
  0xb0   : > { %p7699_p5 = scmp.ne.s32.totalorder %s599_s18, %s7698_s27  ;;  %p7707_p11 = scmp.lt.s32.totalorder %s7698_s27, %s7698_s27 }
  0xb2   : > { %p7701_p7 = pnand %p7699_p5, %p8070_p8  ;;  %p7708_p12 = por %p7707_p11, %p7706_p10 }
  0xb4   : > { %p7702_p9 = pneg %p7701_p7 }
  0xb6   : > { %p7709_p4 = pnand %p7708_p12, %p7702_p9 }
  0xb8   : > { %7712 = shalt.err (!%p7709_p4)
}
  0xb9   : > { %7304 = dma.hbm_to_vmem [thread:$0]  (!%p8054_p6), %s9270_s7, 2304, %s599_s18, [#allocation10], %s7886_s14, %s7886_s14, %s7887_s16  }
  0xba   : > { %s7713_s21 = scalar_lea.hbm %s9276_s13, 2304 }
  0xbb   : > { %p7714_p1 = scmp.ne.s32.totalorder %s9276_s13, %s7713_s21  ;;  %p7720_p0 = scmp.lt.u32.totalorder %s7713_s21, %s9276_s13 }
  0xbd   : > { %p7716_p3 = pnand %p7714_p1, %p8070_p8 }
  0xbf   : > { %p7717_p13 = pneg %p7716_p3 }
  0xc1   : > { %p7722_p2 = pnand %p7720_p0, %p7717_p13 }
  0xc3   : > { %7725 = shalt.err (!%p7722_p2)
}
  0xc4   : > { %s7726_s22 = scalar_lea.vmem %s637_s19, 2304  ;;  %p7734_p10 = scmp.lt.s32.totalorder %s637_s19, %s637_s19 }
  0xc5   : > { %p7727_p5 = scmp.ne.s32.totalorder %s637_s19, %s7726_s22  ;;  %p7735_p11 = scmp.lt.s32.totalorder %s7726_s22, %s7726_s22 }
  0xc7   : > { %p7729_p7 = pnand %p7727_p5, %p8070_p8  ;;  %p7736_p12 = por %p7735_p11, %p7734_p10 }
  0xc9   : > { %p7730_p9 = pneg %p7729_p7 }
  0xcb   : > { %p7737_p4 = pnand %p7736_p12, %p7730_p9 }
  0xcd   : > { %7740 = shalt.err (!%p7737_p4)
}
  0xce   : > { %7310 = dma.hbm_to_vmem [thread:$0]  (!%p8054_p6), %s9276_s13, 2304, %s637_s19, [#allocation13], %s7886_s14, %s7886_s14, %s7887_s16  }
  0xcf   : > { %s7892_s11 = smov [#allocation17]   ;;  %s7741_s21 = scalar_lea.hbm %s9283_s20, 32768 }
  0xd0   : > { %s677_s12 = sshll.u32 %s7892_s11, 4  ;;  %p7742_p1 = scmp.ne.s32.totalorder %s9283_s20, %s7741_s21  ;;  %s678_s12 = int_to_ptr.vmem [resolvable:$true] %s677_s12 }
  0xd1   : > { %p7748_p0 = scmp.lt.u32.totalorder %s7741_s21, %s9283_s20 }
  0xd2   : > { %p7744_p3 = pnand %p7742_p1, %p8070_p8 }
  0xd4   : > { %p7745_p13 = pneg %p7744_p3 }
  0xd6   : > { %p7750_p2 = pnand %p7748_p0, %p7745_p13 }
  0xd8   : > { %7753 = shalt.err (!%p7750_p2)
}
  0xd9   : > { %s7754_s14 = scalar_lea.vmem %s678_s12, 32768  ;;  %p7762_p10 = scmp.lt.s32.totalorder %s678_s12, %s678_s12 }
  0xda   : > { %p7755_p5 = scmp.ne.s32.totalorder %s678_s12, %s7754_s14  ;;  %p7763_p11 = scmp.lt.s32.totalorder %s7754_s14, %s7754_s14 }
  0xdc   : > { %p7757_p7 = pnand %p7755_p5, %p8070_p8  ;;  %p7764_p12 = por %p7763_p11, %p7762_p10 }
  0xde   : > { %p7758_p9 = pneg %p7757_p7 }
  0xe0   : > { %p7765_p4 = pnand %p7764_p12, %p7758_p9 }
  0xe2   : > { %7768 = shalt.err (!%p7765_p4)
}
  0xe3   : > { %s9299_s16 = smov 512   ;;  %s9300_s5 = smov 32  }
  0xe4   : > { %7316 = dma.hbm_to_vmem [thread:$0]  (!%p8054_p6), %s9283_s20, 32768, %s678_s12, [#allocation16], %s9299_s16, %s9299_s16, %s9300_s5  }
  0xe5   : > { %s6208_s18 = sadd.s32 4294967294, %s7881_s30   ;;  %s8251_s27 = sadd.s32 1, %s7881_s30  }
  0xe6   : > { %s46_s11 = ssub.s32 %s7881_s30, %s8251_s27  ;;  %s49_s25 = sadd.s32 1, %s7877_s29 }
  0xe7   : > { %p47_p8 = scmp.eq.s32.totalorder %s46_s11, 0  ;;  %p56_p1 = scmp.ne.s32.totalorder %s7877_s29, %s7873_s28 }
  0xe8   : > { %p57_p3 = scmp.eq.s32.totalorder %s7881_s30, 0  ;;  %p62_p13 = scmp.ne.s32.totalorder %s7873_s28, %s7869_s3 }
  0xe9   : > { %s8262_s6 = scalar_select %p47_p8, %s7877_s29, %s49_s25  }
  0xea   : > { %p8264_p0 = por %p57_p3, %p56_p1  ;;  %p9329_p2 = scmp.eq.s32.totalorder %s8038_s23, 0 }
  0xeb   : > { %p527_p5 = scmp.eq.s32.totalorder %s8038_s23, 1  ;;  %p533_p7 = scmp.eq.s32.totalorder %s6208_s18, 1 }
  0xec   : > { %p8270_p6 = por %p9329_p2, %p62_p13  ;;  %p7333_p9 = scmp.lt.s32.totalorder %s7881_s30, 2 }
  0xed   : > { %s694_s21 = sand.u32 1, %s7877_s29   ;;  %p8277_p10 = por %p527_p5, %p56_p1 }
  0xee   : > { %p8281_p11 = por %p533_p7, %p62_p13  ;;  %s6219_s4 = sshll.u32 %s694_s21, 6 }
  0xef   : > { %s9331_s0 = scalar_select %p8277_p10, 1, 0 }
  0xf0   : > { %s9332_s24 = scalar_select %p8281_p11, 1, 0 }
  0xf1   : > { %s6774_s26 = sshll.u32 %s7881_s30, 10  ;;  %s9333_s22 = sld [smem:[#allocation25_spill]] }
  0xf2   : > { %s698_s18 = scalar_lea.vmem [#allocation3], %s6219_s4  ;;  %p8295_p12 = pnand %p7333_p9, %p8264_p0 }
  0xf3   : > { %s705_s25 = sshll.u32 %s698_s18, 4  ;;  %s8299_s5 = scalar_lea.sflag [#allocation4], %s694_s21  ;;  %s8291_s25 = int_to_ptr.vmem [resolvable:$true] %s705_s25 }
  0xf4   : > { %p7771_p8 = pneg %p8295_p12 }
  0xf7   : > { %s8289_s11 = scalar_lea.hbm %s9333_s22, %s6774_s26  ;;  %s7774_s17 = scalar_lea.hbm %s9333_s22, 2048 }
  0xf8   : > { %s7769_s14 = scalar_lea.hbm %s8289_s11, 1024  ;;  %p7775_p13 = scmp.lt.u32.totalorder %s8289_s11, %s9333_s22 }
  0xf9   : > { %p7770_p4 = scmp.ne.s32.totalorder %s8289_s11, %s7769_s14  ;;  %p7776_p0 = scmp.lt.u32.totalorder %s7774_s17, %s7769_s14 }
  0xfa   : > { %p7778_p5 = scmp.lt.u32.totalorder %s7769_s14, %s8289_s11 }
  0xfb   : > { %p7772_p1 = pnand %p7771_p8, %p7770_p4  ;;  %p7777_p2 = por %p7776_p0, %p7775_p13 }
  0xfd   : > { %p7773_p3 = pneg %p7772_p1  ;;  %p7779_p7 = por %p7778_p5, %p7777_p2 }
  0xff   : > { %p7780_p9 = pnand %p7779_p7, %p7773_p3 }
 0x101   : > { %7783 = shalt.err (!%p7780_p9)
}
 0x102   : > { %s7784_s21 = scalar_lea.vmem %s8291_s25, 1024  ;;  %s7895_s4 = smov [#allocation3]  }
 0x103   : > { %p7785_p4 = scmp.ne.s32.totalorder %s8291_s25, %s7784_s21  ;;  %s7789_s26 = sshll.u32 %s7895_s4, 4  ;;  %s7790_s26 = int_to_ptr.vmem [resolvable:$false] %s7789_s26 }
 0x104   : > { %s7791_s19 = scalar_lea.vmem %s7790_s26, 2048  ;;  %p7792_p10 = scmp.lt.s32.totalorder %s8291_s25, %s7790_s26 }
 0x105   : > { %p7787_p1 = pnand %p7785_p4, %p7771_p8  ;;  %p7793_p13 = scmp.lt.s32.totalorder %s7791_s19, %s7784_s21 }
 0x107   : > { %p7788_p11 = pneg %p7787_p1  ;;  %p7794_p0 = por %p7793_p13, %p7792_p10 }
 0x109   : > { %p7795_p2 = pnand %p7794_p0, %p7788_p11 }
 0x10b   : > { %7798 = shalt.err (!%p7795_p2)
}
 0x10c   : > { %s9335_s14 = smov 32   ;;  %s9336_s17 = smov 512  }
 0x10d   : > { %7320 = dma.hbm_to_vmem [thread:$0]  (!%p8295_p12), %s8289_s11, 1024, %s8291_s25, %s8299_s5, %s9336_s17, %s9336_s17, %s9335_s14  }
 0x10e   : > { %p9337_p8 = scmp.ne.s32.totalorder %s9321_s1, 0 }
 0x10f   : > { %s8333_s18 = sand.u32 (!%p9337_p8), 1, %s7873_s28  }
 0x110   : > { %717 = sbr.rel (%p9337_p8) target bundleno = 2636 (0xa4c), region = 108  ;;  %s6223_s21 = sshll.u32 (!%p9337_p8), %s8333_s18, 6 }
 0x111   : > { %s720_s4 = scalar_lea.sflag (!%p9337_p8), [#allocation4], %s8333_s18  ;;  %s8337_s26 = scalar_lea.vmem (!%p9337_p8), [#allocation3], %s6223_s21 }
 0x117   : > { %7844 = dma.done.wait (%p8270_p6), %s720_s4, 1024  }
 0x118   : > { %7846 = vsyncadd (%p8270_p6), %s720_s4, 4294966272  ;;  %p9338_p10 = scmp.eq.s32.totalorder %s8038_s23, 0 }
 0x11a   : > { %7848 = dma.done.wait (%p9338_p10), [#allocation7], 528   ;;  %p9339_p11 = pmov %p9338_p10 }
 0x11b   : > { %p9340_p12 = pmov %p9338_p10 }
 0x11c   : > { %7850 = vsyncadd (%p9339_p11), [#allocation7], 4294966768 }
 0x11d   : > { %7852 = dma.done.wait (%p9340_p12), [#allocation10], 4608   ;;  %p9341_p3 = pmov %p9338_p10 }
 0x11f   : > { %7854 = vsyncadd (%p9341_p3), [#allocation10], 4294962688  ;;  %p9342_p5 = pmov %p9341_p3 }
 0x120   : > { %p9343_p7 = pmov %p9341_p3 }
 0x121   : > { %7856 = dma.done.wait (%p9342_p5), [#allocation13], 3840  }
 0x122   : > { %7858 = vsyncadd (%p9343_p7), [#allocation13], 4294963456  ;;  %p9344_p6 = pmov %p9341_p3 }
 0x123   : > { %p9345_p9 = pmov %p9341_p3 }
 0x124   : > { %7860 = dma.done.wait (%p9344_p6), [#allocation16], 35072  }
 0x125   : > { %7862 = vsyncadd (%p9345_p9), [#allocation16], 4294932224  ;;  %s9346_s5 = sld [smem:[#allocation26_spill]]  ;;  %v823_v32 = vld [vmem:[%s8337_s26 + $0x8] sm:$0xff]  ;;  %v825_v34 = vld [vmem:[%s8337_s26 + $0x18] sm:$0xff]  ;;  %v7896_v39 = vmov 0.0  }
 0x126   : > { %v827_v33 = vld [vmem:[%s8337_s26 + $0x28] sm:$0xff]  ;;  %v829_v36 = vld [vmem:[%s8337_s26 + $0x38] sm:$0xff]  ;;  %v822_v37 = vld [vmem:[%s8337_s26] sm:$0xff]  ;;  %vm7897_vm0 = vmmov 0   ;;  %vm817_vm1 = vcmask 785408   ;;  %vm1221_vm2 = vcmask 523264  }
 0x127   : > { %v8458_v35 = vpack.c.bf16 %v827_v33, %v823_v32  ;;  %v826_v38 = vld [vmem:[%s8337_s26 + $0x20] sm:$0xff]  ;;  %v8464_v40 = vpack.c.bf16 %v829_v36, %v825_v34  ;;  %v824_v42 = vld [vmem:[%s8337_s26 + $0x10] sm:$0xff]  ;;  %819 = vst.msk [vmem:[#allocation2 + $0x8] sm:$0xff] %vm817_vm1, %v7896_v39  ;;  %818 = vst.msk [vmem:[#allocation2] sm:$0xff] %vm817_vm1, %v7896_v39  ;;  %s9347_s19 = sld [smem:[#allocation29_spill]]  ;;  %s9348_s1 = sld [smem:[#allocation31_spill]] }
 0x128   : > { %v8466_v41 = vpack.c.bf16 %v826_v38, %v822_v37  ;;  %v828_v43 = vld [vmem:[%s8337_s26 + $0x30] sm:$0xff]  ;;  %v7424_v45 = vld [vmem:[#allocation8] sm:$0xff]   ;;  %v7427_v48 = vld [vmem:[#allocation8 + $0x18] sm:$0xff]   ;;  %820 = vst.msk [vmem:[#allocation2 + $0x10] sm:$0xff] %vm817_vm1, %v7896_v39  ;;  %s9349_s11 = sld [smem:[#allocation33_spill]]  ;;  %s9351_s21 = sld [smem:[#allocation37_spill]] }
 0x129   : > { %1129 = vmatprep.mubr.bf16.mxu0 %v8458_v35  ;;  %v8472_v44 = vpack.c.bf16 %v828_v43, %v824_v42  ;;  %1170 = vmatprep.mubr.bf16.mxu1 %v8464_v40  ;;  %v7425_v46 = vld [vmem:[#allocation8 + $0x8] sm:$0xff]   ;;  %v7426_v47 = vld [vmem:[#allocation8 + $0x10] sm:$0xff]   ;;  %v7430_v50 = vld [vmem:[#allocation9 + $0x38] sm:$0xff]   ;;  %821 = vst.msk [vmem:[#allocation2 + $0x18] sm:$0xff] %vm817_vm1, %v7896_v39  ;;  %s9352_s25 = sld [smem:[#allocation35_spill]]  ;;  %s9353_s26 = sld [smem:[#allocation36_spill]] }
 0x12a   : > { %v7428_v49 = vld [vmem:[#allocation9 + $0x30] sm:$0xff]   ;;  %v6233_v53 = vld [vmem:[#allocation6] ss:$0 sm:$0xff]  ;;  %v7441_v33 = vld [vmem:[#allocation9 + $0x68] sm:$0xff]   ;;  %s6232_s14 = sshll.u32 %s8333_s18, 7  ;;  %s6775_s2 = sshll.u32 %s8038_s23, 11 }
 0x12b   : > { %v7392_v0 = vld [vmem:[%s9346_s5 + $0x40] sm:$0xff]   ;;  %v7396_v4 = vld [vmem:[%s9346_s5 + $0x48] sm:$0xff]   ;;  %v7400_v8 = vld [vmem:[%s9346_s5 + $0x50] sm:$0xff]   ;;  %s9174_s17 = scalar_lea.vmem [#allocation18], %s6232_s14  ;;  %s9356_s12 = sld [smem:[#allocation40_spill]] }
 0x12c   : > { %v7393_v1 = vld [vmem:[%s9346_s5 + $0xc0] sm:$0xff]   ;;  %6776 = vmatprep.subr.bf16.mxu0 %v7392_v0  ;;  %v7397_v5 = vld [vmem:[%s9346_s5 + $0xc8] sm:$0xff]   ;;  %v7401_v9 = vld [vmem:[%s9346_s5 + $0xd0] sm:$0xff]   ;;  %s6059_s4 = sshll.u32 %s9174_s17, 4  ;;  %p9357_p1 = scmp.ne.s32.totalorder %s9331_s0, 0  ;;  %s9213_s4 = int_to_ptr.vmem [resolvable:$true] %s6059_s4 }
 0x12d   : > { %v7394_v2 = vld [vmem:[%s9346_s5] sm:$0xff]   ;;  %6798 = vmatprep.subr.bf16.mxu1 %v7393_v1  ;;  %v7398_v6 = vld [vmem:[%s9346_s5 + $0x8] sm:$0xff]   ;;  %v7402_v10 = vld [vmem:[%s9346_s5 + $0x10] sm:$0xff]   ;;  %s7899_s14 = smov [#allocation18]  }
 0x12e   : > { %v7395_v3 = vld [vmem:[%s9346_s5 + $0x80] sm:$0xff]   ;;  %6777 = vmatpush3.bf16.msra.mxu0 %v7394_v2  ;;  %v7399_v7 = vld [vmem:[%s9346_s5 + $0x88] sm:$0xff]   ;;  %v7403_v11 = vld [vmem:[%s9346_s5 + $0x90] sm:$0xff]  }
 0x12f   : > { %6799 = vmatpush3.bf16.msra.mxu1 %v7395_v3  ;;  %6778 = vmatprep.subr.bf16.mxu0 %v7396_v4  ;;  %v7404_v12 = vld [vmem:[%s9346_s5 + $0x58] sm:$0xff]   ;;  %v7408_v16 = vld [vmem:[%s9346_s5 + $0x60] sm:$0xff]   ;;  %v7412_v20 = vld [vmem:[%s9346_s5 + $0x68] sm:$0xff]  }
 0x130   : > { %6800 = vmatprep.subr.bf16.mxu1 %v7397_v5  ;;  %v7405_v13 = vld [vmem:[%s9346_s5 + $0xd8] sm:$0xff]   ;;  %v7409_v17 = vld [vmem:[%s9346_s5 + $0xe0] sm:$0xff]   ;;  %v7413_v21 = vld [vmem:[%s9346_s5 + $0xe8] sm:$0xff]  }
 0x131   : > { %v7406_v14 = vld [vmem:[%s9346_s5 + $0x18] sm:$0xff]   ;;  %v7410_v18 = vld [vmem:[%s9346_s5 + $0x20] sm:$0xff]   ;;  %v7414_v22 = vld [vmem:[%s9346_s5 + $0x28] sm:$0xff]  }
 0x132   : > { %6779 = vmatpush3.bf16.msra.mxu0 %v7398_v6  ;;  %v7407_v15 = vld [vmem:[%s9346_s5 + $0x98] sm:$0xff]   ;;  %v7411_v19 = vld [vmem:[%s9346_s5 + $0xa0] sm:$0xff]   ;;  %v7415_v23 = vld [vmem:[%s9346_s5 + $0xa8] sm:$0xff]  }
 0x133   : > { %6801 = vmatpush3.bf16.msra.mxu1 %v7399_v7  ;;  %6780 = vmatprep.subr.bf16.mxu0 %v7400_v8  ;;  %v7416_v24 = vld [vmem:[%s9346_s5 + $0x70] sm:$0xff]   ;;  %v7420_v28 = vld [vmem:[%s9346_s5 + $0x78] sm:$0xff]   ;;  %v7429_v6 = vld [vmem:[#allocation9] sm:$0xff]  }
 0x134   : > { %6802 = vmatprep.subr.bf16.mxu1 %v7401_v9  ;;  %v7417_v25 = vld [vmem:[%s9346_s5 + $0xf0] sm:$0xff]   ;;  %v7421_v29 = vld [vmem:[%s9346_s5 + $0xf8] sm:$0xff]   ;;  %v7432_v9 = vld [vmem:[#allocation9 + $0x40] sm:$0xff]  }
 0x135   : > { %v7418_v26 = vld [vmem:[%s9346_s5 + $0x30] sm:$0xff]   ;;  %v7422_v30 = vld [vmem:[%s9346_s5 + $0x38] sm:$0xff]   ;;  %v7444_v37 = vld [vmem:[#allocation9 + $0x80] sm:$0xff]  }
 0x136   : > { %6781 = vmatpush3.bf16.msra.mxu0 %v7402_v10  ;;  %v7419_v27 = vld [vmem:[%s9346_s5 + $0xb0] sm:$0xff]   ;;  %v7423_v31 = vld [vmem:[%s9346_s5 + $0xb8] sm:$0xff]  }
 0x137   : > { %6803 = vmatpush3.bf16.msra.mxu1 %v7403_v11  ;;  %6782 = vmatprep.subr.bf16.mxu0 %v7404_v12  ;;  %v7431_v8 = vld [vmem:[#allocation9 + $0x8] sm:$0xff]   ;;  %v7433_v10 = vld [vmem:[#allocation9 + $0x10] sm:$0xff]   ;;  %v7435_v12 = vld [vmem:[#allocation9 + $0x18] sm:$0xff]  }
 0x138   : > { %6804 = vmatprep.subr.bf16.mxu1 %v7405_v13  ;;  %v7434_v11 = vld [vmem:[#allocation9 + $0x48] sm:$0xff]   ;;  %v7436_v13 = vld [vmem:[#allocation9 + $0x50] sm:$0xff]   ;;  %v7443_v36 = vld [vmem:[#allocation9 + $0x78] sm:$0xff]  }
 0x139   : > { %v7442_v34 = vld [vmem:[#allocation9 + $0x70] sm:$0xff]   ;;  %v7445_v38 = vld [vmem:[#allocation9 + $0x88] sm:$0xff]  }
 0x13a   : > { %6783 = vmatpush3.bf16.msra.mxu0 %v7406_v14  ;;  %v7437_v14 = vld [vmem:[#allocation9 + $0x20] sm:$0xff]  }
 0x13b   : > { %6805 = vmatpush3.bf16.msra.mxu1 %v7407_v15  ;;  %6784 = vmatprep.subr.bf16.mxu0 %v7408_v16  ;;  %v7438_v15 = vld [vmem:[#allocation9 + $0x58] sm:$0xff]   ;;  %v7439_v16 = vld [vmem:[#allocation9 + $0x28] sm:$0xff]  }
 0x13c   : > { %6806 = vmatprep.subr.bf16.mxu1 %v7409_v17  ;;  %v6266_v17 = vld [vmem:[%s9347_s19] ss:$0 sm:$0xff]  ;;  %s9350_s19 = sld [smem:[#allocation34_spill]] }
 0x13e   : > { %6785 = vmatpush3.bf16.msra.mxu0 %v7410_v18 }
 0x13f   : > { %6807 = vmatpush3.bf16.msra.mxu1 %v7411_v19  ;;  %6786 = vmatprep.subr.bf16.mxu0 %v7412_v20 }
 0x140   : > { %6808 = vmatprep.subr.bf16.mxu1 %v7413_v21 }
 0x142   : > { %6787 = vmatpush3.bf16.msra.mxu0 %v7414_v22 }
 0x143   : > { %6809 = vmatpush3.bf16.msra.mxu1 %v7415_v23  ;;  %6788 = vmatprep.subr.bf16.mxu0 %v7416_v24 }
 0x144   : > { %6810 = vmatprep.subr.bf16.mxu1 %v7417_v25 }
 0x146   : > { %6789 = vmatpush3.bf16.msra.mxu0 %v7418_v26 }
 0x147   : > { %6811 = vmatpush3.bf16.msra.mxu1 %v7419_v27  ;;  %6790 = vmatprep.subr.bf16.mxu0 %v7420_v28  ;;  %v7440_v27 = vld [vmem:[#allocation9 + $0x60] sm:$0xff]  }
 0x148   : > { %6812 = vmatprep.subr.bf16.mxu1 %v7421_v29 }
 0x14a   : > { %6791 = vmatpush3.bf16.msra.mxu0 %v7422_v30 }
 0x14b   : > { %6813 = vmatpush3.bf16.msra.mxu1 %v7423_v31  ;;  %6968 = vmatprep.subr.bf16.mxu0 %v7896_v39 }
 0x14c   : > { %6980 = vmatprep.subr.bf16.mxu1 %v7896_v39 }
 0x14d   : > { %1130 = vmatmul.mubr.bf16.vlgmr.msra.gmra.mrb[0].mxu0 %v8466_v41 }
 0x14e   : > { %1171 = vmatmul.mubr.bf16.vlgmr.msra.gmra.mrb[0].mxu1 %v8472_v44  ;;  %6969 = vmatpush3.bf16.msra.mxu0 %v7424_v45 }
 0x14f   : > { %6970 = vmatprep.subr.bf16.mxu0 %v7896_v39  ;;  %6976 = vmatprep.mubr.msk.bf16.mxu0 %vm7897_vm0, %v7896_v39 }
 0x150   : > { %6992 = vmatprep.mubr.msk.bf16.mxu1 %vm7897_vm0, %v7896_v39  ;;  %6981 = vmatpush3.bf16.msra.mxu1 %v7428_v49  ;;  %v7449_v49 = vld [vmem:[#allocation11 + $0x8] sm:$0xff]  }
 0x151   : > { %6982 = vmatprep.subr.bf16.mxu1 %v7896_v39 }
 0x152   : > { %6971 = vmatpush3.bf16.msra.mxu0 %v7425_v46  ;;  %v7446_v46 = vld [vmem:[#allocation11 + $0x30] sm:$0xff]  }
 0x153   : > { %6972 = vmatprep.subr.bf16.mxu0 %v7896_v39 }
 0x154   : > { %6983 = vmatpush3.bf16.msra.mxu1 %v7430_v50  ;;  %v7450_v50 = vld [vmem:[#allocation11 + $0x40] sm:$0xff]  }
 0x155   : > { %6984 = vmatprep.subr.bf16.mxu1 %v7896_v39 }
 0x156   : > { %6973 = vmatpush3.bf16.msra.mxu0 %v7426_v47  ;;  %v7447_v47 = vld [vmem:[#allocation11] sm:$0xff]  }
 0x157   : > { %6974 = vmatprep.subr.bf16.mxu0 %v7896_v39 }
 0x158   : > { %6985 = vmatpush3.bf16.msra.mxu1 %v7432_v9 }
 0x159   : > { %6986 = vmatprep.subr.bf16.mxu1 %v7896_v39 }
 0x15a   : > { %6975 = vmatpush3.bf16.msra.mxu0 %v7427_v48  ;;  %v7448_v48 = vld [vmem:[#allocation11 + $0x38] sm:$0xff]  }
 0x15b   : > { %6996 = vmatprep.subr.bf16.mxu0 %v7896_v39 }
 0x15c   : > { %6987 = vmatpush3.bf16.msra.mxu1 %v7434_v11 }
 0x15d   : > { %6988 = vmatprep.subr.bf16.mxu1 %v7896_v39 }
 0x160   : > { %6989 = vmatpush3.bf16.msra.mxu1 %v7436_v13 }
 0x161   : > { %6990 = vmatprep.subr.bf16.mxu1 %v7896_v39 }
 0x164   : > { %6991 = vmatpush3.bf16.msra.mxu1 %v7438_v15 }
 0x165   : > { %7012 = vmatprep.subr.bf16.mxu1 %v7896_v39 }
 0x220   : > { %v6792_v51 = vpop.f32.mrb[0].mxu0 }
 0x221   : > { %v6814_v52 = vpop.f32.mrb[0].mxu1  ;;  %v6793_v54 = vpop.f32.mrb[1].mxu0 }
 0x222   : > { %v6794_v55 = vadd.f32 %v6793_v54, %v6792_v51  ;;  %v6815_v56 = vpop.f32.mrb[1].mxu1  ;;  %v6795_v57 = vpop.f32.mrb[2].mxu0  ;;  %v7451_v51 = vld [vmem:[#allocation11 + $0x10] sm:$0xff]  }
 0x223   : > { %v6816_v58 = vadd.f32 %v6815_v56, %v6814_v52  ;;  %v6817_v59 = vpop.f32.mrb[2].mxu1  ;;  %v6796_v60 = vpop.f32.mrb[3].mxu0  ;;  %v7452_v52 = vld [vmem:[#allocation11 + $0x48] sm:$0xff]   ;;  %v7454_v54 = vld [vmem:[#allocation11 + $0x50] sm:$0xff]   ;;  %v7456_v56 = vld [vmem:[#allocation11 + $0x58] sm:$0xff]  }
 0x224   : > { %v1132_v61 = vadd.f32 %v6794_v55, %v6233_v53  ;;  %v6797_v62 = vadd.f32 %v6796_v60, %v6795_v57  ;;  %v6818_v63 = vpop.f32.mrb[3].mxu1  ;;  %v7455_v55 = vld [vmem:[#allocation11 + $0x20] sm:$0xff]   ;;  %v7457_v57 = vld [vmem:[#allocation11 + $0x28] sm:$0xff]  }
 0x225   : > { %v6819_v0 = vadd.f32 %v6818_v63, %v6817_v59 }
 0x226   : > { %v1173_v1 = vadd.f32 %v6816_v58, %v1132_v61  ;;  %v1135_v2 = vadd.f32 %v6797_v62, %v6233_v53  ;;  %v7453_v53 = vld [vmem:[#allocation11 + $0x18] sm:$0xff]   ;;  %v7463_v58 = vld [vmem:[%s9272_s9 + $0x40] sm:$0xff]  }
 0x228   : > { %v1176_v3 = vadd.f32 %v6819_v0, %v1135_v2  ;;  %v1179_v4 = vmax.f32 %v1173_v1, 0.0 }
 0x22a   : > { %v1180_v5 = vmax.f32 %v1176_v3, 0.0 }
 0x22c   : > { %v1189_v7 = vpack.c.bf16 %v1180_v5, %v1179_v4 }
 0x22e   : > { %6977 = vmatmul.mubr.msk.bf16.vlgmr.msra.gmra.mrb[4].mxu0 %vm1221_vm2, %v1189_v7 }
 0x22f   : > { %6997 = vmatpush3.bf16.msra.mxu0 %v7429_v6  ;;  %7008 = vmatprep.mubr.msk.bf16.mxu0 %vm7897_vm0, %v7896_v39  ;;  %v6293_v6 = vld [vmem:[%s9348_s1] ss:$0 sm:$0xff]  ;;  %s9354_s1 = sld [smem:[#allocation38_spill]] }
 0x230   : > { %6998 = vmatprep.subr.bf16.mxu0 %v7896_v39 }
 0x233   : > { %6999 = vmatpush3.bf16.msra.mxu0 %v7431_v8 }
 0x234   : > { %7000 = vmatprep.subr.bf16.mxu0 %v7896_v39 }
 0x237   : > { %7001 = vmatpush3.bf16.msra.mxu0 %v7433_v10 }
 0x238   : > { %7002 = vmatprep.subr.bf16.mxu0 %v7896_v39 }
 0x23b   : > { %7003 = vmatpush3.bf16.msra.mxu0 %v7435_v12 }
 0x23c   : > { %7004 = vmatprep.subr.bf16.mxu0 %v7896_v39 }
 0x23f   : > { %7005 = vmatpush3.bf16.msra.mxu0 %v7437_v14 }
 0x240   : > { %7006 = vmatprep.subr.bf16.mxu0 %v7896_v39 }
 0x243   : > { %7007 = vmatpush3.bf16.msra.mxu0 %v7439_v16 }
 0x244   : > { %7028 = vmatprep.subr.bf16.mxu0 %v7896_v39 }
 0x301   : > { %v1259_v18 = vpop.f32.mrb[4].mxu0 }
 0x302   : > { %v1260_v19 = vadd.f32 %v6266_v17, %v1259_v18  ;;  %v6978_v20 = vpop.f32.mrb[5].mxu0  ;;  %v7464_v18 = vld [vmem:[%s9272_s9] sm:$0xff]  }
 0x303   : > { %v1262_v21 = vpop.f32.mrb[6].mxu0 }
 0x304   : > { %v1266_v22 = vmax.f32 %v1260_v19, 0.0  ;;  %v1263_v23 = vadd.f32 %v6266_v17, %v1262_v21  ;;  %v6979_v24 = vpop.f32.mrb[7].mxu0  ;;  %v7458_v17 = vld [vmem:[#allocation11 + $0x60] sm:$0xff]  }
 0x305   : > { %v7466_v24 = vld [vmem:[%s9272_s9 + $0x48] sm:$0xff]  }
 0x306   : > { %1268 = vst.msk [vmem:[#allocation2 + $0x8] sm:$0xff] %vm817_vm1, %v1266_v22  ;;  %v1267_v25 = vmax.f32 %v1263_v23, 0.0 }
 0x308   : > { %1269 = vst.msk [vmem:[#allocation2 + $0x10] sm:$0xff] %vm817_vm1, %v1267_v25  ;;  %v7459_v25 = vld [vmem:[#allocation11 + $0x68] sm:$0xff]  }
 0x30d   : > { %v1285_v26 = vld [vmem:[#allocation2 + $0x8] sm:$0xff] }
 0x30e   : > { %v1270_v29 = vld [vmem:[#allocation2 + $0x7] sm:$0xff] }
 0x30f   : > { %v1286_v28 = vld [vmem:[#allocation2 + $0x10] sm:$0xff] }
 0x310   : > { %v1271_v30 = vld [vmem:[#allocation2 + $0xf] sm:$0xff]  ;;  %v1300_v31 = vpack.c.bf16 %v1286_v28, %v1285_v26  ;;  %v7460_v28 = vld [vmem:[#allocation11 + $0x70] sm:$0xff]  }
 0x311   : > { %v1284_v32 = vpack.c.bf16 %v1271_v30, %v1270_v29  ;;  %v1461_v42 = vld [vmem:[#allocation2 + $0x9] sm:$0xff]  ;;  %v1462_v43 = vld [vmem:[#allocation2 + $0x11] sm:$0xff] }
 0x312   : > { %6993 = vmatmul.mubr.msk.bf16.vlgmr.msra.gmra.mrb[4].mxu1 %vm817_vm1, %v1300_v31  ;;  %v1476_v45 = vpack.c.bf16 %v1462_v43, %v1461_v42  ;;  %v7467_v26 = vld [vmem:[%s9272_s9 + $0x8] sm:$0xff]   ;;  %v7471_v29 = vld [vmem:[%s9272_s9 + $0x10] sm:$0xff]   ;;  %v7474_v30 = vld [vmem:[%s9272_s9 + $0x58] sm:$0xff]  }
 0x313   : > { %7009 = vmatmul.mubr.msk.bf16.vlgmr.msra.gmra.mrb[8].mxu0 %vm817_vm1, %v1284_v32  ;;  %7013 = vmatpush3.bf16.msra.mxu1 %v7440_v27  ;;  %v7470_v27 = vld [vmem:[%s9272_s9 + $0x50] sm:$0xff]   ;;  %v7475_v32 = vld [vmem:[%s9272_s9 + $0x18] sm:$0xff]   ;;  %v7483_v42 = vld [vmem:[%s9272_s9 + $0x28] sm:$0xff]  }
 0x314   : > { %7024 = vmatprep.mubr.msk.bf16.mxu1 %vm7897_vm0, %v7896_v39  ;;  %7014 = vmatprep.subr.bf16.mxu1 %v7896_v39  ;;  %v7461_v31 = vld [vmem:[#allocation11 + $0x78] sm:$0xff]   ;;  %v7468_v43 = vld [vmem:[%s9272_s9 + $0xc0] sm:$0xff]  }
 0x315   : > { %7040 = vmatprep.mubr.msk.bf16.mxu0 %vm7897_vm0, %v7896_v39  ;;  %7029 = vmatpush3.bf16.msra.mxu0 %v7446_v46 }
 0x316   : > { %7030 = vmatprep.subr.bf16.mxu0 %v7896_v39 }
 0x317   : > { %7015 = vmatpush3.bf16.msra.mxu1 %v7441_v33  ;;  %v7478_v33 = vld [vmem:[%s9272_s9 + $0x60] sm:$0xff]  }
 0x318   : > { %7016 = vmatprep.subr.bf16.mxu1 %v7896_v39 }
 0x319   : > { %7031 = vmatpush3.bf16.msra.mxu0 %v7448_v48  ;;  %v7469_v48 = vld [vmem:[%s9272_s9 + $0x80] sm:$0xff]  }
 0x31a   : > { %7032 = vmatprep.subr.bf16.mxu0 %v7896_v39 }
 0x31b   : > { %7017 = vmatpush3.bf16.msra.mxu1 %v7442_v34  ;;  %v7462_v34 = vld [vmem:[#allocation11 + $0x80] sm:$0xff]  }
 0x31c   : > { %7018 = vmatprep.subr.bf16.mxu1 %v7896_v39 }
 0x31d   : > { %7033 = vmatpush3.bf16.msra.mxu0 %v7450_v50 }
 0x31e   : > { %7034 = vmatprep.subr.bf16.mxu0 %v7896_v39 }
 0x31f   : > { %7019 = vmatpush3.bf16.msra.mxu1 %v7443_v36  ;;  %v7479_v36 = vld [vmem:[%s9272_s9 + $0x20] sm:$0xff]  }
 0x320   : > { %7020 = vmatprep.subr.bf16.mxu1 %v7896_v39 }
 0x321   : > { %7035 = vmatpush3.bf16.msra.mxu0 %v7452_v52  ;;  %v7490_v52 = vld [vmem:[%s9272_s9 + $0x78] sm:$0xff]  }
 0x322   : > { %7036 = vmatprep.subr.bf16.mxu0 %v7896_v39 }
 0x323   : > { %7021 = vmatpush3.bf16.msra.mxu1 %v7444_v37  ;;  %v7482_v37 = vld [vmem:[%s9272_s9 + $0x68] sm:$0xff]  }
 0x324   : > { %7022 = vmatprep.subr.bf16.mxu1 %v7896_v39 }
 0x325   : > { %7037 = vmatpush3.bf16.msra.mxu0 %v7454_v54  ;;  %v7491_v54 = vld [vmem:[%s9272_s9 + $0x38] sm:$0xff]  }
 0x326   : > { %7038 = vmatprep.subr.bf16.mxu0 %v7896_v39 }
 0x327   : > { %7023 = vmatpush3.bf16.msra.mxu1 %v7445_v38  ;;  %v7465_v38 = vld [vmem:[#allocation11 + $0x88] sm:$0xff]  }
 0x328   : > { %7044 = vmatprep.subr.bf16.mxu1 %v7896_v39 }
 0x329   : > { %7039 = vmatpush3.bf16.msra.mxu0 %v7456_v56  ;;  %v7477_v56 = vld [vmem:[%s9272_s9 + $0x90] sm:$0xff]  }
 0x32a   : > { %7025 = vmatmul.mubr.msk.bf16.vlgmr.msra.gmra.mrb[8].mxu1 %vm817_vm1, %v1476_v45  ;;  %7060 = vmatprep.subr.bf16.mxu0 %v7896_v39  ;;  %v7486_v45 = vld [vmem:[%s9272_s9 + $0x70] sm:$0xff]  }
 0x32b   : > { %7056 = vmatprep.mubr.msk.bf16.mxu1 %vm7897_vm0, %v7896_v39  ;;  %7045 = vmatpush3.bf16.msra.mxu1 %v7447_v47 }
 0x32c   : > { %7046 = vmatprep.subr.bf16.mxu1 %v7896_v39 }
 0x32f   : > { %7047 = vmatpush3.bf16.msra.mxu1 %v7449_v49  ;;  %v7487_v49 = vld [vmem:[%s9272_s9 + $0x30] sm:$0xff]  }
 0x330   : > { %7048 = vmatprep.subr.bf16.mxu1 %v7896_v39 }
 0x333   : > { %7049 = vmatpush3.bf16.msra.mxu1 %v7451_v51  ;;  %v7472_v51 = vld [vmem:[%s9272_s9 + $0xc8] sm:$0xff]  }
 0x334   : > { %7050 = vmatprep.subr.bf16.mxu1 %v7896_v39 }
 0x337   : > { %7051 = vmatpush3.bf16.msra.mxu1 %v7453_v53  ;;  %v7473_v53 = vld [vmem:[%s9272_s9 + $0x88] sm:$0xff]  }
 0x338   : > { %7052 = vmatprep.subr.bf16.mxu1 %v7896_v39 }
 0x33b   : > { %7053 = vmatpush3.bf16.msra.mxu1 %v7455_v55  ;;  %v7476_v55 = vld [vmem:[%s9272_s9 + $0xd0] sm:$0xff]  }
 0x33c   : > { %7054 = vmatprep.subr.bf16.mxu1 %v7896_v39 }
 0x33f   : > { %7055 = vmatpush3.bf16.msra.mxu1 %v7457_v57  ;;  %v7480_v57 = vld [vmem:[%s9272_s9 + $0xd8] sm:$0xff]  }
 0x340   : > { %6867 = vmatprep.subr.bf16.mxu1 %v7463_v58  ;;  %v7481_v58 = vld [vmem:[%s9272_s9 + $0x98] sm:$0xff]  }
 0x3e5   : > { %v1374_v59 = vpop.f32.mrb[4].mxu1 }
 0x3e6   : > { %v1454_v60 = vpop.f32.mrb[8].mxu0  ;;  %v6994_v62 = vpop.f32.mrb[5].mxu1 }
 0x3e7   : > { %v1455_v61 = vadd.f32 %v1454_v60, %v1374_v59  ;;  %v7010_v63 = vpop.f32.mrb[9].mxu0  ;;  %v1377_v0 = vpop.f32.mrb[6].mxu1  ;;  %v7484_v59 = vld [vmem:[%s9272_s9 + $0xe0] sm:$0xff]   ;;  %v7489_v62 = vld [vmem:[%s9272_s9 + $0xa8] sm:$0xff]  }
 0x3e8   : > { %v1457_v1 = vpop.f32.mrb[10].mxu0  ;;  %v6995_v3 = vpop.f32.mrb[7].mxu1  ;;  %v7485_v60 = vld [vmem:[%s9272_s9 + $0xa0] sm:$0xff]   ;;  %v7492_v63 = vld [vmem:[%s9272_s9 + $0xf0] sm:$0xff]  }
 0x3e9   : > { %v1458_v2 = vadd.f32 %v1457_v1, %v1377_v0  ;;  %v7011_v4 = vpop.f32.mrb[11].mxu0  ;;  %v7493_v0 = vld [vmem:[%s9272_s9 + $0xb0] sm:$0xff]   ;;  %v7494_v1 = vld [vmem:[%s9272_s9 + $0xf8] sm:$0xff]   ;;  %v7496_v3 = vld [vmem:[#allocation12 + $0x20] sm:$0xff]  }
 0x3ea   : > { %v7497_v4 = vld [vmem:[#allocation12] sm:$0xff]  }
 0x3fd   : > { %v1550_v5 = vpop.f32.mrb[8].mxu1 }
 0x3fe   : > { %v1557_v7 = vadd.f32 %v1550_v5, %v1455_v61  ;;  %v7026_v8 = vpop.f32.mrb[9].mxu1  ;;  %v7488_v61 = vld [vmem:[%s9272_s9 + $0xe8] sm:$0xff]  }
 0x3ff   : > { %v1553_v9 = vpop.f32.mrb[10].mxu1  ;;  %v7498_v5 = vld [vmem:[#allocation12 + $0x28] sm:$0xff]   ;;  %v7501_v8 = vld [vmem:[#allocation12 + $0x10] sm:$0xff]  }
 0x400   : > { %v1566_v10 = vadd.f32 %v6293_v6, %v1557_v7  ;;  %v1558_v11 = vadd.f32 %v1553_v9, %v1458_v2  ;;  %v7027_v12 = vpop.f32.mrb[11].mxu1  ;;  %v7495_v2 = vld [vmem:[%s9272_s9 + $0xb8] sm:$0xff]  }
 0x401   : > { %v7500_v7 = vld [vmem:[#allocation12 + $0x30] sm:$0xff]   ;;  %v7502_v9 = vld [vmem:[#allocation12 + $0x38] sm:$0xff]  }
 0x402   : > { %v1568_v13 = vmax.f32 %v1566_v10, 0.0  ;;  %v1567_v14 = vadd.f32 %v6293_v6, %v1558_v11  ;;  %v7499_v6 = vld [vmem:[#allocation12 + $0x8] sm:$0xff]   ;;  %v7503_v10 = vld [vmem:[#allocation12 + $0x18] sm:$0xff]  }
 0x404   : > { %1570 = vst.msk [vmem:[#allocation2 + $0x8] sm:$0xff] %vm817_vm1, %v1568_v13  ;;  %v1569_v15 = vmax.f32 %v1567_v14, 0.0 }
 0x406   : > { %1571 = vst.msk [vmem:[#allocation2 + $0x10] sm:$0xff] %vm817_vm1, %v1569_v15 }
 0x40b   : > { %v1587_v16 = vld [vmem:[#allocation2 + $0x8] sm:$0xff] }
 0x40c   : > { %v1572_v20 = vld [vmem:[#allocation2 + $0x5] sm:$0xff] }
 0x40d   : > { %v1588_v19 = vld [vmem:[#allocation2 + $0x10] sm:$0xff] }
 0x40e   : > { %v1573_v21 = vld [vmem:[#allocation2 + $0xd] sm:$0xff]  ;;  %v1602_v22 = vpack.c.bf16 %v1588_v19, %v1587_v16 }
 0x40f   : > { %v1586_v23 = vpack.c.bf16 %v1573_v21, %v1572_v20  ;;  %v1763_v46 = vld [vmem:[#allocation2 + $0xb] sm:$0xff]  ;;  %v1764_v47 = vld [vmem:[#allocation2 + $0x13] sm:$0xff] }
 0x410   : > { %7041 = vmatmul.mubr.msk.bf16.vlgmr.msra.gmra.mrb[12].mxu0 %vm817_vm1, %v1602_v22  ;;  %v1778_v50 = vpack.c.bf16 %v1764_v47, %v1763_v46 }
 0x411   : > { %7057 = vmatmul.mubr.msk.bf16.vlgmr.msra.gmra.mrb[12].mxu1 %vm817_vm1, %v1586_v23  ;;  %7061 = vmatpush3.bf16.msra.mxu0 %v7458_v17 }
 0x412   : > { %6868 = vmatpush3.bf16.msra.mxu1 %v7464_v18  ;;  %7062 = vmatprep.subr.bf16.mxu0 %v7896_v39 }
 0x413   : > { %7072 = vmatprep.mubr.msk.bf16.mxu0 %vm7897_vm0, %v7896_v39  ;;  %6869 = vmatprep.subr.bf16.mxu1 %v7466_v24  ;;  %v6315_v24 = vld [vmem:[%s9271_s8] ss:$0 sm:$0xff] }
 0x414   : > { %2165 = vmatprep.mubr.bf16.mxu1 %v8458_v35 }
 0x415   : > { %7063 = vmatpush3.bf16.msra.mxu0 %v7459_v25 }
 0x416   : > { %6870 = vmatpush3.bf16.msra.mxu1 %v7467_v26  ;;  %7064 = vmatprep.subr.bf16.mxu0 %v7896_v39 }
 0x417   : > { %6871 = vmatprep.subr.bf16.mxu1 %v7470_v27 }
 0x419   : > { %7065 = vmatpush3.bf16.msra.mxu0 %v7460_v28 }
 0x41a   : > { %6872 = vmatpush3.bf16.msra.mxu1 %v7471_v29  ;;  %7066 = vmatprep.subr.bf16.mxu0 %v7896_v39 }
 0x41b   : > { %6873 = vmatprep.subr.bf16.mxu1 %v7474_v30 }
 0x41d   : > { %7067 = vmatpush3.bf16.msra.mxu0 %v7461_v31 }
 0x41e   : > { %6874 = vmatpush3.bf16.msra.mxu1 %v7475_v32  ;;  %7068 = vmatprep.subr.bf16.mxu0 %v7896_v39 }
 0x41f   : > { %6875 = vmatprep.subr.bf16.mxu1 %v7478_v33 }
 0x421   : > { %7069 = vmatpush3.bf16.msra.mxu0 %v7462_v34 }
 0x422   : > { %6876 = vmatpush3.bf16.msra.mxu1 %v7479_v36  ;;  %7070 = vmatprep.subr.bf16.mxu0 %v7896_v39 }
 0x423   : > { %6877 = vmatprep.subr.bf16.mxu1 %v7482_v37 }
 0x425   : > { %7071 = vmatpush3.bf16.msra.mxu0 %v7465_v38  ;;  %v6316_v38 = vld [vmem:[%s9273_s10] ss:$0 sm:$0xff] }
 0x426   : > { %6878 = vmatpush3.bf16.msra.mxu1 %v7483_v42  ;;  %6889 = vmatprep.subr.bf16.mxu0 %v7468_v43 }
 0x427   : > { %6879 = vmatprep.subr.bf16.mxu1 %v7486_v45 }
 0x428   : > { %7073 = vmatmul.mubr.msk.bf16.vlgmr.msra.gmra.mrb[16].mxu0 %vm817_vm1, %v1778_v50 }
 0x429   : > { %6890 = vmatpush3.bf16.msra.mxu0 %v7469_v48  ;;  %2206 = vmatprep.mubr.bf16.mxu0 %v8464_v40 }
 0x42a   : > { %6880 = vmatpush3.bf16.msra.mxu1 %v7487_v49  ;;  %6891 = vmatprep.subr.bf16.mxu0 %v7472_v51 }
 0x42b   : > { %6881 = vmatprep.subr.bf16.mxu1 %v7490_v52 }
 0x42d   : > { %6892 = vmatpush3.bf16.msra.mxu0 %v7473_v53 }
 0x42e   : > { %6882 = vmatpush3.bf16.msra.mxu1 %v7491_v54  ;;  %6893 = vmatprep.subr.bf16.mxu0 %v7476_v55 }
 0x42f   : > { %7076 = vmatprep.subr.bf16.mxu1 %v7896_v39 }
 0x431   : > { %2166 = vmatmul.mubr.bf16.vlgmr.msra.gmra.mrb[16].mxu1 %v8466_v41  ;;  %6894 = vmatpush3.bf16.msra.mxu0 %v7477_v56  ;;  %v7504_v56 = vld [vmem:[#allocation12 + $0x40] sm:$0xff]  }
 0x432   : > { %7084 = vmatprep.mubr.msk.bf16.mxu1 %vm7897_vm0, %v7896_v39  ;;  %6895 = vmatprep.subr.bf16.mxu0 %v7480_v57 }
 0x433   : > { %7077 = vmatpush3.bf16.msra.mxu1 %v7496_v3 }
 0x434   : > { %7078 = vmatprep.subr.bf16.mxu1 %v7896_v39 }
 0x435   : > { %6896 = vmatpush3.bf16.msra.mxu0 %v7481_v58 }
 0x436   : > { %6897 = vmatprep.subr.bf16.mxu0 %v7484_v59 }
 0x437   : > { %7079 = vmatpush3.bf16.msra.mxu1 %v7498_v5  ;;  %v7509_v5 = vld [vmem:[#allocation14] sm:$0xff]  }
 0x438   : > { %7080 = vmatprep.subr.bf16.mxu1 %v7896_v39 }
 0x439   : > { %6898 = vmatpush3.bf16.msra.mxu0 %v7485_v60 }
 0x43a   : > { %6899 = vmatprep.subr.bf16.mxu0 %v7488_v61 }
 0x43b   : > { %7081 = vmatpush3.bf16.msra.mxu1 %v7500_v7  ;;  %v7511_v7 = vld [vmem:[#allocation14 + $0x8] sm:$0xff]  }
 0x43c   : > { %7082 = vmatprep.subr.bf16.mxu1 %v7896_v39 }
 0x43d   : > { %6900 = vmatpush3.bf16.msra.mxu0 %v7489_v62  ;;  %v7505_v62 = vld [vmem:[#allocation12 + $0x48] sm:$0xff]  }
 0x43e   : > { %6901 = vmatprep.subr.bf16.mxu0 %v7492_v63  ;;  %v7506_v63 = vld [vmem:[#allocation12 + $0x50] sm:$0xff]  }
 0x43f   : > { %7083 = vmatpush3.bf16.msra.mxu1 %v7502_v9  ;;  %v7513_v9 = vld [vmem:[#allocation14 + $0x10] sm:$0xff]  }
 0x440   : > { %7100 = vmatprep.subr.bf16.mxu1 %v7896_v39 }
 0x441   : > { %6902 = vmatpush3.bf16.msra.mxu0 %v7493_v0  ;;  %v7507_v0 = vld [vmem:[#allocation12 + $0x58] sm:$0xff]  }
 0x442   : > { %6903 = vmatprep.subr.bf16.mxu0 %v7494_v1 }
 0x445   : > { %6904 = vmatpush3.bf16.msra.mxu0 %v7495_v2 }
 0x446   : > { %7088 = vmatprep.subr.bf16.mxu0 %v7896_v39 }
 0x448   : > { %2207 = vmatmul.mubr.bf16.vlgmr.msra.gmra.mrb[20].mxu0 %v8472_v44 }
 0x449   : > { %7096 = vmatprep.mubr.msk.bf16.mxu0 %vm7897_vm0, %v7896_v39  ;;  %7089 = vmatpush3.bf16.msra.mxu0 %v7497_v4  ;;  %v7508_v4 = vld [vmem:[#allocation14 + $0x30] sm:$0xff]  }
 0x44a   : > { %7090 = vmatprep.subr.bf16.mxu0 %v7896_v39 }
 0x44d   : > { %7091 = vmatpush3.bf16.msra.mxu0 %v7499_v6  ;;  %v7510_v6 = vld [vmem:[#allocation14 + $0x38] sm:$0xff]  }
 0x44e   : > { %7092 = vmatprep.subr.bf16.mxu0 %v7896_v39 }
 0x451   : > { %7093 = vmatpush3.bf16.msra.mxu0 %v7501_v8  ;;  %v7512_v8 = vld [vmem:[#allocation14 + $0x40] sm:$0xff]  }
 0x452   : > { %7094 = vmatprep.subr.bf16.mxu0 %v7896_v39 }
 0x455   : > { %7095 = vmatpush3.bf16.msra.mxu0 %v7503_v10  ;;  %v7514_v10 = vld [vmem:[#allocation14 + $0x48] sm:$0xff]  }
 0x456   : > { %7112 = vmatprep.subr.bf16.mxu0 %v7896_v39 }
 0x4e3   : > { %v1676_v11 = vpop.f32.mrb[12].mxu0 }
 0x4e4   : > { %v1756_v12 = vpop.f32.mrb[12].mxu1  ;;  %v7042_v14 = vpop.f32.mrb[13].mxu0 }
 0x4e5   : > { %v1757_v13 = vadd.f32 %v1756_v12, %v1676_v11  ;;  %v7058_v15 = vpop.f32.mrb[13].mxu1  ;;  %v1679_v16 = vpop.f32.mrb[14].mxu0  ;;  %v7515_v11 = vld [vmem:[#allocation14 + $0x18] sm:$0xff]   ;;  %v7516_v12 = vld [vmem:[#allocation14 + $0x50] sm:$0xff]  }
 0x4e6   : > { %v1759_v17 = vpop.f32.mrb[14].mxu1  ;;  %v7043_v19 = vpop.f32.mrb[15].mxu0  ;;  %v7518_v14 = vld [vmem:[#allocation14 + $0x58] sm:$0xff]   ;;  %v7519_v15 = vld [vmem:[#allocation14 + $0x28] sm:$0xff]  }
 0x4e7   : > { %v1760_v18 = vadd.f32 %v1759_v17, %v1679_v16  ;;  %v7059_v20 = vpop.f32.mrb[15].mxu1 }
 0x4fb   : > { %v1852_v21 = vpop.f32.mrb[16].mxu0 }
 0x4fc   : > { %v1859_v22 = vadd.f32 %v1852_v21, %v1757_v13  ;;  %v7074_v23 = vpop.f32.mrb[17].mxu0  ;;  %v7517_v13 = vld [vmem:[#allocation14 + $0x20] sm:$0xff]  }
 0x4fd   : > { %v1855_v25 = vpop.f32.mrb[18].mxu0 }
 0x4fe   : > { %v1860_v26 = vadd.f32 %v1855_v25, %v1760_v18  ;;  %v7075_v27 = vpop.f32.mrb[19].mxu0  ;;  %v1868_v28 = vadd.f32 %v6315_v24, %v1859_v22 }
 0x4ff   : > { %v6364_v27 = vld [vmem:[%s9349_s11] ss:$0 sm:$0xff]  ;;  %s9211_s11 = scalar_lea.hbm %s9356_s12, %s6775_s2  ;;  %s7803_s2 = sshll.u32 %s7899_s14, 4  ;;  %s7804_s2 = int_to_ptr.vmem [resolvable:$false] %s7803_s2 }
 0x500   : > { %v1869_v29 = vadd.f32 %v6315_v24, %v1860_v26  ;;  %s7805_s23 = scalar_lea.vmem %s7804_s2, 4096  ;;  %p7806_p2 = scmp.lt.s32.totalorder %s9213_s4, %s7804_s2 }
 0x502   : > { %v8671_v30 = vpack.c.bf16 %v1869_v29, %v1868_v28 }
 0x504   : > { %v6883_v31 = vpop.f32.mrb[16].mxu1 }
 0x505   : > { %v6884_v32 = vpop.f32.mrb[17].mxu1 }
 0x506   : > { %v6885_v33 = vadd.f32 %v6884_v32, %v6883_v31  ;;  %v6886_v34 = vpop.f32.mrb[18].mxu1 }
 0x507   : > { %v6887_v36 = vpop.f32.mrb[19].mxu1 }
 0x508   : > { %v6888_v37 = vadd.f32 %v6887_v36, %v6886_v34  ;;  %v2168_v42 = vadd.f32 %v6885_v33, %v6316_v38 }
 0x50a   : > { %v2171_v49 = vadd.f32 %v6888_v37, %v6316_v38 }
 0x51b   : > { %v6905_v43 = vpop.f32.mrb[20].mxu0 }
 0x51c   : > { %v6906_v45 = vpop.f32.mrb[21].mxu0 }
 0x51d   : > { %v6907_v46 = vadd.f32 %v6906_v45, %v6905_v43  ;;  %v6908_v47 = vpop.f32.mrb[22].mxu0  ;;  %v7520_v43 = vld [vmem:[#allocation14 + $0x60] sm:$0xff]  }
 0x51e   : > { %v6909_v48 = vpop.f32.mrb[23].mxu0 }
 0x51f   : > { %v2209_v50 = vadd.f32 %v6907_v46, %v2168_v42  ;;  %v6910_v51 = vadd.f32 %v6909_v48, %v6908_v47 }
 0x521   : > { %v2215_v52 = vmax.f32 %v2209_v50, 0.0  ;;  %v2212_v53 = vadd.f32 %v6910_v51, %v2171_v49  ;;  %v7521_v50 = vld [vmem:[#allocation14 + $0x68] sm:$0xff]   ;;  %v7522_v51 = vld [vmem:[#allocation14 + $0x70] sm:$0xff]  }
 0x523   : > { %2217 = vst.msk [vmem:[#allocation2 + $0x8] sm:$0xff] %vm1221_vm2, %v2215_v52  ;;  %v2216_v54 = vmax.f32 %v2212_v53, 0.0  ;;  %v7523_v52 = vld [vmem:[#allocation14 + $0x78] sm:$0xff]   ;;  %v7524_v53 = vld [vmem:[#allocation14 + $0x80] sm:$0xff]  }
 0x525   : > { %2218 = vst.msk [vmem:[#allocation2 + $0x10] sm:$0xff] %vm1221_vm2, %v2216_v54  ;;  %v7525_v54 = vld [vmem:[#allocation14 + $0x88] sm:$0xff]  }
 0x52a   : > { %v2230_v55 = vld [vmem:[#allocation2 + $0x8] sm:$0xff] }
 0x52b   : > { %v2219_v58 = vld [vmem:[#allocation2 + $0x7] sm:$0xff] }
 0x52c   : > { %v2231_v57 = vld [vmem:[#allocation2 + $0x10] sm:$0xff] }
 0x52d   : > { %v2220_v59 = vld [vmem:[#allocation2 + $0xf] sm:$0xff]  ;;  %v2241_v60 = vpack.c.bf16 %v2231_v57, %v2230_v55 }
 0x52e   : > { %v2229_v61 = vpack.c.bf16 %v2220_v59, %v2219_v58  ;;  %v2378_v1 = vld [vmem:[#allocation2 + $0x9] sm:$0xff]  ;;  %v2379_v2 = vld [vmem:[#allocation2 + $0x11] sm:$0xff] }
 0x52f   : > { %7085 = vmatmul.mubr.msk.bf16.vlgmr.msra.gmra.mrb[20].mxu1 %vm1221_vm2, %v2241_v60  ;;  %v2389_v3 = vpack.c.bf16 %v2379_v2, %v2378_v1  ;;  %v7526_v58 = vld [vmem:[#allocation15 + $0x30] sm:$0xff]   ;;  %v7527_v59 = vld [vmem:[#allocation15] sm:$0xff]   ;;  %v7528_v60 = vld [vmem:[#allocation15 + $0x38] sm:$0xff]  }
 0x530   : > { %7097 = vmatmul.mubr.msk.bf16.vlgmr.msra.gmra.mrb[24].mxu0 %vm1221_vm2, %v2229_v61  ;;  %7101 = vmatpush3.bf16.msra.mxu1 %v7504_v56  ;;  %v7529_v61 = vld [vmem:[#allocation15 + $0x8] sm:$0xff]   ;;  %v7533_v1 = vld [vmem:[#allocation15 + $0x18] sm:$0xff]   ;;  %v7534_v2 = vld [vmem:[#allocation15 + $0x50] sm:$0xff]  }
 0x531   : > { %7108 = vmatprep.mubr.msk.bf16.mxu1 %vm7897_vm0, %v7896_v39  ;;  %7102 = vmatprep.subr.bf16.mxu1 %v7896_v39 }
 0x532   : > { %7124 = vmatprep.mubr.msk.bf16.mxu0 %vm7897_vm0, %v7896_v39  ;;  %7113 = vmatpush3.bf16.msra.mxu0 %v7508_v4  ;;  %v7536_v4 = vld [vmem:[#allocation15 + $0x58] sm:$0xff]  }
 0x533   : > { %7114 = vmatprep.subr.bf16.mxu0 %v7896_v39 }
 0x534   : > { %7103 = vmatpush3.bf16.msra.mxu1 %v7505_v62  ;;  %v7530_v62 = vld [vmem:[#allocation15 + $0x40] sm:$0xff]  }
 0x535   : > { %7104 = vmatprep.subr.bf16.mxu1 %v7896_v39 }
 0x536   : > { %7115 = vmatpush3.bf16.msra.mxu0 %v7510_v6 }
 0x537   : > { %7116 = vmatprep.subr.bf16.mxu0 %v7896_v39 }
 0x538   : > { %7105 = vmatpush3.bf16.msra.mxu1 %v7506_v63  ;;  %v7531_v63 = vld [vmem:[#allocation15 + $0x10] sm:$0xff]  }
 0x539   : > { %7106 = vmatprep.subr.bf16.mxu1 %v7896_v39 }
 0x53a   : > { %7117 = vmatpush3.bf16.msra.mxu0 %v7512_v8 }
 0x53b   : > { %7118 = vmatprep.subr.bf16.mxu0 %v7896_v39 }
 0x53c   : > { %7107 = vmatpush3.bf16.msra.mxu1 %v7507_v0  ;;  %v7532_v0 = vld [vmem:[#allocation15 + $0x48] sm:$0xff]  }
 0x53d   : > { %7128 = vmatprep.subr.bf16.mxu1 %v7896_v39 }
 0x53e   : > { %7119 = vmatpush3.bf16.msra.mxu0 %v7514_v10 }
 0x53f   : > { %7109 = vmatmul.mubr.msk.bf16.vlgmr.msra.gmra.mrb[24].mxu1 %vm1221_vm2, %v2389_v3  ;;  %7120 = vmatprep.subr.bf16.mxu0 %v7896_v39  ;;  %v7535_v3 = vld [vmem:[#allocation15 + $0x20] sm:$0xff]  }
 0x540   : > { %7140 = vmatprep.mubr.msk.bf16.mxu1 %vm7897_vm0, %v7896_v39  ;;  %7129 = vmatpush3.bf16.msra.mxu1 %v7509_v5  ;;  %v7537_v5 = vld [vmem:[#allocation15 + $0x28] sm:$0xff]  }
 0x541   : > { %7130 = vmatprep.subr.bf16.mxu1 %v7896_v39 }
 0x542   : > { %7121 = vmatpush3.bf16.msra.mxu0 %v7516_v12 }
 0x543   : > { %7122 = vmatprep.subr.bf16.mxu0 %v7896_v39 }
 0x544   : > { %7131 = vmatpush3.bf16.msra.mxu1 %v7511_v7 }
 0x545   : > { %7132 = vmatprep.subr.bf16.mxu1 %v7896_v39 }
 0x546   : > { %7123 = vmatpush3.bf16.msra.mxu0 %v7518_v14 }
 0x547   : > { %7144 = vmatprep.subr.bf16.mxu0 %v7896_v39 }
 0x548   : > { %7133 = vmatpush3.bf16.msra.mxu1 %v7513_v9 }
 0x549   : > { %7134 = vmatprep.subr.bf16.mxu1 %v7896_v39 }
 0x54c   : > { %7135 = vmatpush3.bf16.msra.mxu1 %v7515_v11 }
 0x54d   : > { %7136 = vmatprep.subr.bf16.mxu1 %v7896_v39 }
 0x550   : > { %7137 = vmatpush3.bf16.msra.mxu1 %v7517_v13 }
 0x551   : > { %7138 = vmatprep.subr.bf16.mxu1 %v7896_v39 }
 0x554   : > { %7139 = vmatpush3.bf16.msra.mxu1 %v7519_v15 }
 0x555   : > { %7160 = vmatprep.subr.bf16.mxu1 %v7896_v39 }
 0x602   : > { %v2303_v16 = vpop.f32.mrb[20].mxu1 }
 0x603   : > { %v2371_v17 = vpop.f32.mrb[24].mxu0  ;;  %v7086_v19 = vpop.f32.mrb[21].mxu1 }
 0x604   : > { %v2372_v18 = vadd.f32 %v2371_v17, %v2303_v16  ;;  %v7098_v20 = vpop.f32.mrb[25].mxu0  ;;  %v2306_v21 = vpop.f32.mrb[22].mxu1  ;;  %v6386_v17 = vld [vmem:[%s9350_s19] ss:$0 sm:$0xff]  ;;  %s9355_s19 = sld [smem:[#allocation39_spill]] }
 0x605   : > { %v2374_v22 = vpop.f32.mrb[26].mxu0  ;;  %v7087_v24 = vpop.f32.mrb[23].mxu1 }
 0x606   : > { %v2375_v23 = vadd.f32 %v2374_v22, %v2306_v21  ;;  %v7099_v25 = vpop.f32.mrb[27].mxu0 }
 0x612   : > { %v2451_v26 = vpop.f32.mrb[24].mxu1 }
 0x613   : > { %v2458_v28 = vadd.f32 %v2451_v26, %v2372_v18  ;;  %v7110_v29 = vpop.f32.mrb[25].mxu1 }
 0x614   : > { %v2454_v31 = vpop.f32.mrb[26].mxu1 }
 0x615   : > { %v2467_v32 = vadd.f32 %v6364_v27, %v2458_v28  ;;  %v2459_v33 = vadd.f32 %v2454_v31, %v2375_v23  ;;  %v7111_v34 = vpop.f32.mrb[27].mxu1  ;;  %v7538_v28 = vld [vmem:[#allocation15 + $0x60] sm:$0xff]  }
 0x617   : > { %v2469_v36 = vmax.f32 %v2467_v32, 0.0  ;;  %v2468_v37 = vadd.f32 %v6364_v27, %v2459_v33 }
 0x619   : > { %2471 = vst.msk [vmem:[#allocation2 + $0x8] sm:$0xff] %vm817_vm1, %v2469_v36  ;;  %v2470_v38 = vmax.f32 %v2468_v37, 0.0  ;;  %v7539_v36 = vld [vmem:[#allocation15 + $0x68] sm:$0xff]   ;;  %v7540_v37 = vld [vmem:[#allocation15 + $0x70] sm:$0xff]  }
 0x61b   : > { %2472 = vst.msk [vmem:[#allocation2 + $0x10] sm:$0xff] %vm817_vm1, %v2470_v38  ;;  %v7541_v38 = vld [vmem:[#allocation15 + $0x78] sm:$0xff]  }
 0x620   : > { %v2488_v42 = vld [vmem:[#allocation2 + $0x8] sm:$0xff] }
 0x621   : > { %v2473_v46 = vld [vmem:[#allocation2 + $0x7] sm:$0xff] }
 0x622   : > { %v2489_v45 = vld [vmem:[#allocation2 + $0x10] sm:$0xff] }
 0x623   : > { %v2474_v47 = vld [vmem:[#allocation2 + $0xf] sm:$0xff]  ;;  %v2503_v48 = vpack.c.bf16 %v2489_v45, %v2488_v42 }
 0x624   : > { %v2487_v49 = vpack.c.bf16 %v2474_v47, %v2473_v46  ;;  %v2664_v55 = vld [vmem:[#allocation2 + $0x9] sm:$0xff]  ;;  %v2665_v56 = vld [vmem:[#allocation2 + $0x11] sm:$0xff] }
 0x625   : > { %7125 = vmatmul.mubr.msk.bf16.vlgmr.msra.gmra.mrb[28].mxu0 %vm817_vm1, %v2503_v48  ;;  %v2679_v57 = vpack.c.bf16 %v2665_v56, %v2664_v55  ;;  %v7542_v42 = vld [vmem:[#allocation15 + $0x80] sm:$0xff]   ;;  %v3122_v48 = vld [vmem:[%s9351_s21] sm:$0xff] }
 0x626   : > { %7141 = vmatmul.mubr.msk.bf16.vlgmr.msra.gmra.mrb[28].mxu1 %vm817_vm1, %v2487_v49  ;;  %7145 = vmatpush3.bf16.msra.mxu0 %v7520_v43  ;;  %v7543_v43 = vld [vmem:[#allocation15 + $0x88] sm:$0xff]  }
 0x627   : > { %7156 = vmatprep.mubr.msk.bf16.mxu0 %vm7897_vm0, %v7896_v39  ;;  %7146 = vmatprep.subr.bf16.mxu0 %v7896_v39  ;;  %v3126_v49 = vld [vmem:[%s9351_s21 + $0x20] sm:$0xff] }
 0x628   : > { %7172 = vmatprep.mubr.msk.bf16.mxu1 %vm7897_vm0, %v7896_v39  ;;  %7161 = vmatpush3.bf16.msra.mxu1 %v7526_v58  ;;  %v3131_v58 = vld [vmem:[%s9351_s21 + $0x48] sm:$0xff] }
 0x629   : > { %7162 = vmatprep.subr.bf16.mxu1 %v7896_v39 }
 0x62a   : > { %7147 = vmatpush3.bf16.msra.mxu0 %v7521_v50  ;;  %v3123_v50 = vld [vmem:[%s9351_s21 + $0x8] sm:$0xff] }
 0x62b   : > { %7148 = vmatprep.subr.bf16.mxu0 %v7896_v39 }
 0x62c   : > { %7163 = vmatpush3.bf16.msra.mxu1 %v7528_v60  ;;  %v3138_v60 = vld [vmem:[%s9351_s21 + $0x80] sm:$0xff] }
 0x62d   : > { %7164 = vmatprep.subr.bf16.mxu1 %v7896_v39 }
 0x62e   : > { %7149 = vmatpush3.bf16.msra.mxu0 %v7522_v51  ;;  %v6409_v51 = vcombine.low %v3122_v48, %v3126_v49 }
 0x62f   : > { %7150 = vmatprep.subr.bf16.mxu0 %v7896_v39 }
 0x630   : > { %7165 = vmatpush3.bf16.msra.mxu1 %v7530_v62  ;;  %v3142_v62 = vld [vmem:[%s9351_s21 + $0xa0] sm:$0xff] }
 0x631   : > { %7166 = vmatprep.subr.bf16.mxu1 %v7896_v39 }
 0x632   : > { %7151 = vmatpush3.bf16.msra.mxu0 %v7523_v52  ;;  %v3127_v52 = vld [vmem:[%s9351_s21 + $0x28] sm:$0xff] }
 0x633   : > { %7152 = vmatprep.subr.bf16.mxu0 %v7896_v39  ;;  %v6411_v55 = vcombine.low %v3123_v50, %v3127_v52  ;;  %v6412_v56 = vcombine.high %v3123_v50, %v3127_v52 }
 0x634   : > { %7167 = vmatpush3.bf16.msra.mxu1 %v7532_v0  ;;  %v3143_v0 = vld [vmem:[%s9351_s21 + $0xa8] sm:$0xff] }
 0x635   : > { %7168 = vmatprep.subr.bf16.mxu1 %v7896_v39 }
 0x636   : > { %7153 = vmatpush3.bf16.msra.mxu0 %v7524_v53  ;;  %v3130_v53 = vld [vmem:[%s9351_s21 + $0x40] sm:$0xff] }
 0x637   : > { %7154 = vmatprep.subr.bf16.mxu0 %v7896_v39 }
 0x638   : > { %7169 = vmatpush3.bf16.msra.mxu1 %v7534_v2 }
 0x639   : > { %7170 = vmatprep.subr.bf16.mxu1 %v7896_v39 }
 0x63a   : > { %7155 = vmatpush3.bf16.msra.mxu0 %v7525_v54  ;;  %v3134_v54 = vld [vmem:[%s9351_s21 + $0x60] sm:$0xff] }
 0x63b   : > { %7176 = vmatprep.subr.bf16.mxu0 %v7896_v39 }
 0x63c   : > { %7171 = vmatpush3.bf16.msra.mxu1 %v7536_v4 }
 0x63d   : > { %7157 = vmatmul.mubr.msk.bf16.vlgmr.msra.gmra.mrb[32].mxu0 %vm817_vm1, %v2679_v57  ;;  %7192 = vmatprep.subr.bf16.mxu1 %v7896_v39  ;;  %v6418_v57 = vcombine.high %v3130_v53, %v3134_v54 }
 0x63e   : > { %7188 = vmatprep.mubr.msk.bf16.mxu0 %vm7897_vm0, %v7896_v39  ;;  %7177 = vmatpush3.bf16.msra.mxu0 %v7527_v59  ;;  %v3135_v59 = vld [vmem:[%s9351_s21 + $0x68] sm:$0xff] }
 0x63f   : > { %7178 = vmatprep.subr.bf16.mxu0 %v7896_v39  ;;  %v6419_v2 = vcombine.low %v3131_v58, %v3135_v59 }
 0x642   : > { %7179 = vmatpush3.bf16.msra.mxu0 %v7529_v61  ;;  %v6420_v61 = vcombine.high %v3131_v58, %v3135_v59  ;;  %v6408_v58 = vld [vmem:[%s9352_s25] ss:$0 sm:$0xff] }
 0x643   : > { %7180 = vmatprep.subr.bf16.mxu0 %v7896_v39 }
 0x646   : > { %7181 = vmatpush3.bf16.msra.mxu0 %v7531_v63  ;;  %v3139_v63 = vld [vmem:[%s9351_s21 + $0x88] sm:$0xff] }
 0x647   : > { %7182 = vmatprep.subr.bf16.mxu0 %v7896_v39  ;;  %v6428_v4 = vcombine.high %v3139_v63, %v3143_v0 }
 0x64a   : > { %7183 = vmatpush3.bf16.msra.mxu0 %v7533_v1  ;;  %v6417_v1 = vcombine.low %v3130_v53, %v3134_v54 }
 0x64b   : > { %7184 = vmatprep.subr.bf16.mxu0 %v7896_v39 }
 0x64e   : > { %7185 = vmatpush3.bf16.msra.mxu0 %v7535_v3  ;;  %v6426_v3 = vcombine.high %v3138_v60, %v3142_v62 }
 0x64f   : > { %7186 = vmatprep.subr.bf16.mxu0 %v7896_v39 }
 0x652   : > { %7187 = vmatpush3.bf16.msra.mxu0 %v7537_v5  ;;  %v3146_v5 = vld [vmem:[%s9351_s21 + $0xc0] sm:$0xff] }
 0x6f8   : > { %v2577_v6 = vpop.f32.mrb[28].mxu0 }
 0x6f9   : > { %v2657_v7 = vpop.f32.mrb[28].mxu1  ;;  %v7126_v9 = vpop.f32.mrb[29].mxu0 }
 0x6fa   : > { %v2658_v8 = vadd.f32 %v2657_v7, %v2577_v6  ;;  %v7142_v10 = vpop.f32.mrb[29].mxu1  ;;  %v2580_v11 = vpop.f32.mrb[30].mxu0  ;;  %v3150_v6 = vld [vmem:[%s9351_s21 + $0xe0] sm:$0xff]  ;;  %v3147_v7 = vld [vmem:[%s9351_s21 + $0xc8] sm:$0xff]  ;;  %v6425_v9 = vcombine.low %v3138_v60, %v3142_v62  ;;  %v3132_v62 = vld [vmem:[%s9351_s21 + $0x50] sm:$0xff] }
 0x6fb   : > { %v2660_v12 = vpop.f32.mrb[30].mxu1  ;;  %v7127_v14 = vpop.f32.mrb[31].mxu0  ;;  %v6427_v10 = vcombine.low %v3139_v63, %v3143_v0  ;;  %v3136_v63 = vld [vmem:[%s9351_s21 + $0x70] sm:$0xff]  ;;  %v3133_v0 = vld [vmem:[%s9351_s21 + $0x58] sm:$0xff] }
 0x6fc   : > { %v2661_v13 = vadd.f32 %v2660_v12, %v2580_v11  ;;  %v7143_v15 = vpop.f32.mrb[31].mxu1  ;;  %v6434_v11 = vcombine.high %v3146_v5, %v3150_v6 }
 0x6fd   : > { %v3154_v15 = vld [vmem:[%s9351_s21 + $0x100] sm:$0xff] }
 0x710   : > { %v2753_v16 = vpop.f32.mrb[32].mxu0 }
 0x711   : > { %v2760_v18 = vadd.f32 %v2753_v16, %v2658_v8  ;;  %v7158_v19 = vpop.f32.mrb[33].mxu0  ;;  %v3151_v8 = vld [vmem:[%s9351_s21 + $0xe8] sm:$0xff]  ;;  %v3158_v16 = vld [vmem:[%s9351_s21 + $0x120] sm:$0xff] }
 0x712   : > { %v2756_v20 = vpop.f32.mrb[34].mxu0  ;;  %v6436_v12 = vcombine.high %v3147_v7, %v3151_v8  ;;  %v6435_v14 = vcombine.low %v3147_v7, %v3151_v8  ;;  %v3159_v19 = vld [vmem:[%s9351_s21 + $0x128] sm:$0xff]  ;;  %v3140_v7 = vld [vmem:[%s9351_s21 + $0x90] sm:$0xff] }
 0x713   : > { %v2769_v21 = vadd.f32 %v6386_v17, %v2760_v18  ;;  %v2761_v22 = vadd.f32 %v2756_v20, %v2661_v13  ;;  %v7159_v23 = vpop.f32.mrb[35].mxu0  ;;  %v6433_v13 = vcombine.low %v3146_v5, %v3150_v6  ;;  %v6442_v18 = vcombine.high %v3154_v15, %v3158_v16  ;;  %v3144_v8 = vld [vmem:[%s9351_s21 + $0xb0] sm:$0xff] }
 0x714   : > { %v6441_v20 = vcombine.low %v3154_v15, %v3158_v16  ;;  %v3162_v23 = vld [vmem:[%s9351_s21 + $0x140] sm:$0xff]  ;;  %v6422_v5 = vcombine.high %v3132_v62, %v3136_v63  ;;  %v3148_v15 = vld [vmem:[%s9351_s21 + $0xd0] sm:$0xff] }
 0x715   : > { %v2771_v24 = vmax.f32 %v2769_v21, 0.0  ;;  %v2770_v25 = vadd.f32 %v6386_v17, %v2761_v22  ;;  %v3155_v17 = vld [vmem:[%s9351_s21 + $0x108] sm:$0xff]  ;;  %v3152_v16 = vld [vmem:[%s9351_s21 + $0xf0] sm:$0xff] }
 0x716   : > { %v6443_v21 = vcombine.low %v3155_v17, %v3159_v19  ;;  %v6444_v22 = vcombine.high %v3155_v17, %v3159_v19  ;;  %v3149_v17 = vld [vmem:[%s9351_s21 + $0xd8] sm:$0xff]  ;;  %v6429_v19 = vcombine.low %v3140_v7, %v3144_v8 }
 0x717   : > { %2773 = vst.msk [vmem:[#allocation2 + $0x8] sm:$0xff] %vm817_vm1, %v2771_v24  ;;  %v2772_v26 = vmax.f32 %v2770_v25, 0.0  ;;  %v3166_v24 = vld [vmem:[%s9351_s21 + $0x160] sm:$0xff] }
 0x718   : > { %v6450_v25 = vcombine.high %v3162_v23, %v3166_v24 }
 0x719   : > { %2774 = vst.msk [vmem:[#allocation2 + $0x10] sm:$0xff] %vm817_vm1, %v2772_v26  ;;  %v3163_v26 = vld [vmem:[%s9351_s21 + $0x148] sm:$0xff] }
 0x71e   : > { %v2790_v27 = vld [vmem:[#allocation2 + $0x8] sm:$0xff] }
 0x71f   : > { %v2775_v31 = vld [vmem:[#allocation2 + $0x3] sm:$0xff] }
 0x720   : > { %v2791_v29 = vld [vmem:[#allocation2 + $0x10] sm:$0xff] }
 0x721   : > { %v2776_v32 = vld [vmem:[#allocation2 + $0xb] sm:$0xff]  ;;  %v2805_v33 = vpack.c.bf16 %v2791_v29, %v2790_v27  ;;  %v2967_v46 = vld [vmem:[#allocation2 + $0x15] sm:$0xff] }
 0x722   : > { %v2789_v34 = vpack.c.bf16 %v2776_v32, %v2775_v31  ;;  %v2966_v45 = vld [vmem:[#allocation2 + $0xd] sm:$0xff] }
 0x723   : > { %7173 = vmatmul.mubr.msk.bf16.vlgmr.msra.gmra.mrb[32].mxu1 %vm817_vm1, %v2805_v33  ;;  %v2981_v47 = vpack.c.bf16 %v2967_v46, %v2966_v45  ;;  %v3167_v27 = vld [vmem:[%s9351_s21 + $0x168] sm:$0xff]  ;;  %v3124_v32 = vld [vmem:[%s9351_s21 + $0x10] sm:$0xff]  ;;  %v7898_v45 = vmov 0  }
 0x724   : > { %7189 = vmatmul.mubr.msk.bf16.vlgmr.msra.gmra.mrb[36].mxu0 %vm817_vm1, %v2789_v34  ;;  %7193 = vmatpush3.bf16.msra.mxu1 %v7538_v28  ;;  %v6449_v28 = vcombine.low %v3162_v23, %v3166_v24  ;;  %v6451_v29 = vcombine.low %v3163_v26, %v3167_v27  ;;  %v6452_v31 = vcombine.high %v3163_v26, %v3167_v27  ;;  %v3128_v33 = vld [vmem:[%s9351_s21 + $0x30] sm:$0xff]  ;;  %v3125_v34 = vld [vmem:[%s9351_s21 + $0x18] sm:$0xff] }
 0x725   : > { %7204 = vmatprep.mubr.msk.bf16.mxu1 %vm7897_vm0, %v7896_v39  ;;  %7194 = vmatprep.subr.bf16.mxu1 %v7896_v39  ;;  %v3156_v23 = vld [vmem:[%s9351_s21 + $0x110] sm:$0xff]  ;;  %v3161_v26 = vld [vmem:[%s9351_s21 + $0x138] sm:$0xff]  ;;  %v6437_v27 = vcombine.low %v3148_v15, %v3152_v16 }
 0x726   : > { %3446 = vmatprep.mubr.bf16.mxu0 %v7898_v45  ;;  %v3160_v24 = vld [vmem:[%s9351_s21 + $0x130] sm:$0xff] }
 0x728   : > { %7195 = vmatpush3.bf16.msra.mxu1 %v7539_v36  ;;  %v6414_v36 = vcombine.high %v3124_v32, %v3128_v33 }
 0x729   : > { %7196 = vmatprep.subr.bf16.mxu1 %v7896_v39 }
 0x72c   : > { %7197 = vmatpush3.bf16.msra.mxu1 %v7540_v37  ;;  %v3129_v37 = vld [vmem:[%s9351_s21 + $0x38] sm:$0xff] }
 0x72d   : > { %7198 = vmatprep.subr.bf16.mxu1 %v7896_v39 }
 0x730   : > { %7199 = vmatpush3.bf16.msra.mxu1 %v7541_v38  ;;  %v6413_v38 = vcombine.low %v3124_v32, %v3128_v33  ;;  %v3164_v32 = vld [vmem:[%s9351_s21 + $0x150] sm:$0xff] }
 0x731   : > { %7200 = vmatprep.subr.bf16.mxu1 %v7896_v39  ;;  %v3168_v33 = vld [vmem:[%s9351_s21 + $0x170] sm:$0xff] }
 0x734   : > { %7201 = vmatpush3.bf16.msra.mxu1 %v7542_v42  ;;  %v6415_v42 = vcombine.low %v3125_v34, %v3129_v37 }
 0x735   : > { %7202 = vmatprep.subr.bf16.mxu1 %v7896_v39  ;;  %v6410_v39 = vcombine.high %v3122_v48, %v3126_v49 }
 0x737   : > { %3414 = vmatprep.subr.bf16.mxu0 %v6410_v39 }
 0x738   : > { %7203 = vmatpush3.bf16.msra.mxu1 %v7543_v43  ;;  %3415 = vmatpush1.bf16.msra.mxu0 %v6409_v51  ;;  %v6416_v43 = vcombine.high %v3125_v34, %v3129_v37  ;;  %v3165_v34 = vld [vmem:[%s9351_s21 + $0x158] sm:$0xff]  ;;  %v6445_v37 = vcombine.low %v3156_v23, %v3160_v24 }
 0x739   : > { %3457 = vmatprep.subr.bf16.mxu1 %v6412_v56  ;;  %3416 = vmatprep.subr.bf16.mxu0 %v6418_v57 }
 0x73b   : > { %7205 = vmatmul.mubr.msk.bf16.vlgmr.msra.gmra.mrb[36].mxu1 %vm817_vm1, %v2981_v47 }
 0x73c   : > { %3458 = vmatpush1.bf16.msra.mxu1 %v6411_v55  ;;  %3417 = vmatpush1.bf16.msra.mxu0 %v6417_v1  ;;  %v3137_v1 = vld [vmem:[%s9351_s21 + $0x78] sm:$0xff] }
 0x73d   : > { %3459 = vmatprep.subr.bf16.mxu1 %v6420_v61  ;;  %3418 = vmatprep.subr.bf16.mxu0 %v6426_v3  ;;  %v6424_v6 = vcombine.high %v3133_v0, %v3137_v1 }
 0x73e   : > { %3489 = vmatprep.mubr.bf16.mxu1 %v7898_v45 }
 0x740   : > { %3460 = vmatpush1.bf16.msra.mxu1 %v6419_v2  ;;  %3419 = vmatpush1.bf16.msra.mxu0 %v6425_v9  ;;  %v3141_v9 = vld [vmem:[%s9351_s21 + $0x98] sm:$0xff] }
 0x741   : > { %3461 = vmatprep.subr.bf16.mxu1 %v6428_v4  ;;  %3420 = vmatprep.subr.bf16.mxu0 %v6434_v11  ;;  %v6421_v11 = vcombine.low %v3132_v62, %v3136_v63  ;;  %v3093_v62 = vld [vmem:[%s9353_s26 + $0xa0] sm:$0xff]  ;;  %v3090_v63 = vld [vmem:[%s9353_s26 + $0x88] sm:$0xff] }
 0x744   : > { %3462 = vmatpush1.bf16.msra.mxu1 %v6427_v10  ;;  %3421 = vmatpush1.bf16.msra.mxu0 %v6433_v13  ;;  %v3145_v10 = vld [vmem:[%s9351_s21 + $0xb8] sm:$0xff]  ;;  %v6430_v13 = vcombine.high %v3140_v7, %v3144_v8  ;;  %v3101_v7 = vld [vmem:[%s9353_s26 + $0xe0] sm:$0xff]  ;;  %v3102_v8 = vld [vmem:[%s9353_s26 + $0xe8] sm:$0xff] }
 0x745   : > { %3463 = vmatprep.subr.bf16.mxu1 %v6436_v12  ;;  %3422 = vmatprep.subr.bf16.mxu0 %v6442_v18  ;;  %v6423_v12 = vcombine.low %v3133_v0, %v3137_v1  ;;  %v3153_v18 = vld [vmem:[%s9351_s21 + $0xf8] sm:$0xff]  ;;  %v3094_v0 = vld [vmem:[%s9353_s26 + $0xa8] sm:$0xff] }
 0x748   : > { %3464 = vmatpush1.bf16.msra.mxu1 %v6435_v14  ;;  %3423 = vmatpush1.bf16.msra.mxu0 %v6441_v20  ;;  %v6432_v14 = vcombine.high %v3141_v9, %v3145_v10  ;;  %v6431_v20 = vcombine.low %v3141_v9, %v3145_v10  ;;  %v6479_v10 = vcombine.low %v3090_v63, %v3094_v0 }
 0x749   : > { %3465 = vmatprep.subr.bf16.mxu1 %v6444_v22  ;;  %3424 = vmatprep.subr.bf16.mxu0 %v6450_v25  ;;  %v6440_v22 = vcombine.high %v3149_v17, %v3153_v18  ;;  %v3157_v25 = vld [vmem:[%s9351_s21 + $0x118] sm:$0xff] }
 0x74c   : > { %3466 = vmatpush1.bf16.msra.mxu1 %v6443_v21  ;;  %3425 = vmatpush1.bf16.msra.mxu0 %v6449_v28  ;;  %v6438_v21 = vcombine.high %v3148_v15, %v3152_v16  ;;  %v6439_v28 = vcombine.low %v3149_v17, %v3153_v18  ;;  %v3106_v15 = vld [vmem:[%s9353_s26 + $0x108] sm:$0xff] }
 0x74d   : > { %3467 = vmatprep.subr.bf16.mxu1 %v6452_v31  ;;  %3500 = vmatprep.subr.bf16.mxu0 %v6414_v36  ;;  %v6448_v31 = vcombine.high %v3157_v25, %v3161_v26  ;;  %v3169_v36 = vld [vmem:[%s9351_s21 + $0x178] sm:$0xff]  ;;  %v3110_v16 = vld [vmem:[%s9353_s26 + $0x128] sm:$0xff] }
 0x750   : > { %3468 = vmatpush1.bf16.msra.mxu1 %v6451_v29  ;;  %v6446_v29 = vcombine.high %v3156_v23, %v3160_v24  ;;  %v3114_v23 = vld [vmem:[%s9353_s26 + $0x148] sm:$0xff] }
 0x751   : > { %3543 = vmatprep.subr.bf16.mxu1 %v6416_v43  ;;  %v6456_v43 = vcombine.high %v3165_v34, %v3169_v36  ;;  %v3118_v24 = vld [vmem:[%s9353_s26 + $0x168] sm:$0xff] }
 0x7f6   : > { %v2879_v46 = vpop.f32.mrb[32].mxu1 }
 0x7f7   : > { %v2959_v47 = vpop.f32.mrb[36].mxu0  ;;  %v7174_v49 = vpop.f32.mrb[33].mxu1 }
 0x7f8   : > { %v2960_v48 = vadd.f32 %v2959_v47, %v2879_v46  ;;  %v7190_v50 = vpop.f32.mrb[37].mxu0  ;;  %v2882_v51 = vpop.f32.mrb[34].mxu1  ;;  %v3073_v46 = vld [vmem:[%s9353_s26] sm:$0xff]  ;;  %v3078_v49 = vld [vmem:[%s9353_s26 + $0x28] sm:$0xff] }
 0x7f9   : > { %v2962_v39 = vpop.f32.mrb[38].mxu0  ;;  %v7175_v53 = vpop.f32.mrb[35].mxu1  ;;  %v3077_v47 = vld [vmem:[%s9353_s26 + $0x20] sm:$0xff]  ;;  %v6453_v50 = vcombine.low %v3164_v32, %v3168_v33 }
 0x7fa   : > { %v2963_v52 = vadd.f32 %v2962_v39, %v2882_v51  ;;  %v7191_v54 = vpop.f32.mrb[39].mxu0  ;;  %v6455_v51 = vcombine.low %v3165_v34, %v3169_v36  ;;  %v6462_v39 = vcombine.high %v3073_v46, %v3077_v47  ;;  %v3081_v53 = vld [vmem:[%s9353_s26 + $0x40] sm:$0xff]  ;;  %v6503_v36 = vcombine.low %v3114_v23, %v3118_v24 }
 0x7fb   : > { %v3085_v54 = vld [vmem:[%s9353_s26 + $0x60] sm:$0xff] }
 0x7fc   : > { %v6469_v1 = vcombine.low %v3081_v53, %v3085_v54 }
 0x80e   : > { %v3055_v55 = vpop.f32.mrb[36].mxu1 }
 0x80f   : > { %v3062_v56 = vadd.f32 %v3055_v55, %v2960_v48  ;;  %v7206_v57 = vpop.f32.mrb[37].mxu1  ;;  %v3074_v48 = vld [vmem:[%s9353_s26 + $0x8] sm:$0xff] }
 0x810   : > { %v3058_v59 = vpop.f32.mrb[38].mxu1  ;;  %v3082_v55 = vld [vmem:[%s9353_s26 + $0x48] sm:$0xff]  ;;  %v6461_v57 = vcombine.low %v3073_v46, %v3077_v47  ;;  %v3084_v46 = vld [vmem:[%s9353_s26 + $0x58] sm:$0xff] }
 0x811   : > { %v3063_v60 = vadd.f32 %v3058_v59, %v2963_v52  ;;  %v7207_v61 = vpop.f32.mrb[39].mxu1  ;;  %v3071_v2 = vadd.f32 %v6408_v58, %v3062_v56  ;;  %v6464_v52 = vcombine.high %v3074_v48, %v3078_v49  ;;  %v3086_v56 = vld [vmem:[%s9353_s26 + $0x68] sm:$0xff]  ;;  %v6470_v59 = vcombine.high %v3081_v53, %v3085_v54  ;;  %v3088_v47 = vld [vmem:[%s9353_s26 + $0x78] sm:$0xff] }
 0x812   : > { %v3089_v61 = vld [vmem:[%s9353_s26 + $0x80] sm:$0xff]  ;;  %v3092_v53 = vld [vmem:[%s9353_s26 + $0x98] sm:$0xff] }
 0x813   : > { %v3072_v3 = vadd.f32 %v6408_v58, %v3063_v60  ;;  %v6463_v58 = vcombine.low %v3074_v48, %v3078_v49  ;;  %v6472_v60 = vcombine.high %v3082_v55, %v3086_v56  ;;  %v6477_v9 = vcombine.low %v3089_v61, %v3093_v62  ;;  %v3096_v54 = vld [vmem:[%s9353_s26 + $0xb8] sm:$0xff] }
 0x815   : > { %v8850_v4 = vpack.c.bf16 %v3072_v3, %v3071_v2  ;;  %v6471_v2 = vcombine.low %v3082_v55, %v3086_v56  ;;  %v6478_v3 = vcombine.high %v3089_v61, %v3093_v62  ;;  %v6475_v56 = vcombine.low %v3084_v46, %v3088_v47  ;;  %v3100_v61 = vld [vmem:[%s9353_s26 + $0xd8] sm:$0xff] }
 0x816   : > { %v3104_v62 = vld [vmem:[%s9353_s26 + $0xf8] sm:$0xff] }
 0x817   : > { %6457 = vmatmul.mubr.msk.bf16.vlgmr.msra.gmra.mrb[40].mxu0 %vm817_vm1, %v8850_v4  ;;  %6458 = vmatmul.mubr.msk.bf16.vlgmr.msra.gmra.mrb[40].mxu1 %vm817_vm1, %v8850_v4 }
 0x818   : > { %3501 = vmatpush1.bf16.msra.mxu0 %v6413_v38  ;;  %3544 = vmatpush1.bf16.msra.mxu1 %v6415_v42  ;;  %v6447_v38 = vcombine.low %v3157_v25, %v3161_v26  ;;  %v6454_v42 = vcombine.high %v3164_v32, %v3168_v33  ;;  %v6495_v26 = vcombine.low %v3106_v15, %v3110_v16  ;;  %v3076_v32 = vld [vmem:[%s9353_s26 + $0x18] sm:$0xff] }
 0x819   : > { %3502 = vmatprep.subr.bf16.mxu0 %v6422_v5  ;;  %3545 = vmatprep.subr.bf16.mxu1 %v6424_v6  ;;  %v6480_v5 = vcombine.high %v3090_v63, %v3094_v0  ;;  %v3097_v6 = vld [vmem:[%s9353_s26 + $0xc0] sm:$0xff]  ;;  %v3080_v33 = vld [vmem:[%s9353_s26 + $0x38] sm:$0xff]  ;;  %v6483_v0 = vcombine.low %v3092_v53, %v3096_v54 }
 0x81a   : > { %3532 = vmatprep.mubr.bf16.mxu0 %v7898_v45  ;;  %3575 = vmatprep.mubr.bf16.mxu1 %v7898_v45  ;;  %v6485_v17 = vcombine.low %v3097_v6, %v3101_v7  ;;  %v6467_v49 = vcombine.low %v3076_v32, %v3080_v33 }
 0x81c   : > { %3503 = vmatpush1.bf16.msra.mxu0 %v6421_v11  ;;  %3546 = vmatpush1.bf16.msra.mxu1 %v6423_v12  ;;  %v6486_v11 = vcombine.high %v3097_v6, %v3101_v7  ;;  %v3112_v6 = vld [vmem:[%s9353_s26 + $0x138] sm:$0xff] }
 0x81d   : > { %3504 = vmatprep.subr.bf16.mxu0 %v6430_v13  ;;  %3547 = vmatprep.subr.bf16.mxu1 %v6432_v14  ;;  %v3105_v13 = vld [vmem:[%s9353_s26 + $0x100] sm:$0xff] }
 0x81e   : > { %v3109_v14 = vld [vmem:[%s9353_s26 + $0x120] sm:$0xff] }
 0x81f   : > { %v6493_v25 = vcombine.low %v3105_v13, %v3109_v14 }
 0x820   : > { %3505 = vmatpush1.bf16.msra.mxu0 %v6429_v19  ;;  %3548 = vmatpush1.bf16.msra.mxu1 %v6431_v20  ;;  %v6494_v19 = vcombine.high %v3105_v13, %v3109_v14  ;;  %v6496_v20 = vcombine.high %v3106_v15, %v3110_v16  ;;  %v3120_v13 = vld [vmem:[%s9353_s26 + $0x178] sm:$0xff] }
 0x821   : > { %3506 = vmatprep.subr.bf16.mxu0 %v6438_v21  ;;  %3549 = vmatprep.subr.bf16.mxu1 %v6440_v22  ;;  %v3113_v21 = vld [vmem:[%s9353_s26 + $0x140] sm:$0xff] }
 0x822   : > { %v3117_v22 = vld [vmem:[%s9353_s26 + $0x160] sm:$0xff] }
 0x823   : > { %v6501_v34 = vcombine.low %v3113_v21, %v3117_v22 }
 0x824   : > { %3507 = vmatpush1.bf16.msra.mxu0 %v6437_v27  ;;  %3550 = vmatpush1.bf16.msra.mxu1 %v6439_v28  ;;  %v6502_v27 = vcombine.high %v3113_v21, %v3117_v22  ;;  %v6504_v28 = vcombine.high %v3114_v23, %v3118_v24  ;;  %v4064_v21 = vld [vmem:[#allocation17 + $0x28] sm:$0xff] }
 0x825   : > { %3508 = vmatprep.subr.bf16.mxu0 %v6446_v29  ;;  %3551 = vmatprep.subr.bf16.mxu1 %v6448_v31  ;;  %v3075_v29 = vld [vmem:[%s9353_s26 + $0x10] sm:$0xff] }
 0x826   : > { %v3079_v31 = vld [vmem:[%s9353_s26 + $0x30] sm:$0xff] }
 0x827   : > { %v6465_v48 = vcombine.low %v3075_v29, %v3079_v31 }
 0x828   : > { %3509 = vmatpush1.bf16.msra.mxu0 %v6445_v37  ;;  %3552 = vmatpush1.bf16.msra.mxu1 %v6447_v38  ;;  %v6466_v37 = vcombine.high %v3075_v29, %v3079_v31  ;;  %v6468_v38 = vcombine.high %v3076_v32, %v3080_v33  ;;  %v4072_v29 = vld [vmem:[#allocation17 + $0x68] sm:$0xff] }
 0x829   : > { %3510 = vmatprep.subr.bf16.mxu0 %v6454_v42  ;;  %3553 = vmatprep.subr.bf16.mxu1 %v6456_v43  ;;  %v3083_v42 = vld [vmem:[%s9353_s26 + $0x50] sm:$0xff] }
 0x82a   : > { %v3087_v43 = vld [vmem:[%s9353_s26 + $0x70] sm:$0xff] }
 0x82b   : > { %v6473_v55 = vcombine.low %v3083_v42, %v3087_v43 }
 0x82c   : > { %3511 = vmatpush1.bf16.msra.mxu0 %v6453_v50  ;;  %3554 = vmatpush1.bf16.msra.mxu1 %v6455_v51  ;;  %v6474_v50 = vcombine.high %v3083_v42, %v3087_v43  ;;  %v6476_v51 = vcombine.high %v3084_v46, %v3088_v47  ;;  %v4080_v42 = vld [vmem:[#allocation17 + $0xa8] sm:$0xff] }
 0x82d   : > { %3829 = vmatprep.subr.bf16.mxu0 %v6462_v39  ;;  %3872 = vmatprep.subr.bf16.mxu1 %v6464_v52  ;;  %v3091_v39 = vld [vmem:[%s9353_s26 + $0x90] sm:$0xff] }
 0x82e   : > { %v3095_v52 = vld [vmem:[%s9353_s26 + $0xb0] sm:$0xff] }
 0x82f   : > { %6459 = vmatmul.mubr.msk.bf16.vlgmr.msra.gmra.mrb[44].mxu0 %vm817_vm1, %v8850_v4  ;;  %6460 = vmatmul.mubr.msk.bf16.vlgmr.msra.gmra.mrb[44].mxu1 %vm817_vm1, %v8850_v4  ;;  %v3098_v4 = vld [vmem:[%s9353_s26 + $0xc8] sm:$0xff]  ;;  %v6481_v63 = vcombine.low %v3091_v39, %v3095_v52 }
 0x830   : > { %3830 = vmatpush1.bf16.msra.mxu0 %v6461_v57  ;;  %3873 = vmatpush1.bf16.msra.mxu1 %v6463_v58  ;;  %v6488_v12 = vcombine.high %v3098_v4, %v3102_v8  ;;  %v6487_v18 = vcombine.low %v3098_v4, %v3102_v8  ;;  %v6482_v57 = vcombine.high %v3091_v39, %v3095_v52  ;;  %v4088_v39 = vld [vmem:[#allocation17 + $0xe8] sm:$0xff] }
 0x831   : > { %3831 = vmatprep.subr.bf16.mxu0 %v6470_v59  ;;  %3874 = vmatprep.subr.bf16.mxu1 %v6472_v60  ;;  %v6484_v58 = vcombine.high %v3092_v53, %v3096_v54  ;;  %v3099_v59 = vld [vmem:[%s9353_s26 + $0xd0] sm:$0xff]  ;;  %v6491_v4 = vcombine.low %v3100_v61, %v3104_v62 }
 0x832   : > { %3861 = vmatprep.mubr.bf16.mxu0 %v7898_v45  ;;  %3904 = vmatprep.mubr.bf16.mxu1 %v7898_v45  ;;  %v3103_v60 = vld [vmem:[%s9353_s26 + $0xf0] sm:$0xff] }
 0x833   : > { %v6489_v7 = vcombine.low %v3099_v59, %v3103_v60 }
 0x834   : > { %3832 = vmatpush1.bf16.msra.mxu0 %v6469_v1  ;;  %3875 = vmatpush1.bf16.msra.mxu1 %v6471_v2  ;;  %v6490_v1 = vcombine.high %v3099_v59, %v3103_v60  ;;  %v6492_v2 = vcombine.high %v3100_v61, %v3104_v62 }
 0x835   : > { %3833 = vmatprep.subr.bf16.mxu0 %v6478_v3  ;;  %3876 = vmatprep.subr.bf16.mxu1 %v6480_v5  ;;  %v3107_v3 = vld [vmem:[%s9353_s26 + $0x110] sm:$0xff] }
 0x836   : > { %v3111_v5 = vld [vmem:[%s9353_s26 + $0x130] sm:$0xff] }
 0x837   : > { %v6498_v8 = vcombine.high %v3107_v3, %v3111_v5  ;;  %v6497_v14 = vcombine.low %v3107_v3, %v3111_v5 }
 0x838   : > { %3834 = vmatpush1.bf16.msra.mxu0 %v6477_v9  ;;  %3877 = vmatpush1.bf16.msra.mxu1 %v6479_v10  ;;  %v3115_v10 = vld [vmem:[%s9353_s26 + $0x150] sm:$0xff] }
 0x839   : > { %3835 = vmatprep.subr.bf16.mxu0 %v6486_v11  ;;  %3878 = vmatprep.subr.bf16.mxu1 %v6488_v12  ;;  %v3119_v11 = vld [vmem:[%s9353_s26 + $0x170] sm:$0xff]  ;;  %v3116_v12 = vld [vmem:[%s9353_s26 + $0x158] sm:$0xff] }
 0x83a   : > { %v6506_v16 = vcombine.high %v3115_v10, %v3119_v11  ;;  %v6505_v22 = vcombine.low %v3115_v10, %v3119_v11  ;;  %v6507_v23 = vcombine.low %v3116_v12, %v3120_v13 }
 0x83c   : > { %3836 = vmatpush1.bf16.msra.mxu0 %v6485_v17  ;;  %3879 = vmatpush1.bf16.msra.mxu1 %v6487_v18  ;;  %v6508_v17 = vcombine.high %v3116_v12, %v3120_v13  ;;  %v4059_v18 = vld [vmem:[#allocation17] sm:$0xff] }
 0x83d   : > { %3837 = vmatprep.subr.bf16.mxu0 %v6494_v19  ;;  %3880 = vmatprep.subr.bf16.mxu1 %v6496_v20  ;;  %v4063_v19 = vld [vmem:[#allocation17 + $0x20] sm:$0xff]  ;;  %v4060_v20 = vld [vmem:[#allocation17 + $0x8] sm:$0xff] }
 0x83e   : > { %v6514_v24 = vcombine.high %v4059_v18, %v4063_v19  ;;  %v6513_v31 = vcombine.low %v4059_v18, %v4063_v19  ;;  %v6515_v32 = vcombine.low %v4060_v20, %v4064_v21 }
 0x840   : > { %3838 = vmatpush1.bf16.msra.mxu0 %v6493_v25  ;;  %3881 = vmatpush1.bf16.msra.mxu1 %v6495_v26  ;;  %v6516_v25 = vcombine.high %v4060_v20, %v4064_v21  ;;  %v4067_v26 = vld [vmem:[#allocation17 + $0x40] sm:$0xff] }
 0x841   : > { %3839 = vmatprep.subr.bf16.mxu0 %v6502_v27  ;;  %3882 = vmatprep.subr.bf16.mxu1 %v6504_v28  ;;  %v4071_v27 = vld [vmem:[#allocation17 + $0x60] sm:$0xff]  ;;  %v4068_v28 = vld [vmem:[#allocation17 + $0x48] sm:$0xff] }
 0x842   : > { %v6522_v33 = vcombine.high %v4067_v26, %v4071_v27  ;;  %v6521_v43 = vcombine.low %v4067_v26, %v4071_v27  ;;  %v6523_v46 = vcombine.low %v4068_v28, %v4072_v29 }
 0x844   : > { %3840 = vmatpush1.bf16.msra.mxu0 %v6501_v34  ;;  %3883 = vmatpush1.bf16.msra.mxu1 %v6503_v36  ;;  %v6524_v34 = vcombine.high %v4068_v28, %v4072_v29  ;;  %v4075_v36 = vld [vmem:[#allocation17 + $0x80] sm:$0xff] }
 0x845   : > { %3915 = vmatprep.subr.bf16.mxu0 %v6466_v37  ;;  %3958 = vmatprep.subr.bf16.mxu1 %v6468_v38  ;;  %v4079_v37 = vld [vmem:[#allocation17 + $0xa0] sm:$0xff]  ;;  %v4076_v38 = vld [vmem:[#allocation17 + $0x88] sm:$0xff] }
 0x846   : > { %v6530_v47 = vcombine.high %v4075_v36, %v4079_v37  ;;  %v6529_v52 = vcombine.low %v4075_v36, %v4079_v37 }
 0x847   : > { %6509 = vmatmul.mubr.msk.bf16.vlgmr.msra.gmra.mrb[40].mxu0 %vm817_vm1, %v8671_v30  ;;  %6510 = vmatmul.mubr.msk.bf16.vlgmr.msra.gmra.mrb[40].mxu1 %vm817_vm1, %v8671_v30 }
 0x848   : > { %3916 = vmatpush1.bf16.msra.mxu0 %v6465_v48  ;;  %3959 = vmatpush1.bf16.msra.mxu1 %v6467_v49  ;;  %v6532_v48 = vcombine.high %v4076_v38, %v4080_v42  ;;  %v4083_v49 = vld [vmem:[#allocation17 + $0xc0] sm:$0xff] }
 0x849   : > { %3917 = vmatprep.subr.bf16.mxu0 %v6474_v50  ;;  %3960 = vmatprep.subr.bf16.mxu1 %v6476_v51  ;;  %v4087_v50 = vld [vmem:[#allocation17 + $0xe0] sm:$0xff]  ;;  %v4084_v51 = vld [vmem:[#allocation17 + $0xc8] sm:$0xff] }
 0x84a   : > { %3947 = vmatprep.mubr.bf16.mxu0 %v7898_v45  ;;  %3990 = vmatprep.mubr.bf16.mxu1 %v7898_v45  ;;  %v3108_v45 = vld [vmem:[%s9353_s26 + $0x118] sm:$0xff]  ;;  %v6538_v53 = vcombine.high %v4083_v49, %v4087_v50  ;;  %v6540_v54 = vcombine.high %v4084_v51, %v4088_v39  ;;  %v6537_v59 = vcombine.low %v4083_v49, %v4087_v50 }
 0x84b   : > { %v6500_v9 = vcombine.high %v3108_v45, %v3112_v6  ;;  %v6499_v15 = vcombine.low %v3108_v45, %v3112_v6  ;;  %v6539_v60 = vcombine.low %v4084_v51, %v4088_v39 }
 0x84c   : > { %3918 = vmatpush1.bf16.msra.mxu0 %v6473_v55  ;;  %3961 = vmatpush1.bf16.msra.mxu1 %v6475_v56  ;;  %v4091_v55 = vld [vmem:[#allocation17 + $0x100] sm:$0xff] }
 0x84d   : > { %3919 = vmatprep.subr.bf16.mxu0 %v6482_v57  ;;  %3962 = vmatprep.subr.bf16.mxu1 %v6484_v58  ;;  %v4095_v56 = vld [vmem:[#allocation17 + $0x120] sm:$0xff]  ;;  %v4092_v57 = vld [vmem:[#allocation17 + $0x108] sm:$0xff] }
 0x84e   : > { %v4096_v58 = vld [vmem:[#allocation17 + $0x128] sm:$0xff]  ;;  %v6546_v61 = vcombine.high %v4091_v55, %v4095_v56  ;;  %v6545_v3 = vcombine.low %v4091_v55, %v4095_v56 }
 0x84f   : > { %v6548_v62 = vcombine.high %v4092_v57, %v4096_v58  ;;  %v6547_v5 = vcombine.low %v4092_v57, %v4096_v58 }
 0x850   : > { %3920 = vmatpush1.bf16.msra.mxu0 %v6481_v63  ;;  %3963 = vmatpush1.bf16.msra.mxu1 %v6483_v0  ;;  %v4099_v63 = vld [vmem:[#allocation17 + $0x140] sm:$0xff] }
 0x851   : > { %3921 = vmatprep.subr.bf16.mxu0 %v6490_v1  ;;  %3964 = vmatprep.subr.bf16.mxu1 %v6492_v2  ;;  %v4103_v0 = vld [vmem:[#allocation17 + $0x160] sm:$0xff]  ;;  %v4100_v1 = vld [vmem:[#allocation17 + $0x148] sm:$0xff] }
 0x852   : > { %v4104_v2 = vld [vmem:[#allocation17 + $0x168] sm:$0xff]  ;;  %v6554_v45 = vcombine.high %v4099_v63, %v4103_v0  ;;  %v6553_v10 = vcombine.low %v4099_v63, %v4103_v0 }
 0x853   : > { %v6556_v6 = vcombine.high %v4100_v1, %v4104_v2  ;;  %v6555_v11 = vcombine.low %v4100_v1, %v4104_v2 }
 0x854   : > { %3922 = vmatpush1.bf16.msra.mxu0 %v6489_v7  ;;  %3965 = vmatpush1.bf16.msra.mxu1 %v6491_v4  ;;  %v4107_v7 = vld [vmem:[#allocation17 + $0x180] sm:$0xff] }
 0x855   : > { %3923 = vmatprep.subr.bf16.mxu0 %v6498_v8  ;;  %3966 = vmatprep.subr.bf16.mxu1 %v6500_v9  ;;  %v4111_v4 = vld [vmem:[#allocation17 + $0x1a0] sm:$0xff]  ;;  %v4108_v8 = vld [vmem:[#allocation17 + $0x188] sm:$0xff] }
 0x856   : > { %v4112_v9 = vld [vmem:[#allocation17 + $0x1a8] sm:$0xff]  ;;  %v6562_v12 = vcombine.high %v4107_v7, %v4111_v4  ;;  %v6561_v18 = vcombine.low %v4107_v7, %v4111_v4 }
 0x857   : > { %v6564_v13 = vcombine.high %v4108_v8, %v4112_v9  ;;  %v6563_v19 = vcombine.low %v4108_v8, %v4112_v9 }
 0x858   : > { %3924 = vmatpush1.bf16.msra.mxu0 %v6497_v14  ;;  %3967 = vmatpush1.bf16.msra.mxu1 %v6499_v15  ;;  %v4115_v14 = vld [vmem:[#allocation17 + $0x1c0] sm:$0xff] }
 0x859   : > { %3925 = vmatprep.subr.bf16.mxu0 %v6506_v16  ;;  %3968 = vmatprep.subr.bf16.mxu1 %v6508_v17  ;;  %v4119_v15 = vld [vmem:[#allocation17 + $0x1e0] sm:$0xff]  ;;  %v4116_v16 = vld [vmem:[#allocation17 + $0x1c8] sm:$0xff] }
 0x85a   : > { %v4120_v17 = vld [vmem:[#allocation17 + $0x1e8] sm:$0xff]  ;;  %v6570_v20 = vcombine.high %v4115_v14, %v4119_v15  ;;  %v6569_v26 = vcombine.low %v4115_v14, %v4119_v15 }
 0x85b   : > { %v6572_v21 = vcombine.high %v4116_v16, %v4120_v17  ;;  %v6571_v27 = vcombine.low %v4116_v16, %v4120_v17 }
 0x85c   : > { %3926 = vmatpush1.bf16.msra.mxu0 %v6505_v22  ;;  %3969 = vmatpush1.bf16.msra.mxu1 %v6507_v23  ;;  %v4123_v22 = vld [vmem:[#allocation17 + $0x200] sm:$0xff] }
 0x85d   : > { %5637 = vmatprep.subr.bf16.mxu0 %v6514_v24  ;;  %5723 = vmatprep.subr.bf16.mxu1 %v6516_v25  ;;  %v4127_v23 = vld [vmem:[#allocation17 + $0x220] sm:$0xff]  ;;  %v4124_v24 = vld [vmem:[#allocation17 + $0x208] sm:$0xff] }
 0x85e   : > { %v4128_v25 = vld [vmem:[#allocation17 + $0x228] sm:$0xff]  ;;  %v6578_v28 = vcombine.high %v4123_v22, %v4127_v23  ;;  %v6577_v36 = vcombine.low %v4123_v22, %v4127_v23 }
 0x85f   : > { %6511 = vmatmul.mubr.msk.bf16.vlgmr.msra.gmra.mrb[44].mxu0 %vm817_vm1, %v8671_v30  ;;  %6512 = vmatmul.mubr.msk.bf16.vlgmr.msra.gmra.mrb[44].mxu1 %vm817_vm1, %v8671_v30  ;;  %v6531_v30 = vcombine.low %v4076_v38, %v4080_v42  ;;  %v6580_v29 = vcombine.high %v4124_v24, %v4128_v25  ;;  %v6579_v37 = vcombine.low %v4124_v24, %v4128_v25 }
 0x860   : > { %5638 = vmatpush1.bf16.msra.mxu0 %v6513_v31  ;;  %5724 = vmatpush1.bf16.msra.mxu1 %v6515_v32  ;;  %v4131_v31 = vld [vmem:[#allocation17 + $0x240] sm:$0xff] }
 0x861   : > { %5639 = vmatprep.subr.bf16.mxu0 %v6522_v33  ;;  %5725 = vmatprep.subr.bf16.mxu1 %v6524_v34  ;;  %v4135_v32 = vld [vmem:[#allocation17 + $0x260] sm:$0xff]  ;;  %v4132_v33 = vld [vmem:[#allocation17 + $0x248] sm:$0xff] }
 0x862   : > { %5669 = vmatprep.mubr.bf16.mxu0 %v8458_v35  ;;  %5755 = vmatprep.mubr.bf16.mxu1 %v8458_v35  ;;  %v4136_v34 = vld [vmem:[#allocation17 + $0x268] sm:$0xff]  ;;  %v6586_v38 = vcombine.high %v4131_v31, %v4135_v32  ;;  %v6585_v49 = vcombine.low %v4131_v31, %v4135_v32 }
 0x863   : > { %v6588_v42 = vcombine.high %v4132_v33, %v4136_v34  ;;  %v6587_v50 = vcombine.low %v4132_v33, %v4136_v34 }
 0x864   : > { %5640 = vmatpush1.bf16.msra.mxu0 %v6521_v43  ;;  %5726 = vmatpush1.bf16.msra.mxu1 %v6523_v46  ;;  %v4139_v43 = vld [vmem:[#allocation17 + $0x280] sm:$0xff] }
 0x865   : > { %5641 = vmatprep.subr.bf16.mxu0 %v6530_v47  ;;  %5727 = vmatprep.subr.bf16.mxu1 %v6532_v48  ;;  %v4143_v46 = vld [vmem:[#allocation17 + $0x2a0] sm:$0xff]  ;;  %v4140_v47 = vld [vmem:[#allocation17 + $0x288] sm:$0xff] }
 0x866   : > { %v4144_v48 = vld [vmem:[#allocation17 + $0x2a8] sm:$0xff]  ;;  %v6594_v51 = vcombine.high %v4139_v43, %v4143_v46  ;;  %v6593_v55 = vcombine.low %v4139_v43, %v4143_v46 }
 0x867   : > { %v6596_v39 = vcombine.high %v4140_v47, %v4144_v48  ;;  %v6595_v56 = vcombine.low %v4140_v47, %v4144_v48 }
 0x868   : > { %5642 = vmatpush1.bf16.msra.mxu0 %v6529_v52  ;;  %5728 = vmatpush1.bf16.msra.mxu1 %v6531_v30  ;;  %v4147_v52 = vld [vmem:[#allocation17 + $0x2c0] sm:$0xff] }
 0x869   : > { %5643 = vmatprep.subr.bf16.mxu0 %v6538_v53  ;;  %5729 = vmatprep.subr.bf16.mxu1 %v6540_v54  ;;  %v4151_v30 = vld [vmem:[#allocation17 + $0x2e0] sm:$0xff]  ;;  %v4148_v53 = vld [vmem:[#allocation17 + $0x2c8] sm:$0xff] }
 0x86a   : > { %v4152_v54 = vld [vmem:[#allocation17 + $0x2e8] sm:$0xff]  ;;  %v6602_v57 = vcombine.high %v4147_v52, %v4151_v30  ;;  %v6601_v63 = vcombine.low %v4147_v52, %v4151_v30 }
 0x86b   : > { %v6604_v58 = vcombine.high %v4148_v53, %v4152_v54  ;;  %v6603_v0 = vcombine.low %v4148_v53, %v4152_v54 }
 0x86c   : > { %5644 = vmatpush1.bf16.msra.mxu0 %v6537_v59  ;;  %5730 = vmatpush1.bf16.msra.mxu1 %v6539_v60  ;;  %v4155_v59 = vld [vmem:[#allocation17 + $0x300] sm:$0xff] }
 0x86d   : > { %5645 = vmatprep.subr.bf16.mxu0 %v6546_v61  ;;  %5731 = vmatprep.subr.bf16.mxu1 %v6548_v62  ;;  %v4159_v60 = vld [vmem:[#allocation17 + $0x320] sm:$0xff]  ;;  %v4156_v61 = vld [vmem:[#allocation17 + $0x308] sm:$0xff] }
 0x86e   : > { %v4160_v62 = vld [vmem:[#allocation17 + $0x328] sm:$0xff]  ;;  %v6610_v1 = vcombine.high %v4155_v59, %v4159_v60  ;;  %v6609_v7 = vcombine.low %v4155_v59, %v4159_v60 }
 0x86f   : > { %v6612_v2 = vcombine.high %v4156_v61, %v4160_v62  ;;  %v6611_v4 = vcombine.low %v4156_v61, %v4160_v62 }
 0x870   : > { %5646 = vmatpush1.bf16.msra.mxu0 %v6545_v3  ;;  %5732 = vmatpush1.bf16.msra.mxu1 %v6547_v5  ;;  %v4163_v3 = vld [vmem:[#allocation17 + $0x340] sm:$0xff] }
 0x871   : > { %5647 = vmatprep.subr.bf16.mxu0 %v6554_v45  ;;  %5733 = vmatprep.subr.bf16.mxu1 %v6556_v6  ;;  %v4167_v5 = vld [vmem:[#allocation17 + $0x360] sm:$0xff]  ;;  %v4164_v45 = vld [vmem:[#allocation17 + $0x348] sm:$0xff] }
 0x872   : > { %v4168_v6 = vld [vmem:[#allocation17 + $0x368] sm:$0xff]  ;;  %v6618_v8 = vcombine.high %v4163_v3, %v4167_v5  ;;  %v6617_v14 = vcombine.low %v4163_v3, %v4167_v5 }
 0x873   : > { %v6620_v9 = vcombine.high %v4164_v45, %v4168_v6  ;;  %v6619_v15 = vcombine.low %v4164_v45, %v4168_v6 }
 0x874   : > { %5648 = vmatpush1.bf16.msra.mxu0 %v6553_v10  ;;  %5734 = vmatpush1.bf16.msra.mxu1 %v6555_v11  ;;  %v4171_v10 = vld [vmem:[#allocation17 + $0x380] sm:$0xff] }
 0x875   : > { %5649 = vmatprep.subr.bf16.mxu0 %v6562_v12  ;;  %5735 = vmatprep.subr.bf16.mxu1 %v6564_v13  ;;  %v4175_v11 = vld [vmem:[#allocation17 + $0x3a0] sm:$0xff]  ;;  %v4172_v12 = vld [vmem:[#allocation17 + $0x388] sm:$0xff] }
 0x876   : > { %v4176_v13 = vld [vmem:[#allocation17 + $0x3a8] sm:$0xff]  ;;  %v6626_v16 = vcombine.high %v4171_v10, %v4175_v11  ;;  %v6625_v22 = vcombine.low %v4171_v10, %v4175_v11 }
 0x877   : > { %v6628_v17 = vcombine.high %v4172_v12, %v4176_v13  ;;  %v6627_v23 = vcombine.low %v4172_v12, %v4176_v13  ;;  %v4232_v10 = vld [vmem:[#allocation17 + $0x568] sm:$0xff] }
 0x878   : > { %5650 = vmatpush1.bf16.msra.mxu0 %v6561_v18  ;;  %5736 = vmatpush1.bf16.msra.mxu1 %v6563_v19  ;;  %v4179_v18 = vld [vmem:[#allocation17 + $0x3c0] sm:$0xff] }
 0x879   : > { %5651 = vmatprep.subr.bf16.mxu0 %v6570_v20  ;;  %5737 = vmatprep.subr.bf16.mxu1 %v6572_v21  ;;  %v4183_v19 = vld [vmem:[#allocation17 + $0x3e0] sm:$0xff]  ;;  %v4180_v20 = vld [vmem:[#allocation17 + $0x3c8] sm:$0xff] }
 0x87a   : > { %v4184_v21 = vld [vmem:[#allocation17 + $0x3e8] sm:$0xff]  ;;  %v6634_v24 = vcombine.high %v4179_v18, %v4183_v19  ;;  %v6633_v31 = vcombine.low %v4179_v18, %v4183_v19 }
 0x87b   : > { %v6636_v25 = vcombine.high %v4180_v20, %v4184_v21  ;;  %v6635_v32 = vcombine.low %v4180_v20, %v4184_v21  ;;  %v4236_v18 = vld [vmem:[#allocation17 + $0x588] sm:$0xff] }
 0x87c   : > { %5652 = vmatpush1.bf16.msra.mxu0 %v6569_v26  ;;  %5738 = vmatpush1.bf16.msra.mxu1 %v6571_v27  ;;  %v4187_v26 = vld [vmem:[#allocation17 + $0x400] sm:$0xff]  ;;  %v4240_v19 = vld [vmem:[#allocation17 + $0x5a8] sm:$0xff] }
 0x87d   : > { %5653 = vmatprep.subr.bf16.mxu0 %v6578_v28  ;;  %5739 = vmatprep.subr.bf16.mxu1 %v6580_v29  ;;  %v4191_v27 = vld [vmem:[#allocation17 + $0x420] sm:$0xff]  ;;  %v4188_v28 = vld [vmem:[#allocation17 + $0x408] sm:$0xff] }
 0x87e   : > { %v4192_v29 = vld [vmem:[#allocation17 + $0x428] sm:$0xff]  ;;  %v6642_v33 = vcombine.high %v4187_v26, %v4191_v27  ;;  %v6641_v43 = vcombine.low %v4187_v26, %v4191_v27 }
 0x87f   : > { %v6644_v34 = vcombine.high %v4188_v28, %v4192_v29  ;;  %v6643_v46 = vcombine.low %v4188_v28, %v4192_v29  ;;  %v6692_v28 = vcombine.high %v4236_v18, %v4240_v19  ;;  %v4243_v29 = vld [vmem:[#allocation17 + $0x5c0] sm:$0xff] }
 0x880   : > { %5654 = vmatpush1.bf16.msra.mxu0 %v6577_v36  ;;  %5740 = vmatpush1.bf16.msra.mxu1 %v6579_v37  ;;  %v4195_v36 = vld [vmem:[#allocation17 + $0x440] sm:$0xff] }
 0x881   : > { %5655 = vmatprep.subr.bf16.mxu0 %v6586_v38  ;;  %5741 = vmatprep.subr.bf16.mxu1 %v6588_v42  ;;  %v4199_v37 = vld [vmem:[#allocation17 + $0x460] sm:$0xff]  ;;  %v4196_v38 = vld [vmem:[#allocation17 + $0x448] sm:$0xff] }
 0x882   : > { %v4200_v42 = vld [vmem:[#allocation17 + $0x468] sm:$0xff]  ;;  %v6650_v47 = vcombine.high %v4195_v36, %v4199_v37  ;;  %v6649_v52 = vcombine.low %v4195_v36, %v4199_v37 }
 0x883   : > { %v6652_v48 = vcombine.high %v4196_v38, %v4200_v42  ;;  %v6651_v30 = vcombine.low %v4196_v38, %v4200_v42  ;;  %v4248_v36 = vld [vmem:[#allocation17 + $0x5e8] sm:$0xff] }
 0x884   : > { %5656 = vmatpush1.bf16.msra.mxu0 %v6585_v49  ;;  %5742 = vmatpush1.bf16.msra.mxu1 %v6587_v50  ;;  %v4203_v49 = vld [vmem:[#allocation17 + $0x480] sm:$0xff] }
 0x885   : > { %5657 = vmatprep.subr.bf16.mxu0 %v6594_v51  ;;  %5743 = vmatprep.subr.bf16.mxu1 %v6596_v39  ;;  %v4207_v50 = vld [vmem:[#allocation17 + $0x4a0] sm:$0xff]  ;;  %v4204_v51 = vld [vmem:[#allocation17 + $0x488] sm:$0xff] }
 0x886   : > { %v4208_v39 = vld [vmem:[#allocation17 + $0x4a8] sm:$0xff]  ;;  %v6658_v53 = vcombine.high %v4203_v49, %v4207_v50  ;;  %v6657_v59 = vcombine.low %v4203_v49, %v4207_v50  ;;  %v4255_v49 = vld [vmem:[#allocation17 + $0x620] sm:$0xff] }
 0x887   : > { %v6660_v54 = vcombine.high %v4204_v51, %v4208_v39  ;;  %v6659_v60 = vcombine.low %v4204_v51, %v4208_v39  ;;  %v4252_v50 = vld [vmem:[#allocation17 + $0x608] sm:$0xff] }
 0x888   : > { %5658 = vmatpush1.bf16.msra.mxu0 %v6593_v55  ;;  %5744 = vmatpush1.bf16.msra.mxu1 %v6595_v56  ;;  %v4211_v55 = vld [vmem:[#allocation17 + $0x4c0] sm:$0xff]  ;;  %v4256_v51 = vld [vmem:[#allocation17 + $0x628] sm:$0xff] }
 0x889   : > { %5659 = vmatprep.subr.bf16.mxu0 %v6602_v57  ;;  %5745 = vmatprep.subr.bf16.mxu1 %v6604_v58  ;;  %v4215_v56 = vld [vmem:[#allocation17 + $0x4e0] sm:$0xff]  ;;  %v4212_v57 = vld [vmem:[#allocation17 + $0x4c8] sm:$0xff] }
 0x88a   : > { %v4216_v58 = vld [vmem:[#allocation17 + $0x4e8] sm:$0xff]  ;;  %v6666_v61 = vcombine.high %v4211_v55, %v4215_v56  ;;  %v6665_v3 = vcombine.low %v4211_v55, %v4215_v56  ;;  %v4263_v55 = vld [vmem:[#allocation17 + $0x660] sm:$0xff] }
 0x88b   : > { %v6668_v62 = vcombine.high %v4212_v57, %v4216_v58  ;;  %v6667_v5 = vcombine.low %v4212_v57, %v4216_v58  ;;  %v4260_v56 = vld [vmem:[#allocation17 + $0x648] sm:$0xff] }
 0x88c   : > { %5660 = vmatpush1.bf16.msra.mxu0 %v6601_v63  ;;  %5746 = vmatpush1.bf16.msra.mxu1 %v6603_v0  ;;  %v4219_v63 = vld [vmem:[#allocation17 + $0x500] sm:$0xff]  ;;  %v4264_v57 = vld [vmem:[#allocation17 + $0x668] sm:$0xff] }
 0x88d   : > { %5661 = vmatprep.subr.bf16.mxu0 %v6610_v1  ;;  %5747 = vmatprep.subr.bf16.mxu1 %v6612_v2  ;;  %v4223_v0 = vld [vmem:[#allocation17 + $0x520] sm:$0xff]  ;;  %v4220_v1 = vld [vmem:[#allocation17 + $0x508] sm:$0xff] }
 0x88e   : > { %v4224_v2 = vld [vmem:[#allocation17 + $0x528] sm:$0xff]  ;;  %v6674_v45 = vcombine.high %v4219_v63, %v4223_v0  ;;  %v6673_v11 = vcombine.low %v4219_v63, %v4223_v0  ;;  %v4271_v63 = vld [vmem:[#allocation17 + $0x6a0] sm:$0xff] }
 0x88f   : > { %v6676_v6 = vcombine.high %v4220_v1, %v4224_v2  ;;  %v6675_v12 = vcombine.low %v4220_v1, %v4224_v2  ;;  %v4268_v0 = vld [vmem:[#allocation17 + $0x688] sm:$0xff] }
 0x890   : > { %5662 = vmatpush1.bf16.msra.mxu0 %v6609_v7  ;;  %5748 = vmatpush1.bf16.msra.mxu1 %v6611_v4  ;;  %v4227_v7 = vld [vmem:[#allocation17 + $0x540] sm:$0xff]  ;;  %v4003_v4 = vlaneseq  ;;  %v4272_v1 = vld [vmem:[#allocation17 + $0x6a8] sm:$0xff] }
 0x891   : > { %5663 = vmatprep.subr.bf16.mxu0 %v6618_v8  ;;  %5749 = vmatprep.subr.bf16.mxu1 %v6620_v9  ;;  %v4231_v8 = vld [vmem:[#allocation17 + $0x560] sm:$0xff]  ;;  %v4228_v9 = vld [vmem:[#allocation17 + $0x548] sm:$0xff] }
 0x892   : > { %v6682_v13 = vcombine.high %v4227_v7, %v4231_v8  ;;  %v6681_v20 = vcombine.low %v4227_v7, %v4231_v8  ;;  %v4279_v7 = vld [vmem:[#allocation17 + $0x6e0] sm:$0xff]  ;;  %v4280_v8 = vld [vmem:[#allocation17 + $0x6e8] sm:$0xff] }
 0x894   : > { %5664 = vmatpush1.bf16.msra.mxu0 %v6617_v14  ;;  %5750 = vmatpush1.bf16.msra.mxu1 %v6619_v15  ;;  %v6684_v14 = vcombine.high %v4228_v9, %v4232_v10  ;;  %v4235_v15 = vld [vmem:[#allocation17 + $0x580] sm:$0xff] }
 0x895   : > { %5665 = vmatprep.subr.bf16.mxu0 %v6626_v16  ;;  %5751 = vmatprep.subr.bf16.mxu1 %v6628_v17  ;;  %v4239_v16 = vld [vmem:[#allocation17 + $0x5a0] sm:$0xff]  ;;  %v9072_v17 = vshrl.u32 %v4003_v4, 7  ;;  %v4276_v4 = vld [vmem:[#allocation17 + $0x6c8] sm:$0xff] }
 0x896   : > { %v6689_v42 = vcombine.low %v4235_v15, %v4239_v16 }
 0x897   : > { %v4021_v21 = vsub.s32 4, %v9072_v17  ;;  %v4025_v26 = vsub.s32 5, %v9072_v17  ;;  %v4033_v27 = vsub.s32 7, %v9072_v17 }
 0x898   : > { %5666 = vmatpush1.bf16.msra.mxu0 %v6625_v22  ;;  %5752 = vmatpush1.bf16.msra.mxu1 %v6627_v23  ;;  %v4029_v22 = vsub.s32 6, %v9072_v17  ;;  %v6683_v23 = vcombine.low %v4228_v9, %v4232_v10  ;;  %v6723_v10 = vcombine.low %v4268_v0, %v4272_v1 }
 0x899   : > { %5667 = vmatprep.subr.bf16.mxu0 %v6634_v24  ;;  %5753 = vmatprep.subr.bf16.mxu1 %v6636_v25  ;;  %v6690_v24 = vcombine.high %v4235_v15, %v4239_v16  ;;  %v4001_v25 = vld [vmem:[%s9354_s1] sm:$0xff]  ;;  %v4284_v15 = vld [vmem:[#allocation17 + $0x708] sm:$0xff] }
 0x89a   : > { %v9091_v37 = vrot.slane %v4001_v25, %v4025_v26  ;;  %v9095_v38 = vrot.slane %v4001_v25, %v4033_v27  ;;  %v4288_v16 = vld [vmem:[#allocation17 + $0x728] sm:$0xff] }
 0x89c   : > { %5668 = vmatpush1.bf16.msra.mxu0 %v6633_v31  ;;  %5754 = vmatpush1.bf16.msra.mxu1 %v6635_v32  ;;  %v9083_v31 = vrot.slane %v4001_v25, %v4021_v21  ;;  %v9087_v32 = vrot.slane %v4001_v25, %v4029_v22  ;;  %v4295_v25 = vld [vmem:[#allocation17 + $0x760] sm:$0xff] }
 0x89d   : > { %5680 = vmatprep.subr.bf16.mxu0 %v6642_v33  ;;  %5766 = vmatprep.subr.bf16.mxu1 %v6644_v34  ;;  %v4247_v33 = vld [vmem:[#allocation17 + $0x5e0] sm:$0xff]  ;;  %v4244_v34 = vld [vmem:[#allocation17 + $0x5c8] sm:$0xff] }
 0x89e   : > { %v6697_v39 = vcombine.low %v4243_v29, %v4247_v33 }
 0x89f   : > { %5670 = vmatmul.mubr.bf16.vlgmr.msra.gmra.mrb[48].mxu0 %v8466_v41  ;;  %5756 = vmatmul.mubr.bf16.vlgmr.msra.gmra.mrb[48].mxu1 %v8466_v41 }
 0x8a0   : > { %5681 = vmatpush1.bf16.msra.mxu0 %v6641_v43  ;;  %5767 = vmatpush1.bf16.msra.mxu1 %v6643_v46  ;;  %v6691_v43 = vcombine.low %v4236_v18, %v4240_v19  ;;  %v6698_v46 = vcombine.high %v4243_v29, %v4247_v33  ;;  %v6731_v19 = vcombine.low %v4276_v4, %v4280_v8  ;;  %v4296_v29 = vld [vmem:[#allocation17 + $0x768] sm:$0xff] }
 0x8a1   : > { %5682 = vmatprep.subr.bf16.mxu0 %v6650_v47  ;;  %5768 = vmatprep.subr.bf16.mxu1 %v6652_v48  ;;  %v6700_v47 = vcombine.high %v4244_v34, %v4248_v36  ;;  %v4251_v48 = vld [vmem:[#allocation17 + $0x600] sm:$0xff] }
 0x8a2   : > { %5712 = vmatprep.mubr.bf16.mxu0 %v8464_v40  ;;  %5798 = vmatprep.mubr.bf16.mxu1 %v8464_v40  ;;  %v6705_v58 = vcombine.low %v4251_v48, %v4255_v49 }
 0x8a4   : > { %5683 = vmatpush1.bf16.msra.mxu0 %v6649_v52  ;;  %5769 = vmatpush1.bf16.msra.mxu1 %v6651_v30  ;;  %v6699_v52 = vcombine.low %v4244_v34, %v4248_v36  ;;  %v6706_v30 = vcombine.high %v4251_v48, %v4255_v49  ;;  %v6739_v34 = vcombine.low %v4284_v15, %v4288_v16  ;;  %v4304_v48 = vld [vmem:[#allocation17 + $0x7a8] sm:$0xff] }
 0x8a5   : > { %5684 = vmatprep.subr.bf16.mxu0 %v6658_v53  ;;  %5770 = vmatprep.subr.bf16.mxu1 %v6660_v54  ;;  %v6708_v53 = vcombine.high %v4252_v50, %v4256_v51  ;;  %v4259_v54 = vld [vmem:[#allocation17 + $0x640] sm:$0xff] }
 0x8a6   : > { %v6713_v2 = vcombine.low %v4259_v54, %v4263_v55 }
 0x8a8   : > { %5685 = vmatpush1.bf16.msra.mxu0 %v6657_v59  ;;  %5771 = vmatpush1.bf16.msra.mxu1 %v6659_v60  ;;  %v6707_v59 = vcombine.low %v4252_v50, %v4256_v51  ;;  %v6714_v60 = vcombine.high %v4259_v54, %v4263_v55  ;;  %v4312_v54 = vld [vmem:[#allocation17 + $0x7e8] sm:$0xff] }
 0x8a9   : > { %5686 = vmatprep.subr.bf16.mxu0 %v6666_v61  ;;  %5772 = vmatprep.subr.bf16.mxu1 %v6668_v62  ;;  %v6716_v61 = vcombine.high %v4260_v56, %v4264_v57  ;;  %v4267_v62 = vld [vmem:[#allocation17 + $0x680] sm:$0xff] }
 0x8aa   : > { %v6721_v9 = vcombine.low %v4267_v62, %v4271_v63 }
 0x8ac   : > { %5687 = vmatpush1.bf16.msra.mxu0 %v6665_v3  ;;  %5773 = vmatpush1.bf16.msra.mxu1 %v6667_v5  ;;  %v6715_v3 = vcombine.low %v4260_v56, %v4264_v57  ;;  %v6722_v5 = vcombine.high %v4267_v62, %v4271_v63  ;;  %v4066_v62 = vld [vmem:[#allocation17 + $0x38] sm:$0xff] }
 0x8ad   : > { %5688 = vmatprep.subr.bf16.mxu0 %v6674_v45  ;;  %5774 = vmatprep.subr.bf16.mxu1 %v6676_v6  ;;  %v6724_v45 = vcombine.high %v4268_v0, %v4272_v1  ;;  %v4275_v6 = vld [vmem:[#allocation17 + $0x6c0] sm:$0xff] }
 0x8ae   : > { %v6729_v18 = vcombine.low %v4275_v6, %v4279_v7 }
 0x8b0   : > { %5689 = vmatpush1.bf16.msra.mxu0 %v6673_v11  ;;  %5775 = vmatpush1.bf16.msra.mxu1 %v6675_v12  ;;  %v6730_v11 = vcombine.high %v4275_v6, %v4279_v7  ;;  %v6732_v12 = vcombine.high %v4276_v4, %v4280_v8  ;;  %v4074_v6 = vld [vmem:[#allocation17 + $0x78] sm:$0xff] }
 0x8b1   : > { %5690 = vmatprep.subr.bf16.mxu0 %v6682_v13  ;;  %5776 = vmatprep.subr.bf16.mxu1 %v6684_v14  ;;  %v4283_v13 = vld [vmem:[#allocation17 + $0x700] sm:$0xff] }
 0x8b2   : > { %v4287_v14 = vld [vmem:[#allocation17 + $0x720] sm:$0xff] }
 0x8b3   : > { %v6737_v33 = vcombine.low %v4283_v13, %v4287_v14 }
 0x8b4   : > { %5691 = vmatpush1.bf16.msra.mxu0 %v6681_v20  ;;  %5777 = vmatpush1.bf16.msra.mxu1 %v6683_v23  ;;  %v6738_v20 = vcombine.high %v4283_v13, %v4287_v14  ;;  %v6740_v23 = vcombine.high %v4284_v15, %v4288_v16  ;;  %v4082_v13 = vld [vmem:[#allocation17 + $0xb8] sm:$0xff] }
 0x8b5   : > { %5692 = vmatprep.subr.bf16.mxu0 %v6690_v24  ;;  %5778 = vmatprep.subr.bf16.mxu1 %v6692_v28  ;;  %v4291_v24 = vld [vmem:[#allocation17 + $0x740] sm:$0xff]  ;;  %v4292_v28 = vld [vmem:[#allocation17 + $0x748] sm:$0xff] }
 0x8b6   : > { %v6746_v36 = vcombine.high %v4291_v24, %v4295_v25  ;;  %v6745_v49 = vcombine.low %v4291_v24, %v4295_v25  ;;  %v6747_v50 = vcombine.low %v4292_v28, %v4296_v29  ;;  %v4090_v24 = vld [vmem:[#allocation17 + $0xf8] sm:$0xff] }
 0x8b8   : > { %5693 = vmatpush1.bf16.msra.mxu0 %v6689_v42  ;;  %5779 = vmatpush1.bf16.msra.mxu1 %v6691_v43  ;;  %v6748_v42 = vcombine.high %v4292_v28, %v4296_v29  ;;  %v4299_v43 = vld [vmem:[#allocation17 + $0x780] sm:$0xff] }
 0x8b9   : > { %5694 = vmatprep.subr.bf16.mxu0 %v6698_v46  ;;  %5780 = vmatprep.subr.bf16.mxu1 %v6700_v47  ;;  %v4303_v46 = vld [vmem:[#allocation17 + $0x7a0] sm:$0xff]  ;;  %v4300_v47 = vld [vmem:[#allocation17 + $0x788] sm:$0xff] }
 0x8ba   : > { %v6754_v51 = vcombine.high %v4299_v43, %v4303_v46  ;;  %v6753_v55 = vcombine.low %v4299_v43, %v4303_v46  ;;  %v6755_v56 = vcombine.low %v4300_v47, %v4304_v48  ;;  %v4098_v43 = vld [vmem:[#allocation17 + $0x138] sm:$0xff] }
 0x8bc   : > { %5695 = vmatpush1.bf16.msra.mxu0 %v6697_v39  ;;  %5781 = vmatpush1.bf16.msra.mxu1 %v6699_v52  ;;  %v6756_v39 = vcombine.high %v4300_v47, %v4304_v48  ;;  %v4307_v52 = vld [vmem:[#allocation17 + $0x7c0] sm:$0xff] }
 0x8bd   : > { %5696 = vmatprep.subr.bf16.mxu0 %v6706_v30  ;;  %5782 = vmatprep.subr.bf16.mxu1 %v6708_v53  ;;  %v4311_v30 = vld [vmem:[#allocation17 + $0x7e0] sm:$0xff]  ;;  %v4308_v53 = vld [vmem:[#allocation17 + $0x7c8] sm:$0xff] }
 0x8be   : > { %v6762_v57 = vcombine.high %v4307_v52, %v4311_v30  ;;  %v6761_v63 = vcombine.low %v4307_v52, %v4311_v30  ;;  %v6763_v0 = vcombine.low %v4308_v53, %v4312_v54 }
 0x8c0   : > { %5697 = vmatpush1.bf16.msra.mxu0 %v6705_v58  ;;  %5783 = vmatpush1.bf16.msra.mxu1 %v6707_v59  ;;  %v6764_v58 = vcombine.high %v4308_v53, %v4312_v54  ;;  %v4061_v59 = vld [vmem:[#allocation17 + $0x10] sm:$0xff] }
 0x8c1   : > { %5698 = vmatprep.subr.bf16.mxu0 %v6714_v60  ;;  %5784 = vmatprep.subr.bf16.mxu1 %v6716_v61  ;;  %v4065_v60 = vld [vmem:[#allocation17 + $0x30] sm:$0xff]  ;;  %v4062_v61 = vld [vmem:[#allocation17 + $0x18] sm:$0xff] }
 0x8c2   : > { %v6518_v1 = vcombine.high %v4061_v59, %v4065_v60  ;;  %v6517_v7 = vcombine.low %v4061_v59, %v4065_v60  ;;  %v6519_v4 = vcombine.low %v4062_v61, %v4066_v62 }
 0x8c4   : > { %5699 = vmatpush1.bf16.msra.mxu0 %v6713_v2  ;;  %5785 = vmatpush1.bf16.msra.mxu1 %v6715_v3  ;;  %v6520_v2 = vcombine.high %v4062_v61, %v4066_v62  ;;  %v4069_v3 = vld [vmem:[#allocation17 + $0x50] sm:$0xff] }
 0x8c5   : > { %5700 = vmatprep.subr.bf16.mxu0 %v6722_v5  ;;  %5786 = vmatprep.subr.bf16.mxu1 %v6724_v45  ;;  %v4073_v5 = vld [vmem:[#allocation17 + $0x70] sm:$0xff]  ;;  %v4070_v45 = vld [vmem:[#allocation17 + $0x58] sm:$0xff] }
 0x8c6   : > { %v6526_v8 = vcombine.high %v4069_v3, %v4073_v5  ;;  %v6525_v14 = vcombine.low %v4069_v3, %v4073_v5  ;;  %v6527_v15 = vcombine.low %v4070_v45, %v4074_v6 }
 0x8c8   : > { %5701 = vmatpush1.bf16.msra.mxu0 %v6721_v9  ;;  %5787 = vmatpush1.bf16.msra.mxu1 %v6723_v10  ;;  %v6528_v9 = vcombine.high %v4070_v45, %v4074_v6  ;;  %v4077_v10 = vld [vmem:[#allocation17 + $0x90] sm:$0xff] }
 0x8c9   : > { %5702 = vmatprep.subr.bf16.mxu0 %v6730_v11  ;;  %5788 = vmatprep.subr.bf16.mxu1 %v6732_v12  ;;  %v4081_v11 = vld [vmem:[#allocation17 + $0xb0] sm:$0xff]  ;;  %v4078_v12 = vld [vmem:[#allocation17 + $0x98] sm:$0xff] }
 0x8ca   : > { %v6534_v16 = vcombine.high %v4077_v10, %v4081_v11  ;;  %v6533_v25 = vcombine.low %v4077_v10, %v4081_v11  ;;  %v6535_v28 = vcombine.low %v4078_v12, %v4082_v13 }
 0x8cc   : > { %5703 = vmatpush1.bf16.msra.mxu0 %v6729_v18  ;;  %5789 = vmatpush1.bf16.msra.mxu1 %v6731_v19  ;;  %v6536_v18 = vcombine.high %v4078_v12, %v4082_v13  ;;  %v4085_v19 = vld [vmem:[#allocation17 + $0xd0] sm:$0xff] }
 0x8cd   : > { %5704 = vmatprep.subr.bf16.mxu0 %v6738_v20  ;;  %5790 = vmatprep.subr.bf16.mxu1 %v6740_v23  ;;  %v4089_v20 = vld [vmem:[#allocation17 + $0xf0] sm:$0xff]  ;;  %v4086_v23 = vld [vmem:[#allocation17 + $0xd8] sm:$0xff] }
 0x8ce   : > { %v6542_v29 = vcombine.high %v4085_v19, %v4089_v20  ;;  %v6541_v46 = vcombine.low %v4085_v19, %v4089_v20  ;;  %v6543_v47 = vcombine.low %v4086_v23, %v4090_v24 }
 0x8d0   : > { %5705 = vmatpush1.bf16.msra.mxu0 %v6737_v33  ;;  %5791 = vmatpush1.bf16.msra.mxu1 %v6739_v34  ;;  %v6544_v33 = vcombine.high %v4086_v23, %v4090_v24  ;;  %v4093_v34 = vld [vmem:[#allocation17 + $0x110] sm:$0xff] }
 0x8d1   : > { %5706 = vmatprep.subr.bf16.mxu0 %v6746_v36  ;;  %5792 = vmatprep.subr.bf16.mxu1 %v6748_v42  ;;  %v4097_v36 = vld [vmem:[#allocation17 + $0x130] sm:$0xff]  ;;  %v4094_v42 = vld [vmem:[#allocation17 + $0x118] sm:$0xff] }
 0x8d2   : > { %v6550_v48 = vcombine.high %v4093_v34, %v4097_v36  ;;  %v6549_v52 = vcombine.low %v4093_v34, %v4097_v36  ;;  %v6551_v30 = vcombine.low %v4094_v42, %v4098_v43 }
 0x8d4   : > { %5707 = vmatpush1.bf16.msra.mxu0 %v6745_v49  ;;  %5793 = vmatpush1.bf16.msra.mxu1 %v6747_v50  ;;  %v4101_v49 = vld [vmem:[#allocation17 + $0x150] sm:$0xff] }
 0x8d5   : > { %5708 = vmatprep.subr.bf16.mxu0 %v6754_v51  ;;  %5794 = vmatprep.subr.bf16.mxu1 %v6756_v39  ;;  %v4105_v50 = vld [vmem:[#allocation17 + $0x170] sm:$0xff]  ;;  %v4102_v51 = vld [vmem:[#allocation17 + $0x158] sm:$0xff] }
 0x8d6   : > { %v4106_v39 = vld [vmem:[#allocation17 + $0x178] sm:$0xff]  ;;  %v6558_v53 = vcombine.high %v4101_v49, %v4105_v50  ;;  %v6557_v59 = vcombine.low %v4101_v49, %v4105_v50 }
 0x8d7   : > { %v6560_v54 = vcombine.high %v4102_v51, %v4106_v39  ;;  %v6559_v60 = vcombine.low %v4102_v51, %v4106_v39 }
 0x8d8   : > { %5709 = vmatpush1.bf16.msra.mxu0 %v6753_v55  ;;  %5795 = vmatpush1.bf16.msra.mxu1 %v6755_v56  ;;  %v4109_v55 = vld [vmem:[#allocation17 + $0x190] sm:$0xff] }
 0x8d9   : > { %5710 = vmatprep.subr.bf16.mxu0 %v6762_v57  ;;  %5796 = vmatprep.subr.bf16.mxu1 %v6764_v58  ;;  %v4113_v56 = vld [vmem:[#allocation17 + $0x1b0] sm:$0xff]  ;;  %v4110_v57 = vld [vmem:[#allocation17 + $0x198] sm:$0xff] }
 0x8da   : > { %v4114_v58 = vld [vmem:[#allocation17 + $0x1b8] sm:$0xff]  ;;  %v6566_v61 = vcombine.high %v4109_v55, %v4113_v56  ;;  %v6565_v3 = vcombine.low %v4109_v55, %v4113_v56 }
 0x8db   : > { %v6568_v62 = vcombine.high %v4110_v57, %v4114_v58  ;;  %v6567_v5 = vcombine.low %v4110_v57, %v4114_v58 }
 0x8dc   : > { %5711 = vmatpush1.bf16.msra.mxu0 %v6761_v63  ;;  %5797 = vmatpush1.bf16.msra.mxu1 %v6763_v0  ;;  %v4117_v63 = vld [vmem:[#allocation17 + $0x1d0] sm:$0xff] }
 0x8dd   : > { %5809 = vmatprep.subr.bf16.mxu0 %v6518_v1  ;;  %5895 = vmatprep.subr.bf16.mxu1 %v6520_v2  ;;  %v4121_v0 = vld [vmem:[#allocation17 + $0x1f0] sm:$0xff]  ;;  %v4118_v1 = vld [vmem:[#allocation17 + $0x1d8] sm:$0xff] }
 0x8de   : > { %v4122_v2 = vld [vmem:[#allocation17 + $0x1f8] sm:$0xff]  ;;  %v6574_v45 = vcombine.high %v4117_v63, %v4121_v0  ;;  %v6573_v10 = vcombine.low %v4117_v63, %v4121_v0 }
 0x8df   : > { %5713 = vmatmul.mubr.bf16.vlgmr.msra.gmra.mrb[48].mxu0 %v8472_v44  ;;  %5799 = vmatmul.mubr.bf16.vlgmr.msra.gmra.mrb[48].mxu1 %v8472_v44  ;;  %v6576_v6 = vcombine.high %v4118_v1, %v4122_v2  ;;  %v6575_v11 = vcombine.low %v4118_v1, %v4122_v2 }
 0x8e0   : > { %5810 = vmatpush1.bf16.msra.mxu0 %v6517_v7  ;;  %5896 = vmatpush1.bf16.msra.mxu1 %v6519_v4  ;;  %v4125_v7 = vld [vmem:[#allocation17 + $0x210] sm:$0xff] }
 0x8e1   : > { %5811 = vmatprep.subr.bf16.mxu0 %v6526_v8  ;;  %5897 = vmatprep.subr.bf16.mxu1 %v6528_v9  ;;  %v4129_v4 = vld [vmem:[#allocation17 + $0x230] sm:$0xff]  ;;  %v4126_v8 = vld [vmem:[#allocation17 + $0x218] sm:$0xff] }
 0x8e2   : > { %5841 = vmatprep.mubr.bf16.mxu0 %v8458_v35  ;;  %5927 = vmatprep.mubr.bf16.mxu1 %v8458_v35  ;;  %v6552_v35 = vcombine.high %v4094_v42, %v4098_v43  ;;  %v4130_v9 = vld [vmem:[#allocation17 + $0x238] sm:$0xff]  ;;  %v6582_v12 = vcombine.high %v4125_v7, %v4129_v4  ;;  %v6581_v19 = vcombine.low %v4125_v7, %v4129_v4 }
 0x8e3   : > { %v6584_v13 = vcombine.high %v4126_v8, %v4130_v9  ;;  %v6583_v20 = vcombine.low %v4126_v8, %v4130_v9 }
 0x8e4   : > { %5812 = vmatpush1.bf16.msra.mxu0 %v6525_v14  ;;  %5898 = vmatpush1.bf16.msra.mxu1 %v6527_v15  ;;  %v4133_v14 = vld [vmem:[#allocation17 + $0x250] sm:$0xff] }
 0x8e5   : > { %5813 = vmatprep.subr.bf16.mxu0 %v6534_v16  ;;  %5899 = vmatprep.subr.bf16.mxu1 %v6536_v18  ;;  %v4137_v15 = vld [vmem:[#allocation17 + $0x270] sm:$0xff]  ;;  %v4134_v16 = vld [vmem:[#allocation17 + $0x258] sm:$0xff] }
 0x8e6   : > { %v4138_v18 = vld [vmem:[#allocation17 + $0x278] sm:$0xff]  ;;  %v6590_v23 = vcombine.high %v4133_v14, %v4137_v15  ;;  %v6589_v34 = vcombine.low %v4133_v14, %v4137_v15 }
 0x8e7   : > { %v6592_v24 = vcombine.high %v4134_v16, %v4138_v18  ;;  %v6591_v36 = vcombine.low %v4134_v16, %v4138_v18 }
 0x8e8   : > { %5814 = vmatpush1.bf16.msra.mxu0 %v6533_v25  ;;  %5900 = vmatpush1.bf16.msra.mxu1 %v6535_v28  ;;  %v4141_v25 = vld [vmem:[#allocation17 + $0x290] sm:$0xff] }
 0x8e9   : > { %5815 = vmatprep.subr.bf16.mxu0 %v6542_v29  ;;  %5901 = vmatprep.subr.bf16.mxu1 %v6544_v33  ;;  %v4145_v28 = vld [vmem:[#allocation17 + $0x2b0] sm:$0xff]  ;;  %v4142_v29 = vld [vmem:[#allocation17 + $0x298] sm:$0xff] }
 0x8ea   : > { %v4146_v33 = vld [vmem:[#allocation17 + $0x2b8] sm:$0xff]  ;;  %v6598_v42 = vcombine.high %v4141_v25, %v4145_v28  ;;  %v6597_v49 = vcombine.low %v4141_v25, %v4145_v28 }
 0x8eb   : > { %v6600_v43 = vcombine.high %v4142_v29, %v4146_v33  ;;  %v6599_v50 = vcombine.low %v4142_v29, %v4146_v33 }
 0x8ec   : > { %5816 = vmatpush1.bf16.msra.mxu0 %v6541_v46  ;;  %5902 = vmatpush1.bf16.msra.mxu1 %v6543_v47  ;;  %v4149_v46 = vld [vmem:[#allocation17 + $0x2d0] sm:$0xff] }
 0x8ed   : > { %5817 = vmatprep.subr.bf16.mxu0 %v6550_v48  ;;  %5903 = vmatprep.subr.bf16.mxu1 %v6552_v35  ;;  %v4153_v47 = vld [vmem:[#allocation17 + $0x2f0] sm:$0xff]  ;;  %v4150_v48 = vld [vmem:[#allocation17 + $0x2d8] sm:$0xff] }
 0x8ee   : > { %v4154_v35 = vld [vmem:[#allocation17 + $0x2f8] sm:$0xff]  ;;  %v6606_v51 = vcombine.high %v4149_v46, %v4153_v47  ;;  %v6605_v55 = vcombine.low %v4149_v46, %v4153_v47 }
 0x8ef   : > { %v6608_v39 = vcombine.high %v4150_v48, %v4154_v35  ;;  %v6607_v56 = vcombine.low %v4150_v48, %v4154_v35  ;;  %v4198_v46 = vld [vmem:[#allocation17 + $0x458] sm:$0xff] }
 0x8f0   : > { %5818 = vmatpush1.bf16.msra.mxu0 %v6549_v52  ;;  %5904 = vmatpush1.bf16.msra.mxu1 %v6551_v30  ;;  %v4157_v52 = vld [vmem:[#allocation17 + $0x310] sm:$0xff]  ;;  %v4202_v47 = vld [vmem:[#allocation17 + $0x478] sm:$0xff] }
 0x8f1   : > { %5819 = vmatprep.subr.bf16.mxu0 %v6558_v53  ;;  %5905 = vmatprep.subr.bf16.mxu1 %v6560_v54  ;;  %v4161_v30 = vld [vmem:[#allocation17 + $0x330] sm:$0xff]  ;;  %v4158_v53 = vld [vmem:[#allocation17 + $0x318] sm:$0xff] }
 0x8f2   : > { %v4162_v54 = vld [vmem:[#allocation17 + $0x338] sm:$0xff]  ;;  %v6614_v57 = vcombine.high %v4157_v52, %v4161_v30  ;;  %v6613_v63 = vcombine.low %v4157_v52, %v4161_v30 }
 0x8f3   : > { %v6616_v58 = vcombine.high %v4158_v53, %v4162_v54  ;;  %v6615_v0 = vcombine.low %v4158_v53, %v4162_v54  ;;  %v6656_v54 = vcombine.high %v4198_v46, %v4202_v47 }
 0x8f4   : > { %5820 = vmatpush1.bf16.msra.mxu0 %v6557_v59  ;;  %5906 = vmatpush1.bf16.msra.mxu1 %v6559_v60  ;;  %v4165_v59 = vld [vmem:[#allocation17 + $0x350] sm:$0xff] }
 0x8f5   : > { %5821 = vmatprep.subr.bf16.mxu0 %v6566_v61  ;;  %5907 = vmatprep.subr.bf16.mxu1 %v6568_v62  ;;  %v4169_v60 = vld [vmem:[#allocation17 + $0x370] sm:$0xff]  ;;  %v4166_v61 = vld [vmem:[#allocation17 + $0x358] sm:$0xff] }
 0x8f6   : > { %v4170_v62 = vld [vmem:[#allocation17 + $0x378] sm:$0xff]  ;;  %v6622_v1 = vcombine.high %v4165_v59, %v4169_v60  ;;  %v6621_v7 = vcombine.low %v4165_v59, %v4169_v60  ;;  %v6655_v60 = vcombine.low %v4198_v46, %v4202_v47  ;;  %v4245_v46 = vld [vmem:[#allocation17 + $0x5d0] sm:$0xff] }
 0x8f7   : > { %v6624_v2 = vcombine.high %v4166_v61, %v4170_v62  ;;  %v6623_v4 = vcombine.low %v4166_v61, %v4170_v62  ;;  %v4249_v47 = vld [vmem:[#allocation17 + $0x5f0] sm:$0xff] }
 0x8f8   : > { %5822 = vmatpush1.bf16.msra.mxu0 %v6565_v3  ;;  %5908 = vmatpush1.bf16.msra.mxu1 %v6567_v5  ;;  %v4173_v3 = vld [vmem:[#allocation17 + $0x390] sm:$0xff] }
 0x8f9   : > { %5823 = vmatprep.subr.bf16.mxu0 %v6574_v45  ;;  %5909 = vmatprep.subr.bf16.mxu1 %v6576_v6  ;;  %v4177_v5 = vld [vmem:[#allocation17 + $0x3b0] sm:$0xff]  ;;  %v4174_v45 = vld [vmem:[#allocation17 + $0x398] sm:$0xff] }
 0x8fa   : > { %v4178_v6 = vld [vmem:[#allocation17 + $0x3b8] sm:$0xff]  ;;  %v6630_v8 = vcombine.high %v4173_v3, %v4177_v5  ;;  %v6629_v14 = vcombine.low %v4173_v3, %v4177_v5 }
 0x8fb   : > { %v6632_v9 = vcombine.high %v4174_v45, %v4178_v6  ;;  %v6631_v15 = vcombine.low %v4174_v45, %v4178_v6  ;;  %v4221_v6 = vld [vmem:[#allocation17 + $0x510] sm:$0xff] }
 0x8fc   : > { %5824 = vmatpush1.bf16.msra.mxu0 %v6573_v10  ;;  %5910 = vmatpush1.bf16.msra.mxu1 %v6575_v11  ;;  %v4181_v10 = vld [vmem:[#allocation17 + $0x3d0] sm:$0xff] }
 0x8fd   : > { %5825 = vmatprep.subr.bf16.mxu0 %v6582_v12  ;;  %5911 = vmatprep.subr.bf16.mxu1 %v6584_v13  ;;  %v4185_v11 = vld [vmem:[#allocation17 + $0x3f0] sm:$0xff]  ;;  %v4182_v12 = vld [vmem:[#allocation17 + $0x3d8] sm:$0xff] }
 0x8fe   : > { %v4186_v13 = vld [vmem:[#allocation17 + $0x3f8] sm:$0xff]  ;;  %v6638_v16 = vcombine.high %v4181_v10, %v4185_v11  ;;  %v6637_v25 = vcombine.low %v4181_v10, %v4185_v11 }
 0x8ff   : > { %v6640_v18 = vcombine.high %v4182_v12, %v4186_v13  ;;  %v6639_v28 = vcombine.low %v4182_v12, %v4186_v13  ;;  %v4229_v12 = vld [vmem:[#allocation17 + $0x550] sm:$0xff] }
 0x900   : > { %5826 = vmatpush1.bf16.msra.mxu0 %v6581_v19  ;;  %5912 = vmatpush1.bf16.msra.mxu1 %v6583_v20  ;;  %v4189_v19 = vld [vmem:[#allocation17 + $0x410] sm:$0xff] }
 0x901   : > { %5827 = vmatprep.subr.bf16.mxu0 %v6590_v23  ;;  %5913 = vmatprep.subr.bf16.mxu1 %v6592_v24  ;;  %v4193_v20 = vld [vmem:[#allocation17 + $0x430] sm:$0xff]  ;;  %v4190_v23 = vld [vmem:[#allocation17 + $0x418] sm:$0xff] }
 0x902   : > { %v4194_v24 = vld [vmem:[#allocation17 + $0x438] sm:$0xff]  ;;  %v6646_v29 = vcombine.high %v4189_v19, %v4193_v20  ;;  %v4233_v13 = vld [vmem:[#allocation17 + $0x570] sm:$0xff] }
 0x903   : > { %v6648_v33 = vcombine.high %v4190_v23, %v4194_v24 }
 0x904   : > { %5828 = vmatpush1.bf16.msra.mxu0 %v6589_v34  ;;  %5914 = vmatpush1.bf16.msra.mxu1 %v6591_v36  ;;  %v4197_v34 = vld [vmem:[#allocation17 + $0x450] sm:$0xff] }
 0x905   : > { %5829 = vmatprep.subr.bf16.mxu0 %v6598_v42  ;;  %5915 = vmatprep.subr.bf16.mxu1 %v6600_v43  ;;  %v4201_v43 = vld [vmem:[#allocation17 + $0x470] sm:$0xff] }
 0x906   : > { %v6654_v53 = vcombine.high %v4197_v34, %v4201_v43  ;;  %v6653_v59 = vcombine.low %v4197_v34, %v4201_v43 }
 0x908   : > { %5830 = vmatpush1.bf16.msra.mxu0 %v6597_v49  ;;  %5916 = vmatpush1.bf16.msra.mxu1 %v6599_v50 }
 0x909   : > { %5831 = vmatprep.subr.bf16.mxu0 %v6606_v51  ;;  %5917 = vmatprep.subr.bf16.mxu1 %v6608_v39  ;;  %v6645_v51 = vcombine.low %v4189_v19, %v4193_v20  ;;  %v6647_v39 = vcombine.low %v4190_v23, %v4194_v24  ;;  %v6686_v19 = vcombine.high %v4229_v12, %v4233_v13  ;;  %v4237_v23 = vld [vmem:[#allocation17 + $0x590] sm:$0xff] }
 0x90a   : > { %v4241_v24 = vld [vmem:[#allocation17 + $0x5b0] sm:$0xff] }
 0x90b   : > { %v6694_v34 = vcombine.high %v4237_v23, %v4241_v24 }
 0x90c   : > { %5832 = vmatpush1.bf16.msra.mxu0 %v6605_v55  ;;  %5918 = vmatpush1.bf16.msra.mxu1 %v6607_v56  ;;  %v4205_v55 = vld [vmem:[#allocation17 + $0x490] sm:$0xff] }
 0x90d   : > { %5833 = vmatprep.subr.bf16.mxu0 %v6614_v57  ;;  %5919 = vmatprep.subr.bf16.mxu1 %v6616_v58  ;;  %v4209_v56 = vld [vmem:[#allocation17 + $0x4b0] sm:$0xff]  ;;  %v4206_v57 = vld [vmem:[#allocation17 + $0x498] sm:$0xff] }
 0x90e   : > { %v4210_v58 = vld [vmem:[#allocation17 + $0x4b8] sm:$0xff]  ;;  %v6662_v61 = vcombine.high %v4205_v55, %v4209_v56  ;;  %v6661_v3 = vcombine.low %v4205_v55, %v4209_v56 }
 0x90f   : > { %v6664_v62 = vcombine.high %v4206_v57, %v4210_v58 }
 0x910   : > { %5834 = vmatpush1.bf16.msra.mxu0 %v6613_v63  ;;  %5920 = vmatpush1.bf16.msra.mxu1 %v6615_v0  ;;  %v4213_v63 = vld [vmem:[#allocation17 + $0x4d0] sm:$0xff] }
 0x911   : > { %5835 = vmatprep.subr.bf16.mxu0 %v6622_v1  ;;  %5921 = vmatprep.subr.bf16.mxu1 %v6624_v2  ;;  %v4217_v0 = vld [vmem:[#allocation17 + $0x4f0] sm:$0xff]  ;;  %v4214_v1 = vld [vmem:[#allocation17 + $0x4d8] sm:$0xff] }
 0x912   : > { %v4218_v2 = vld [vmem:[#allocation17 + $0x4f8] sm:$0xff]  ;;  %v6670_v5 = vcombine.high %v4213_v63, %v4217_v0 }
 0x913   : > { %v6672_v45 = vcombine.high %v4214_v1, %v4218_v2  ;;  %v6671_v10 = vcombine.low %v4214_v1, %v4218_v2  ;;  %v6702_v1 = vcombine.high %v4245_v46, %v4249_v47 }
 0x914   : > { %5836 = vmatpush1.bf16.msra.mxu0 %v6621_v7  ;;  %5922 = vmatpush1.bf16.msra.mxu1 %v6623_v4  ;;  %v4225_v7 = vld [vmem:[#allocation17 + $0x530] sm:$0xff]  ;;  %v4222_v4 = vld [vmem:[#allocation17 + $0x518] sm:$0xff] }
 0x915   : > { %5837 = vmatprep.subr.bf16.mxu0 %v6630_v8  ;;  %5923 = vmatprep.subr.bf16.mxu1 %v6632_v9  ;;  %v4226_v8 = vld [vmem:[#allocation17 + $0x538] sm:$0xff]  ;;  %v6669_v9 = vcombine.low %v4213_v63, %v4217_v0  ;;  %v6678_v11 = vcombine.high %v4221_v6, %v4225_v7 }
 0x918   : > { %5838 = vmatpush1.bf16.msra.mxu0 %v6629_v14  ;;  %5924 = vmatpush1.bf16.msra.mxu1 %v6631_v15  ;;  %v4230_v14 = vld [vmem:[#allocation17 + $0x558] sm:$0xff] }
 0x919   : > { %5839 = vmatprep.subr.bf16.mxu0 %v6638_v16  ;;  %5925 = vmatprep.subr.bf16.mxu1 %v6640_v18  ;;  %v4234_v15 = vld [vmem:[#allocation17 + $0x578] sm:$0xff]  ;;  %v6677_v16 = vcombine.low %v4221_v6, %v4225_v7  ;;  %v6679_v18 = vcombine.low %v4222_v4, %v4226_v8  ;;  %v4253_v6 = vld [vmem:[#allocation17 + $0x610] sm:$0xff] }
 0x91a   : > { %v9101_v36 = vpop.f32.mrb[40].mxu0  ;;  %v9103_v42 = vpop.f32.mrb[40].mxu1  ;;  %v6688_v20 = vcombine.high %v4230_v14, %v4234_v15 }
 0x91b   : > { %v9105_v48 = vpop.f32.mrb[41].mxu0  ;;  %v9107_v35 = vpop.f32.mrb[41].mxu1 }
 0x91c   : > { %v9109_v49 = vpop.f32.mrb[42].mxu0  ;;  %v9111_v50 = vpop.f32.mrb[42].mxu1  ;;  %5840 = vmatpush1.bf16.msra.mxu0 %v6637_v25  ;;  %5926 = vmatpush1.bf16.msra.mxu1 %v6639_v28  ;;  %v4238_v25 = vld [vmem:[#allocation17 + $0x598] sm:$0xff] }
 0x91d   : > { %v9113_v52 = vpop.f32.mrb[43].mxu0  ;;  %v9115_v30 = vpop.f32.mrb[43].mxu1  ;;  %5852 = vmatprep.subr.bf16.mxu0 %v6646_v29  ;;  %5938 = vmatprep.subr.bf16.mxu1 %v6648_v33  ;;  %v4242_v28 = vld [vmem:[#allocation17 + $0x5b8] sm:$0xff]  ;;  %v6685_v29 = vcombine.low %v4229_v12, %v4233_v13  ;;  %v6687_v33 = vcombine.low %v4230_v14, %v4234_v15  ;;  %v4261_v12 = vld [vmem:[#allocation17 + $0x650] sm:$0xff] }
 0x91e   : > { %v6696_v43 = vcombine.high %v4238_v25, %v4242_v28  ;;  %v4265_v13 = vld [vmem:[#allocation17 + $0x670] sm:$0xff]  ;;  %v4262_v14 = vld [vmem:[#allocation17 + $0x658] sm:$0xff] }
 0x91f   : > { %5842 = vmatmul.mubr.bf16.vlgmr.msra.gmra.mrb[52].mxu0 %v8466_v41  ;;  %5928 = vmatmul.mubr.bf16.vlgmr.msra.gmra.mrb[52].mxu1 %v8466_v41  ;;  %v6663_v41 = vcombine.low %v4206_v57, %v4210_v58  ;;  %v4266_v15 = vld [vmem:[#allocation17 + $0x678] sm:$0xff] }
 0x920   : > { %5853 = vmatpush1.bf16.msra.mxu0 %v6645_v51  ;;  %5939 = vmatpush1.bf16.msra.mxu1 %v6647_v39 }
 0x921   : > { %5854 = vmatprep.subr.bf16.mxu0 %v6654_v53  ;;  %5940 = vmatprep.subr.bf16.mxu1 %v6656_v54  ;;  %v4246_v53 = vld [vmem:[#allocation17 + $0x5d8] sm:$0xff] }
 0x922   : > { %5884 = vmatprep.mubr.bf16.mxu0 %v8464_v40  ;;  %5970 = vmatprep.mubr.bf16.mxu1 %v8464_v40  ;;  %v6680_v40 = vcombine.high %v4222_v4, %v4226_v8  ;;  %v4250_v54 = vld [vmem:[#allocation17 + $0x5f8] sm:$0xff]  ;;  %v4257_v8 = vld [vmem:[#allocation17 + $0x630] sm:$0xff] }
 0x924   : > { %5855 = vmatpush1.bf16.msra.mxu0 %v6653_v59  ;;  %5941 = vmatpush1.bf16.msra.mxu1 %v6655_v60  ;;  %v6693_v59 = vcombine.low %v4237_v23, %v4241_v24  ;;  %v6695_v60 = vcombine.low %v4238_v25, %v4242_v28  ;;  %v4270_v23 = vld [vmem:[#allocation17 + $0x698] sm:$0xff]  ;;  %v6717_v25 = vcombine.low %v4261_v12, %v4265_v13 }
 0x925   : > { %5856 = vmatprep.subr.bf16.mxu0 %v6662_v61  ;;  %5942 = vmatprep.subr.bf16.mxu1 %v6664_v62  ;;  %v4274_v24 = vld [vmem:[#allocation17 + $0x6b8] sm:$0xff]  ;;  %v6719_v28 = vcombine.low %v4262_v14, %v4266_v15 }
 0x928   : > { %5857 = vmatpush1.bf16.msra.mxu0 %v6661_v3  ;;  %5943 = vmatpush1.bf16.msra.mxu1 %v6663_v41 }
 0x929   : > { %5858 = vmatprep.subr.bf16.mxu0 %v6670_v5  ;;  %5944 = vmatprep.subr.bf16.mxu1 %v6672_v45  ;;  %v6704_v45 = vcombine.high %v4246_v53, %v4250_v54 }
 0x92c   : > { %5859 = vmatpush1.bf16.msra.mxu0 %v6669_v9  ;;  %5945 = vmatpush1.bf16.msra.mxu1 %v6671_v10  ;;  %v4254_v9 = vld [vmem:[#allocation17 + $0x618] sm:$0xff] }
 0x92d   : > { %5860 = vmatprep.subr.bf16.mxu0 %v6678_v11  ;;  %5946 = vmatprep.subr.bf16.mxu1 %v6680_v40  ;;  %v4258_v10 = vld [vmem:[#allocation17 + $0x638] sm:$0xff]  ;;  %v6710_v11 = vcombine.high %v4253_v6, %v4257_v8 }
 0x92e   : > { %v6712_v40 = vcombine.high %v4254_v9, %v4258_v10 }
 0x930   : > { %5861 = vmatpush1.bf16.msra.mxu0 %v6677_v16  ;;  %5947 = vmatpush1.bf16.msra.mxu1 %v6679_v18  ;;  %v6718_v16 = vcombine.high %v4261_v12, %v4265_v13  ;;  %v6720_v18 = vcombine.high %v4262_v14, %v4266_v15  ;;  %v4302_v12 = vld [vmem:[#allocation17 + $0x798] sm:$0xff] }
 0x931   : > { %5862 = vmatprep.subr.bf16.mxu0 %v6686_v19  ;;  %5948 = vmatprep.subr.bf16.mxu1 %v6688_v20  ;;  %v4269_v19 = vld [vmem:[#allocation17 + $0x690] sm:$0xff]  ;;  %v4306_v13 = vld [vmem:[#allocation17 + $0x7b8] sm:$0xff] }
 0x932   : > { %v3949_v51 = vpop.f32.mrb[44].mxu0  ;;  %v3992_v39 = vpop.f32.mrb[44].mxu1  ;;  %v4273_v20 = vld [vmem:[#allocation17 + $0x6b0] sm:$0xff] }
 0x933   : > { %v9122_v55 = vadd.f32 %v9083_v31, %v3949_v51  ;;  %v9125_v56 = vadd.f32 %v9087_v32, %v3992_v39  ;;  %v3951_v57 = vpop.f32.mrb[45].mxu0  ;;  %v3994_v58 = vpop.f32.mrb[45].mxu1  ;;  %v6725_v51 = vcombine.low %v4269_v19, %v4273_v20  ;;  %v6727_v39 = vcombine.low %v4270_v23, %v4274_v24 }
 0x934   : > { %v9128_v61 = vadd.f32 %v9091_v37, %v3951_v57  ;;  %v9131_v62 = vadd.f32 %v9095_v38, %v3994_v58  ;;  %v3953_v63 = vpop.f32.mrb[46].mxu0  ;;  %v3996_v0 = vpop.f32.mrb[46].mxu1  ;;  %5863 = vmatpush1.bf16.msra.mxu0 %v6685_v29  ;;  %5949 = vmatpush1.bf16.msra.mxu1 %v6687_v33  ;;  %v6726_v29 = vcombine.high %v4269_v19, %v4273_v20  ;;  %v4285_v57 = vld [vmem:[#allocation17 + $0x710] sm:$0xff]  ;;  %v4310_v19 = vld [vmem:[#allocation17 + $0x7d8] sm:$0xff] }
 0x935   : > { %v9134_v2 = vadd.f32 %v9083_v31, %v3953_v63  ;;  %v9137_v3 = vadd.f32 %v9087_v32, %v3996_v0  ;;  %v3955_v41 = vpop.f32.mrb[47].mxu0  ;;  %v3998_v5 = vpop.f32.mrb[47].mxu1  ;;  %5864 = vmatprep.subr.bf16.mxu0 %v6694_v34  ;;  %5950 = vmatprep.subr.bf16.mxu1 %v6696_v43  ;;  %v6701_v31 = vcombine.low %v4245_v46, %v4249_v47  ;;  %v4277_v34 = vld [vmem:[#allocation17 + $0x6d0] sm:$0xff]  ;;  %v4278_v46 = vld [vmem:[#allocation17 + $0x6d8] sm:$0xff] }
 0x936   : > { %v9140_v7 = vadd.f32 %v9091_v37, %v3955_v41  ;;  %v9143_v4 = vadd.f32 %v9095_v38, %v3998_v5  ;;  %v6703_v32 = vcombine.low %v4246_v53, %v4250_v54  ;;  %v6709_v37 = vcombine.low %v4253_v6, %v4257_v8  ;;  %v4281_v43 = vld [vmem:[#allocation17 + $0x6f0] sm:$0xff]  ;;  %v4282_v47 = vld [vmem:[#allocation17 + $0x6f8] sm:$0xff] }
 0x937   : > { %v6711_v38 = vcombine.low %v4254_v9, %v4258_v10  ;;  %v6728_v33 = vcombine.high %v4270_v23, %v4274_v24  ;;  %v6734_v53 = vcombine.high %v4277_v34, %v4281_v43  ;;  %v6736_v54 = vcombine.high %v4278_v46, %v4282_v47  ;;  %v4289_v58 = vld [vmem:[#allocation17 + $0x730] sm:$0xff]  ;;  %v4294_v6 = vld [vmem:[#allocation17 + $0x758] sm:$0xff] }
 0x938   : > { %5865 = vmatpush1.bf16.msra.mxu0 %v6693_v59  ;;  %5951 = vmatpush1.bf16.msra.mxu1 %v6695_v60  ;;  %v4286_v59 = vld [vmem:[#allocation17 + $0x718] sm:$0xff]  ;;  %v6733_v63 = vcombine.low %v4277_v34, %v4281_v43  ;;  %v6735_v0 = vcombine.low %v4278_v46, %v4282_v47  ;;  %v4293_v5 = vld [vmem:[#allocation17 + $0x750] sm:$0xff]  ;;  %v6741_v9 = vcombine.low %v4285_v57, %v4289_v58  ;;  %v4005_v34 = vsub.s32 0, %v9072_v17 }
 0x939   : > { %5866 = vmatprep.subr.bf16.mxu0 %v6702_v1  ;;  %5952 = vmatprep.subr.bf16.mxu1 %v6704_v45  ;;  %v4290_v60 = vld [vmem:[#allocation17 + $0x738] sm:$0xff]  ;;  %v6742_v1 = vcombine.high %v4285_v57, %v4289_v58  ;;  %v4297_v45 = vld [vmem:[#allocation17 + $0x770] sm:$0xff]  ;;  %v6759_v24 = vcombine.low %v4302_v12, %v4306_v13  ;;  %v4013_v43 = vsub.s32 2, %v9072_v17  ;;  %v4009_v46 = vsub.s32 1, %v9072_v17 }
 0x93a   : > { %v6744_v41 = vcombine.high %v4286_v59, %v4290_v60  ;;  %v4298_v8 = vld [vmem:[#allocation17 + $0x778] sm:$0xff]  ;;  %v6743_v10 = vcombine.low %v4286_v59, %v4290_v60  ;;  %v6749_v14 = vcombine.low %v4293_v5, %v4297_v45  ;;  %v4017_v47 = vsub.s32 3, %v9072_v17 }
 0x93b   : > { %v6751_v15 = vcombine.low %v4294_v6, %v4298_v8  ;;  %v4314_v20 = vld [vmem:[#allocation17 + $0x7f8] sm:$0xff] }
 0x93c   : > { %5867 = vmatpush1.bf16.msra.mxu0 %v6701_v31  ;;  %5953 = vmatpush1.bf16.msra.mxu1 %v6703_v32  ;;  %v6750_v31 = vcombine.high %v4293_v5, %v4297_v45  ;;  %v6752_v32 = vcombine.high %v4294_v6, %v4298_v8 }
 0x93d   : > { %5868 = vmatprep.subr.bf16.mxu0 %v6710_v11  ;;  %5954 = vmatprep.subr.bf16.mxu1 %v6712_v40  ;;  %v4301_v11 = vld [vmem:[#allocation17 + $0x790] sm:$0xff] }
 0x93e   : > { %v4305_v40 = vld [vmem:[#allocation17 + $0x7b0] sm:$0xff] }
 0x93f   : > { %v6757_v23 = vcombine.low %v4301_v11, %v4305_v40 }
 0x940   : > { %5869 = vmatpush1.bf16.msra.mxu0 %v6709_v37  ;;  %5955 = vmatpush1.bf16.msra.mxu1 %v6711_v38  ;;  %v6758_v37 = vcombine.high %v4301_v11, %v4305_v40  ;;  %v6760_v38 = vcombine.high %v4302_v12, %v4306_v13 }
 0x941   : > { %5870 = vmatprep.subr.bf16.mxu0 %v6718_v16  ;;  %5956 = vmatprep.subr.bf16.mxu1 %v6720_v18  ;;  %v4309_v16 = vld [vmem:[#allocation17 + $0x7d0] sm:$0xff] }
 0x942   : > { %v4313_v18 = vld [vmem:[#allocation17 + $0x7f0] sm:$0xff] }
 0x944   : > { %5871 = vmatpush1.bf16.msra.mxu0 %v6717_v25  ;;  %5957 = vmatpush1.bf16.msra.mxu1 %v6719_v28  ;;  %v6766_v25 = vcombine.high %v4309_v16, %v4313_v18  ;;  %v6768_v28 = vcombine.high %v4310_v19, %v4314_v20 }
 0x945   : > { %5872 = vmatprep.subr.bf16.mxu0 %v6726_v29  ;;  %5958 = vmatprep.subr.bf16.mxu1 %v6728_v33  ;;  %v6765_v29 = vcombine.low %v4309_v16, %v4313_v18  ;;  %v6767_v33 = vcombine.low %v4310_v19, %v4314_v20 }
 0x948   : > { %5873 = vmatpush1.bf16.msra.mxu0 %v6725_v51  ;;  %5959 = vmatpush1.bf16.msra.mxu1 %v6727_v39  ;;  %v7544_v51 = vld [vmem:[%s9354_s1] sm:$0xff] }
 0x949   : > { %5874 = vmatprep.subr.bf16.mxu0 %v6734_v53  ;;  %5960 = vmatprep.subr.bf16.mxu1 %v6736_v54  ;;  %v4006_v39 = vrot.slane %v7544_v51, %v4005_v34  ;;  %v4014_v53 = vrot.slane %v7544_v51, %v4013_v43  ;;  %v4010_v54 = vrot.slane %v7544_v51, %v4009_v46 }
 0x94a   : > { %v4018_v57 = vrot.slane %v7544_v51, %v4017_v47 }
 0x94b   : > { %v4043_v58 = vadd.f32 %v4006_v39, %v9101_v36  ;;  %v4045_v59 = vadd.f32 %v4014_v53, %v9103_v42  ;;  %v4044_v60 = vadd.f32 %v4010_v54, %v9105_v48  ;;  %v4052_v45 = vadd.f32 %v4010_v54, %v9113_v52 }
 0x94c   : > { %5875 = vmatpush1.bf16.msra.mxu0 %v6733_v63  ;;  %5961 = vmatpush1.bf16.msra.mxu1 %v6735_v0  ;;  %v4046_v63 = vadd.f32 %v4018_v57, %v9107_v35  ;;  %v4051_v0 = vadd.f32 %v4006_v39, %v9109_v49  ;;  %v4054_v6 = vadd.f32 %v4018_v57, %v9115_v30 }
 0x94d   : > { %5876 = vmatprep.subr.bf16.mxu0 %v6742_v1  ;;  %5962 = vmatprep.subr.bf16.mxu1 %v6744_v41  ;;  %v4053_v1 = vadd.f32 %v4014_v53, %v9111_v50  ;;  %v5981_v8 = vmul.f32 0.1, %v4043_v58  ;;  %v5983_v48 = vmul.f32 0.1, %v4045_v59  ;;  %v5982_v35 = vmul.f32 0.1, %v4044_v60 }
 0x94e   : > { %v5989_v50 = vmul.f32 0.1, %v4051_v0  ;;  %v5990_v52 = vmul.f32 0.1, %v4052_v45  ;;  %v5992_v13 = vmul.f32 0.1, %v4054_v6 }
 0x94f   : > { %v5986_v45 = vmul.f32 0.1, %v9128_v61 }
 0x950   : > { %5877 = vmatpush1.bf16.msra.mxu0 %v6741_v9  ;;  %5963 = vmatpush1.bf16.msra.mxu1 %v6743_v10  ;;  %v5984_v9 = vmul.f32 0.1, %v4046_v63 }
 0x951   : > { %5878 = vmatprep.subr.bf16.mxu0 %v6750_v31  ;;  %5964 = vmatprep.subr.bf16.mxu1 %v6752_v32  ;;  %v5991_v31 = vmul.f32 0.1, %v4053_v1 }
 0x954   : > { %5879 = vmatpush1.bf16.msra.mxu0 %v6749_v14  ;;  %5965 = vmatpush1.bf16.msra.mxu1 %v6751_v15 }
 0x955   : > { %5880 = vmatprep.subr.bf16.mxu0 %v6758_v37  ;;  %5966 = vmatprep.subr.bf16.mxu1 %v6760_v38 }
 0x958   : > { %5881 = vmatpush1.bf16.msra.mxu0 %v6757_v23  ;;  %5967 = vmatpush1.bf16.msra.mxu1 %v6759_v24 }
 0x959   : > { %5882 = vmatprep.subr.bf16.mxu0 %v6766_v25  ;;  %5968 = vmatprep.subr.bf16.mxu1 %v6768_v28 }
 0x95c   : > { %5883 = vmatpush1.bf16.msra.mxu0 %v6765_v29  ;;  %5969 = vmatpush1.bf16.msra.mxu1 %v6767_v33 }
 0x95f   : > { %5885 = vmatmul.mubr.bf16.vlgmr.msra.gmra.mrb[52].mxu0 %v8472_v44  ;;  %5971 = vmatmul.mubr.bf16.vlgmr.msra.gmra.mrb[52].mxu1 %v8472_v44  ;;  %v9157_v44 = vld [vmem:[%s9355_s19] sm:$0xff]  ;;  %s7799_s19 = scalar_lea.vmem %s9213_s4, 2048 }
 0x960   : > { %v4320_v41 = vrot.slane %v9157_v44, %v4005_v34  ;;  %v4328_v5 = vrot.slane %v9157_v44, %v4013_v43  ;;  %v4324_v36 = vrot.slane %v9157_v44, %v4009_v46  ;;  %v4332_v42 = vrot.slane %v9157_v44, %v4017_v47  ;;  %p7800_p4 = scmp.ne.s32.totalorder %s9213_s4, %s7799_s19  ;;  %p7807_p8 = scmp.lt.s32.totalorder %s7805_s23, %s7799_s19 }
 0x961   : > { %v4336_v60 = vrot.slane %v9157_v44, %v4021_v21  ;;  %v4344_v63 = vrot.slane %v9157_v44, %v4029_v22  ;;  %v4340_v0 = vrot.slane %v9157_v44, %v4025_v26  ;;  %v4348_v1 = vrot.slane %v9157_v44, %v4033_v27 }
 0x962   : > { %v5988_v21 = vmul.f32 0.1, %v9131_v62  ;;  %v5993_v22 = vmul.f32 0.1, %v9134_v2  ;;  %v5994_v27 = vmul.f32 0.1, %v9140_v7  ;;  %p7801_p13 = pnand %p7800_p4, %p9357_p1  ;;  %p7808_p10 = por %p7807_p8, %p7806_p2 }
 0x964   : > { %p7802_p0 = pneg %p7801_p13 }
 0x966   : > { %p7809_p11 = pnand %p7808_p10, %p7802_p0 }
 0x9b2   : > { %v5714_v49 = vpop.f32.mrb[48].mxu0  ;;  %v5800_v10 = vpop.f32.mrb[48].mxu1 }
 0x9b3   : > { %v7208_v32 = vadd.f32 %v5714_v49, %v4320_v41  ;;  %v7212_v11 = vadd.f32 %v5800_v10, %v4328_v5  ;;  %v5716_v40 = vpop.f32.mrb[49].mxu0  ;;  %v5802_v12 = vpop.f32.mrb[49].mxu1 }
 0x9b4   : > { %v7209_v30 = vadd.f32 %v5716_v40, %v4324_v36  ;;  %v7213_v14 = vadd.f32 %v5802_v12, %v4332_v42  ;;  %v5718_v15 = vpop.f32.mrb[50].mxu0  ;;  %v5804_v37 = vpop.f32.mrb[50].mxu1 }
 0x9b5   : > { %v5997_v38 = vadd.f32 %v7208_v32, %v5981_v8  ;;  %v5999_v16 = vadd.f32 %v7212_v11, %v5983_v48  ;;  %v7210_v18 = vadd.f32 %v5718_v15, %v4320_v41  ;;  %v7214_v19 = vadd.f32 %v5804_v37, %v4328_v5  ;;  %v5720_v20 = vpop.f32.mrb[51].mxu0  ;;  %v5806_v23 = vpop.f32.mrb[51].mxu1 }
 0x9b6   : > { %v5998_v24 = vadd.f32 %v7209_v30, %v5982_v35  ;;  %v6000_v25 = vadd.f32 %v7213_v14, %v5984_v9  ;;  %v7211_v28 = vadd.f32 %v5720_v20, %v4324_v36  ;;  %v7215_v29 = vadd.f32 %v5806_v23, %v4332_v42 }
 0x9b7   : > { %v6013_v33 = vmax.f32 %v5997_v38, 0.0  ;;  %v6015_v34 = vmax.f32 %v5999_v16, 0.0  ;;  %v6005_v43 = vadd.f32 %v7210_v18, %v5989_v50  ;;  %v6007_v46 = vadd.f32 %v7214_v19, %v5991_v31 }
 0x9b8   : > { %v6014_v47 = vmax.f32 %v5998_v24, 0.0  ;;  %v6016_v51 = vmax.f32 %v6000_v25, 0.0  ;;  %v6006_v39 = vadd.f32 %v7211_v28, %v5990_v52  ;;  %v6008_v53 = vadd.f32 %v7215_v29, %v5992_v13 }
 0x9b9   : > { %6029 = vst [vmem:[%s9174_s17] sm:$0xff] %v6013_v33  ;;  %6031 = vst [vmem:[%s9174_s17 + $0x10] sm:$0xff] %v6015_v34  ;;  %v6021_v54 = vmax.f32 %v6005_v43, 0.0  ;;  %v6023_v57 = vmax.f32 %v6007_v46, 0.0  ;;  %v5985_v41 = vmul.f32 0.1, %v9122_v55 }
 0x9ba   : > { %6030 = vst [vmem:[%s9174_s17 + $0x8] sm:$0xff] %v6014_v47  ;;  %6032 = vst [vmem:[%s9174_s17 + $0x18] sm:$0xff] %v6016_v51  ;;  %v6022_v58 = vmax.f32 %v6006_v39, 0.0  ;;  %v6024_v59 = vmax.f32 %v6008_v53, 0.0  ;;  %v5987_v5 = vmul.f32 0.1, %v9125_v56 }
 0x9bb   : > { %6037 = vst [vmem:[%s9174_s17 + $0x40] sm:$0xff] %v6021_v54  ;;  %6039 = vst [vmem:[%s9174_s17 + $0x50] sm:$0xff] %v6023_v57  ;;  %v5995_v42 = vmul.f32 0.1, %v9137_v3  ;;  %v5996_v55 = vmul.f32 0.1, %v9143_v4 }
 0x9bc   : > { %6038 = vst [vmem:[%s9174_s17 + $0x48] sm:$0xff] %v6022_v58  ;;  %6040 = vst [vmem:[%s9174_s17 + $0x58] sm:$0xff] %v6024_v59 }
 0xa32   : > { %v5886_v6 = vpop.f32.mrb[52].mxu0  ;;  %v5972_v36 = vpop.f32.mrb[52].mxu1 }
 0xa33   : > { %v7216_v8 = vadd.f32 %v5886_v6, %v4336_v60  ;;  %v7220_v26 = vadd.f32 %v5972_v36, %v4344_v63  ;;  %v5888_v48 = vpop.f32.mrb[53].mxu0  ;;  %v5974_v17 = vpop.f32.mrb[53].mxu1 }
 0xa34   : > { %v7217_v56 = vadd.f32 %v5888_v48, %v4340_v0  ;;  %v7221_v61 = vadd.f32 %v5974_v17, %v4348_v1  ;;  %v5890_v44 = vpop.f32.mrb[54].mxu0  ;;  %v5976_v62 = vpop.f32.mrb[54].mxu1 }
 0xa35   : > { %v6001_v35 = vadd.f32 %v7216_v8, %v5985_v41  ;;  %v6003_v9 = vadd.f32 %v7220_v26, %v5987_v5  ;;  %v7218_v49 = vadd.f32 %v5890_v44, %v4336_v60  ;;  %v7222_v2 = vadd.f32 %v5976_v62, %v4344_v63  ;;  %v5892_v10 = vpop.f32.mrb[55].mxu0  ;;  %v5978_v3 = vpop.f32.mrb[55].mxu1 }
 0xa36   : > { %v6002_v50 = vadd.f32 %v7217_v56, %v5986_v45  ;;  %v6004_v31 = vadd.f32 %v7221_v61, %v5988_v21  ;;  %v7219_v32 = vadd.f32 %v5892_v10, %v4340_v0  ;;  %v7223_v7 = vadd.f32 %v5978_v3, %v4348_v1 }
 0xa37   : > { %v6017_v4 = vmax.f32 %v6001_v35, 0.0  ;;  %v6019_v11 = vmax.f32 %v6003_v9, 0.0  ;;  %v6009_v40 = vadd.f32 %v7218_v49, %v5993_v22  ;;  %v6011_v12 = vadd.f32 %v7222_v2, %v5995_v42 }
 0xa38   : > { %v6018_v52 = vmax.f32 %v6002_v50, 0.0  ;;  %v6020_v13 = vmax.f32 %v6004_v31, 0.0  ;;  %v6010_v30 = vadd.f32 %v7219_v32, %v5994_v27  ;;  %v6012_v14 = vadd.f32 %v7223_v7, %v5996_v55 }
 0xa39   : > { %6033 = vst [vmem:[%s9174_s17 + $0x20] sm:$0xff] %v6017_v4  ;;  %6035 = vst [vmem:[%s9174_s17 + $0x30] sm:$0xff] %v6019_v11  ;;  %v6025_v15 = vmax.f32 %v6009_v40, 0.0  ;;  %v6027_v37 = vmax.f32 %v6011_v12, 0.0 }
 0xa3a   : > { %6034 = vst [vmem:[%s9174_s17 + $0x28] sm:$0xff] %v6018_v52  ;;  %6036 = vst [vmem:[%s9174_s17 + $0x38] sm:$0xff] %v6020_v13  ;;  %v6026_v38 = vmax.f32 %v6010_v30, 0.0  ;;  %v6028_v16 = vmax.f32 %v6012_v14, 0.0 }
 0xa3b   : > { %6041 = vst [vmem:[%s9174_s17 + $0x60] sm:$0xff] %v6025_v15  ;;  %6043 = vst [vmem:[%s9174_s17 + $0x70] sm:$0xff] %v6027_v37 }
 0xa3c   : > { %6042 = vst [vmem:[%s9174_s17 + $0x68] sm:$0xff] %v6026_v38  ;;  %6044 = vst [vmem:[%s9174_s17 + $0x78] sm:$0xff] %v6028_v16 }
 0xa3d   : > { %7812 = shalt.err (!%p7809_p11)
}
 0xa3e   : > { %s7813_s17 = scalar_lea.hbm %s9211_s11, 2048  ;;  %s7817_s14 = scalar_lea.hbm %s9356_s12, 4096 }
 0xa3f   : > { %p7814_p12 = scmp.ne.s32.totalorder %s9211_s11, %s7813_s17  ;;  %p7818_p7 = scmp.lt.u32.totalorder %s9211_s11, %s9356_s12 }
 0xa40   : > { %p7819_p6 = scmp.lt.u32.totalorder %s7817_s14, %s7813_s17  ;;  %p7821_p4 = scmp.lt.u32.totalorder %s7813_s17, %s9211_s11 }
 0xa41   : > { %p7815_p3 = pnand %p7814_p12, %p9357_p1 }
 0xa42   : > { %p7820_p9 = por %p7819_p6, %p7818_p7 }
 0xa43   : > { %p7816_p5 = pneg %p7815_p3 }
 0xa44   : > { %p7822_p13 = por %p7821_p4, %p7820_p9 }
 0xa46   : > { %p7823_p0 = pnand %p7822_p13, %p7816_p5 }
 0xa48   : > { %7826 = shalt.err (!%p7823_p0)
}
 0xa49   : > { %s7900_s19 = smov 1024   ;;  %s7901_s23 = smov 64  }
 0xa4a   : > { %s9358_s5 = scalar_lea.sflag [#allocation5], %s8333_s18 }
 0xa4b   : > { %7290 = dma.vmem_to_hbm [thread:$0]  (%p9357_p1), %s9213_s4, 2048, %s9211_s11, %s9358_s5, %s7900_s19, %s7900_s19, %s7901_s23  }
 0xa4c PF: > { %s6074_s1 = sand.u32 1, %s7869_s3   ;;  %p9359_p2 = scmp.ne.s32.totalorder %s9332_s24, 0 }
 0xa4d   : > { %p9360_p8 = scmp.ge.s32.totalorder %s7881_s30, 2  ;;  %s6075_s25 = scalar_lea.sflag [#allocation5], %s6074_s1 }
 0xa4f   : > { %p7322_p10 = pnand %p9360_p8, %p9359_p2 }
 0xa51   : > { %7864 = dma.done.wait (!%p7322_p10), %s6075_s25, 2048  }
 0xa52   : > { %7866 = vsyncadd (!%p7322_p10), %s6075_s25, 4294965248  ;;  %p39_p11 = scmp.ge.s32.totalorder %s8251_s27, 4   ;;  %s9361_s3 = smov %s7873_s28 }
 0xa53   : > { %s9362_s28 = smov %s7877_s29  ;;  %s9363_s29 = smov %s8262_s6 }
 0xa54   : > { %s9364_s30 = smov %s8251_s27  ;;  %41 = sbr.rel (!%p39_p11) target bundleno = 26 (0x1a), region = 195 }
 0xa5b   :  { %6080 = vsyncpa [#allocation4], 1 }
 0xa5c   :  { %6082 = vsyncpa [#allocation4 + $0x1], 1 }
 0xa5d   :  { %6083 = vsyncpa [#allocation7], 1 }
 0xa5e   :  { %6084 = vsyncpa [#allocation10], 1 }
 0xa5f   :  { %6085 = vsyncpa [#allocation13], 1 }
 0xa60   :  { %6086 = vsyncpa [#allocation16], 1 }
 0xa61   :  { %6087 = vsyncpa [#allocation5], 1 }
 0xa62   :  { %6089 = vsyncpa [#allocation5 + $0x1], 1 }

</bundles_post_ra>
